<compile_context>
chip_gen: v6e
topology: v6e:2x2x1
jax: 0.10.0
libtpu: 0.0.40
codegen_flags: <defaults>
</compile_context>

<pallas_src>
import functools

import numpy as np
import jax
import jax.numpy as jnp
from jax.experimental import pallas as pl
from jax.experimental.pallas import tpu as pltpu

# Fixed conv kernels (the module has no learnable parameters) -- used by the pure-JAX reference.
_PASCAL = np.outer([1.0, 2.0, 1.0], [1.0, 2.0, 1.0]) / 16.0           # blur_pool2d kernel
_SOBEL_X = np.outer([1.0, 2.0, 1.0], [-1.0, 0.0, 1.0]) / 8.0          # kornia normalized sobel d/dx
_SOBEL_Y = np.outer([-1.0, 0.0, 1.0], [1.0, 2.0, 1.0]) / 8.0          # kornia normalized sobel d/dy


# ----------------------------------------------------------------------------------------------
# In-kernel helpers
# ----------------------------------------------------------------------------------------------
def _sobel(x_ref, pad_ref, slot):
    """Replicate-padded normalized sobel (dx, dy) of the (H, W) image in x_ref[0].

    Uses the per-image slot of the VMEM scratch only to build the 1-pixel replicate halo;
    separable [1,2,1] (x) [-1,0,1] stencils, zero-weight taps skipped.
    """
    H, W = x_ref.shape[1], x_ref.shape[2]
    x = x_ref[0]                                                  # (H, W)
    pad_ref[slot, 1:H + 1, 1:W + 1] = x
    pad_ref[slot, 0:1, 1:W + 1] = x[0:1, :]                       # top replicate row
    pad_ref[slot, H + 1:H + 2, 1:W + 1] = x[H - 1:H, :]           # bottom replicate row
    pad_ref[slot, :, 0:1] = pad_ref[slot, :, 1:2]                 # left col (fixes corners too)
    pad_ref[slot, :, W + 1:W + 2] = pad_ref[slot, :, W:W + 1]     # right col

    r0 = pad_ref[slot, 0:H, :]                                    # rows i-1 (replicated)
    r1 = pad_ref[slot, 1:H + 1, :]                                # rows i
    r2 = pad_ref[slot, 2:H + 2, :]                                # rows i+1 (replicated)
    sm_v = r0 + 2.0 * r1 + r2                                     # (H, W+2) vertical [1,2,1]
    df_v = r2 - r0                                                # (H, W+2) vertical [-1,0,1]
    gx = (sm_v[:, 2:W + 2] - sm_v[:, 0:W]) * 0.125                # d/dx  (H, W)
    gy = (df_v[:, 0:W] + 2.0 * df_v[:, 1:W + 1] + df_v[:, 2:W + 2]) * 0.125
    # TODO(synk): zero-weight sobel taps are skipped, so a non-finite value sitting exactly on a
    # zero-weight tap does not poison that pixel (torch's dense conv, 0*inf=nan, would mask it).
    return x, gx, gy


def _masked_partials(gx_gt, gy_gt, gx_pr, gy_pr, part_ref):
    """Masked |grad diff| sum and mask count, packed into one (1,1,2) output block."""
    mx = jnp.abs(gx_gt) < jnp.inf                                 # isfinite(gt d/dx)
    my = jnp.abs(gy_gt) < jnp.inf                                 # isfinite(gt d/dy)
    err = (jnp.where(mx, jnp.abs(gx_pr - gx_gt), 0.0)
           + jnp.where(my, jnp.abs(gy_pr - gy_gt), 0.0))
    cnt = mx.astype(jnp.float32) + my.astype(jnp.float32)
    s = jnp.sum(jnp.sum(err, axis=1, keepdims=True), axis=0, keepdims=True)   # (1, 1)
    c = jnp.sum(jnp.sum(cnt, axis=1, keepdims=True), axis=0, keepdims=True)   # (1, 1)
    part_ref[0, 0:1, 0:1] = s
    part_ref[0, 0:1, 1:2] = c


def _scale_kernel_with_down(gt_ref, pr_ref, v_ref, h_ref,
                            part_ref, gt_dn_ref, pr_dn_ref, pad_ref):
    """One grid step == one (H, W) image: masked sobel-diff partials + blur_pool2d downsample."""
    gt, gx_gt, gy_gt = _sobel(gt_ref, pad_ref, 0)
    pr, gx_pr, gy_pr = _sobel(pr_ref, pad_ref, 1)
    _masked_partials(gx_gt, gy_gt, gx_pr, gy_pr, part_ref)

    v = v_ref[...]                                                # (H2, H)   banded [1,2,1], stride 2, zero pad
    h = h_ref[...]                                                # (W,  W2)  banded [1,2,1]/16, stride 2, zero pad

    def blur_down(x):
        # MXU blur + decimation.  Sanitize non-finite inputs first (0 * inf/nan = nan would smear
        # across whole matmul rows/cols), then re-poison every stencil window that touched a
        # non-finite pixel so the next scale's isfinite mask sees the same footprint as torch.
        finite = jnp.abs(x) < jnp.inf
        clean = jnp.where(finite, x, jnp.float32(0.0))
        bad = jnp.where(finite, jnp.float32(0.0), jnp.float32(1.0))
        blur = jnp.dot(jnp.dot(v, clean, preferred_element_type=jnp.float32),
                       h, preferred_element_type=jnp.float32)
        bad_dn = jnp.dot(jnp.dot(v, bad, preferred_element_type=jnp.float32),
                         h, preferred_element_type=jnp.float32)
        return jnp.where(bad_dn > 0.0, jnp.float32(jnp.nan), blur)

    gt_dn_ref[0] = blur_down(gt)
    pr_dn_ref[0] = blur_down(pr)


def _scale_kernel_last(gt_ref, pr_ref, part_ref, pad_ref):
    """Coarsest pyramid level: loss partials only, no downsample compute / writeback."""
    _, gx_gt, gy_gt = _sobel(gt_ref, pad_ref, 0)
    _, gx_pr, gy_pr = _sobel(pr_ref, pad_ref, 1)
    _masked_partials(gx_gt, gy_gt, gx_pr, gy_pr, part_ref)


# ----------------------------------------------------------------------------------------------
# Host-side wrappers
# ----------------------------------------------------------------------------------------------
def _make_blur_mats(H, W):
    """Banded matrices so that blur_pool2d(x) == (V @ x) @ Hm  (zero pad 1, stride 2, /16)."""
    H2, W2 = (H + 1) // 2, (W + 1) // 2
    v = np.zeros((H2, H), np.float32)
    h = np.zeros((W, W2), np.float32)
    for i in range(H2):
        for d, w in ((-1, 1.0), (0, 2.0), (1, 1.0)):
            r = 2 * i + d
            if 0 <= r < H:
                v[i, r] = w
    for j in range(W2):
        for d, w in ((-1, 1.0), (0, 2.0), (1, 1.0)):
            c = 2 * j + d
            if 0 <= c < W:
                h[c, j] = w / 16.0
    return jnp.asarray(v), jnp.asarray(h)


def _vmem_limit_bytes(H, W, with_down):
    """Per-step footprint (double-buffered blocks + scratch + temp headroom), capped to device VMEM."""
    H2, W2 = (H + 1) // 2, (W + 1) // 2
    need = 4 * (2 * 2 * H * W                       # gt / pred input blocks, double-buffered
                + 2 * (H2 * H + W * W2)             # banded blur matrices
                + 2 * 2                             # packed scalar partials
                + (2 * 2 * 2 * H2 * W2 if with_down else 0)   # downsample outputs
                + 2 * (H + 2) * (W + 2)             # replicate-halo scratch (2 slots)
                + 12 * H * W)                       # headroom for in-kernel temporaries
    try:
        cap = pltpu.get_tpu_info().vmem_capacity_bytes
    except Exception:
        cap = 64 * 1024 * 1024
    return int(min(max(need, 16 * 1024 * 1024), int(cap * 0.9)))


def _scale_with_down(gt, pr):
    """One pyramid level. Returns (packed partials (N,1,2), next-scale gt, next-scale pred)."""
    N, H, W = gt.shape
    H2, W2 = (H + 1) // 2, (W + 1) // 2
    vmat, hmat = _make_blur_mats(H, W)
    part, gt_dn, pr_dn = pl.pallas_call(
        _scale_kernel_with_down,
        grid=(N,),
        in_specs=[
            pl.BlockSpec((1, H, W), lambda n: (n, 0, 0)),
            pl.BlockSpec((1, H, W), lambda n: (n, 0, 0)),
            pl.BlockSpec((H2, H), lambda n: (0, 0)),     # constant blocks: fetched once
            pl.BlockSpec((W, W2), lambda n: (0, 0)),
        ],
        out_specs=(
            pl.BlockSpec((1, 1, 2), lambda n: (n, 0, 0)),      # packed [err_sum, mask_count]
            pl.BlockSpec((1, H2, W2), lambda n: (n, 0, 0)),    # lane-dense decimated gt
            pl.BlockSpec((1, H2, W2), lambda n: (n, 0, 0)),    # lane-dense decimated pred
        ),
        out_shape=(
            jax.ShapeDtypeStruct((N, 1, 2), jnp.float32),
            jax.ShapeDtypeStruct((N, H2, W2), jnp.float32),
            jax.ShapeDtypeStruct((N, H2, W2), jnp.float32),
        ),
        scratch_shapes=[pltpu.VMEM((2, H + 2, W + 2), jnp.float32)],  # sobel halo, gt/pred slots
        compiler_params=pltpu.CompilerParams(
            dimension_semantics=("parallel",),
            vmem_limit_bytes=_vmem_limit_bytes(H, W, True),
        ),
    )(gt, pr, vmat, hmat)
    return part, gt_dn, pr_dn


def _scale_last(gt, pr):
    """Coarsest pyramid level: only the packed loss partials."""
    N, H, W = gt.shape
    part = pl.pallas_call(
        _scale_kernel_last,
        grid=(N,),
        in_specs=[
            pl.BlockSpec((1, H, W), lambda n: (n, 0, 0)),
            pl.BlockSpec((1, H, W), lambda n: (n, 0, 0)),
        ],
        out_specs=pl.BlockSpec((1, 1, 2), lambda n: (n, 0, 0)),
        out_shape=jax.ShapeDtypeStruct((N, 1, 2), jnp.float32),
        scratch_shapes=[pltpu.VMEM((2, H + 2, W + 2), jnp.float32)],
        compiler_params=pltpu.CompilerParams(
            dimension_semantics=("parallel",),
            vmem_limit_bytes=_vmem_limit_bytes(H, W, False),
        ),
    )(gt, pr)
    return part


@functools.partial(jax.jit, static_argnames=("num_scales",))
def ms_gradient_loss(depth_gt, depth_pred, num_scales=4):
    B, C, H, W = depth_gt.shape                    # NCHW depth maps (C == 1)
    gt = depth_gt.reshape(B * C, H, W).astype(jnp.float32)
    pr = depth_pred.reshape(B * C, H, W).astype(jnp.float32)
    loss = jnp.zeros((), jnp.float32)
    for s in range(num_scales):
        if s == num_scales - 1:
            part = _scale_last(gt, pr)
        else:
            part, gt, pr = _scale_with_down(gt, pr)
        tot = jnp.sum(part, axis=0)                # (1, 2): [masked |grad diff| sum, mask count]
        # masked_select(...).mean() == masked-sum / mask-count (NaN for an empty mask, like torch).
        loss = loss + tot[0, 0] / tot[0, 1]
    return loss


# ----------------------------------------------------------------------------------------------
# Pure-JAX reference (same math, no Pallas) for validation
# ----------------------------------------------------------------------------------------------
def _ref_ms_gradient_loss(depth_gt, depth_pred, num_scales=4):
    def blur_pool(x):
        N, H, W = x.shape
        xp = jnp.pad(x, ((0, 0), (1, 1), (1, 1)))
        out = sum(float(_PASCAL[u, v]) * xp[:, u:u + H, v:v + W]
                  for u in range(3) for v in range(3))
        return out[:, ::2, ::2]

    def sobel(x):
        N, H, W = x.shape
        xp = jnp.pad(x, ((0, 0), (1, 1), (1, 1)), mode="edge")
        gx = sum(float(_SOBEL_X[u, v]) * xp[:, u:u + H, v:v + W]
                 for u in range(3) for v in range(3) if _SOBEL_X[u, v] != 0.0)
        gy = sum(float(_SOBEL_Y[u, v]) * xp[:, u:u + H, v:v + W]
                 for u in range(3) for v in range(3) if _SOBEL_Y[u, v] != 0.0)
        return gx, gy

    B, C, H, W = depth_gt.shape
    gt = depth_gt.reshape(B * C, H, W).astype(jnp.float32)
    pr = depth_pred.reshape(B * C, H, W).astype(jnp.float32)
    loss = jnp.zeros((), jnp.float32)
    for s in range(num_scales):
        gx_gt, gy_gt = sobel(gt)
        gx_pr, gy_pr = sobel(pr)
        mx = jnp.isfinite(gx_gt)
        my = jnp.isfinite(gy_gt)
        num = (jnp.sum(jnp.where(mx, jnp.abs(gx_pr - gx_gt), 0.0))
               + jnp.sum(jnp.where(my, jnp.abs(gy_pr - gy_gt), 0.0)))
        den = jnp.sum(mx) + jnp.sum(my)
        loss = loss + num / den
        if s != num_scales - 1:
            gt, pr = blur_pool(gt), blur_pool(pr)
    return loss


if __name__ == "__main__":
    key = jax.random.PRNGKey(0)
    k1, k2 = jax.random.split(key)
    B, C, H, W = 2, 1, 32, 32
    depth_gt = jax.random.uniform(k1, (B, C, H, W), jnp.float32, 0.5, 5.0)
    depth_pred = jax.random.uniform(k2, (B, C, H, W), jnp.float32, 0.5, 5.0)

    loss = jax.block_until_ready(ms_gradient_loss(depth_gt, depth_pred, num_scales=4))
    ref = _ref_ms_gradient_loss(depth_gt, depth_pred, num_scales=4)
    assert jnp.allclose(loss, ref, rtol=1e-4, atol=1e-6), (loss, ref)

    # Non-finite gt pixels (invalid depth): the mask must drop them at every scale and the
    # blur-pool must propagate their footprint into the next scale exactly like the reference.
    depth_gt_bad = depth_gt.at[0, 0, 5, 7].set(jnp.nan).at[1, 0, 2, 11].set(jnp.inf)
    loss_bad = jax.block_until_ready(ms_gradient_loss(depth_gt_bad, depth_pred, num_scales=2))
    ref_bad = _ref_ms_gradient_loss(depth_gt_bad, depth_pred, num_scales=2)
    assert jnp.isfinite(loss_bad), loss_bad
    assert jnp.allclose(loss_bad, ref_bad, rtol=1e-4, atol=1e-6), (loss_bad, ref_bad)

    print("KERNEL_OK")
</pallas_src>

<mosaic_0001>
module attributes {stable_mosaic.version = 11 : i64} {
  func.func @_scale_kernel_with_down(%arg0: i32, %arg1: memref<1x16x16xf32, #tpu.memory_space<vmem>>, %arg2: memref<1x16x16xf32, #tpu.memory_space<vmem>>, %arg3: memref<8x16xf32, #tpu.memory_space<vmem>>, %arg4: memref<16x8xf32, #tpu.memory_space<vmem>>, %arg5: memref<1x1x2xf32, #tpu.memory_space<vmem>>, %arg6: memref<1x8x8xf32, #tpu.memory_space<vmem>>, %arg7: memref<1x8x8xf32, #tpu.memory_space<vmem>>, %arg8: memref<2x18x18xf32, #tpu.memory_space<vmem>>) attributes {dimension_semantics = [#tpu.dimension_semantics<parallel>], iteration_bounds = array<i64: 2>, scalar_prefetch = 0 : i64, scratch_operands = 1 : i64, tpu.core_type = #tpu.core_type<tc>, window_params = [{transform_indices = @transform_0, window_bounds = array<i64: 1, 16, 16>}, {transform_indices = @transform_1, window_bounds = array<i64: 1, 16, 16>}, {pipeline_mode = #tpu.pipeline_mode<synchronous>, transform_indices = @transform_2, window_bounds = array<i64: 8, 16>}, {pipeline_mode = #tpu.pipeline_mode<synchronous>, transform_indices = @transform_3, window_bounds = array<i64: 16, 8>}, {transform_indices = @transform_4, window_bounds = array<i64: 1, 1, 2>}, {transform_indices = @transform_5, window_bounds = array<i64: 1, 8, 8>}, {transform_indices = @transform_6, window_bounds = array<i64: 1, 8, 8>}]} {
    %c0 = arith.constant 0 : index
    %c0_0 = arith.constant 0 : index
    %c0_1 = arith.constant 0 : index
    %0 = vector.load %arg1[%c0, %c0_0, %c0_1] : memref<1x16x16xf32, #tpu.memory_space<vmem>>, vector<1x16x16xf32>
    %1 = vector.shape_cast %0 : vector<1x16x16xf32> to vector<16x16xf32>
    %c0_2 = arith.constant 0 : index
    %c1 = arith.constant 1 : index
    %c1_3 = arith.constant 1 : index
    %2 = vector.load %arg8[%c0_2, %c1, %c1_3] : memref<2x18x18xf32, #tpu.memory_space<vmem>>, vector<1x16x16xf32>
    %3 = vector.shape_cast %2 : vector<1x16x16xf32> to vector<16x16xf32>
    %4 = vector.shape_cast %1 : vector<16x16xf32> to vector<1x16x16xf32>
    tpu.vector_store %arg8[%c0_2, %c1, %c1_3], %4 {strides = array<i32>} : memref<2x18x18xf32, #tpu.memory_space<vmem>>, vector<1x16x16xf32>,
    %5 = vector.extract_strided_slice %1 {offsets = [0, 0], sizes = [1, 16], strides = [1, 1]} : vector<16x16xf32> to vector<1x16xf32>
    %c0_4 = arith.constant 0 : index
    %c0_5 = arith.constant 0 : index
    %c1_6 = arith.constant 1 : index
    %6 = vector.load %arg8[%c0_4, %c0_5, %c1_6] : memref<2x18x18xf32, #tpu.memory_space<vmem>>, vector<1x1x16xf32>
    %7 = vector.shape_cast %6 : vector<1x1x16xf32> to vector<1x16xf32>
    %8 = vector.shape_cast %5 : vector<1x16xf32> to vector<1x1x16xf32>
    tpu.vector_store %arg8[%c0_4, %c0_5, %c1_6], %8 {strides = array<i32>} : memref<2x18x18xf32, #tpu.memory_space<vmem>>, vector<1x1x16xf32>,
    %9 = vector.extract_strided_slice %1 {offsets = [15, 0], sizes = [1, 16], strides = [1, 1]} : vector<16x16xf32> to vector<1x16xf32>
    %c0_7 = arith.constant 0 : index
    %c17 = arith.constant 17 : index
    %c1_8 = arith.constant 1 : index
    %10 = vector.load %arg8[%c0_7, %c17, %c1_8] : memref<2x18x18xf32, #tpu.memory_space<vmem>>, vector<1x1x16xf32>
    %11 = vector.shape_cast %10 : vector<1x1x16xf32> to vector<1x16xf32>
    %12 = vector.shape_cast %9 : vector<1x16xf32> to vector<1x1x16xf32>
    tpu.vector_store %arg8[%c0_7, %c17, %c1_8], %12 {strides = array<i32>} : memref<2x18x18xf32, #tpu.memory_space<vmem>>, vector<1x1x16xf32>,
    %c0_9 = arith.constant 0 : index
    %c0_10 = arith.constant 0 : index
    %c1_11 = arith.constant 1 : index
    %13 = vector.load %arg8[%c0_9, %c0_10, %c1_11] : memref<2x18x18xf32, #tpu.memory_space<vmem>>, vector<1x18x1xf32>
    %14 = vector.shape_cast %13 : vector<1x18x1xf32> to vector<18x1xf32>
    %c0_12 = arith.constant 0 : index
    %c0_13 = arith.constant 0 : index
    %c0_14 = arith.constant 0 : index
    %15 = vector.load %arg8[%c0_12, %c0_13, %c0_14] : memref<2x18x18xf32, #tpu.memory_space<vmem>>, vector<1x18x1xf32>
    %16 = vector.shape_cast %15 : vector<1x18x1xf32> to vector<18x1xf32>
    %17 = vector.shape_cast %14 : vector<18x1xf32> to vector<1x18x1xf32>
    tpu.vector_store %arg8[%c0_12, %c0_13, %c0_14], %17 {strides = array<i32>} : memref<2x18x18xf32, #tpu.memory_space<vmem>>, vector<1x18x1xf32>,
    %c0_15 = arith.constant 0 : index
    %c0_16 = arith.constant 0 : index
    %c16 = arith.constant 16 : index
    %18 = vector.load %arg8[%c0_15, %c0_16, %c16] : memref<2x18x18xf32, #tpu.memory_space<vmem>>, vector<1x18x1xf32>
    %19 = vector.shape_cast %18 : vector<1x18x1xf32> to vector<18x1xf32>
    %c0_17 = arith.constant 0 : index
    %c0_18 = arith.constant 0 : index
    %c17_19 = arith.constant 17 : index
    %20 = vector.load %arg8[%c0_17, %c0_18, %c17_19] : memref<2x18x18xf32, #tpu.memory_space<vmem>>, vector<1x18x1xf32>
    %21 = vector.shape_cast %20 : vector<1x18x1xf32> to vector<18x1xf32>
    %22 = vector.shape_cast %19 : vector<18x1xf32> to vector<1x18x1xf32>
    tpu.vector_store %arg8[%c0_17, %c0_18, %c17_19], %22 {strides = array<i32>} : memref<2x18x18xf32, #tpu.memory_space<vmem>>, vector<1x18x1xf32>,
    %c0_20 = arith.constant 0 : index
    %c0_21 = arith.constant 0 : index
    %c0_22 = arith.constant 0 : index
    %23 = vector.load %arg8[%c0_20, %c0_21, %c0_22] : memref<2x18x18xf32, #tpu.memory_space<vmem>>, vector<1x16x18xf32>
    %24 = vector.shape_cast %23 : vector<1x16x18xf32> to vector<16x18xf32>
    %c0_23 = arith.constant 0 : index
    %c1_24 = arith.constant 1 : index
    %c0_25 = arith.constant 0 : index
    %25 = vector.load %arg8[%c0_23, %c1_24, %c0_25] : memref<2x18x18xf32, #tpu.memory_space<vmem>>, vector<1x16x18xf32>
    %26 = vector.shape_cast %25 : vector<1x16x18xf32> to vector<16x18xf32>
    %c0_26 = arith.constant 0 : index
    %c2 = arith.constant 2 : index
    %c0_27 = arith.constant 0 : index
    %27 = vector.load %arg8[%c0_26, %c2, %c0_27] : memref<2x18x18xf32, #tpu.memory_space<vmem>>, vector<1x16x18xf32>
    %28 = vector.shape_cast %27 : vector<1x16x18xf32> to vector<16x18xf32>
    %cst = arith.constant 2.000000e+00 : f32
    %29 = vector.broadcast %cst : f32 to vector<16x18xf32>
    %30 = arith.mulf %29, %26 : vector<16x18xf32>
    %31 = arith.addf %24, %30 : vector<16x18xf32>
    %32 = arith.addf %31, %28 : vector<16x18xf32>
    %33 = arith.subf %28, %24 : vector<16x18xf32>
    %34 = vector.extract_strided_slice %32 {offsets = [0, 2], sizes = [16, 16], strides = [1, 1]} : vector<16x18xf32> to vector<16x16xf32>
    %35 = vector.extract_strided_slice %32 {offsets = [0, 0], sizes = [16, 16], strides = [1, 1]} : vector<16x18xf32> to vector<16x16xf32>
    %36 = arith.subf %34, %35 : vector<16x16xf32>
    %cst_28 = arith.constant 1.250000e-01 : f32
    %37 = vector.broadcast %cst_28 : f32 to vector<16x16xf32>
    %38 = arith.mulf %36, %37 : vector<16x16xf32>
    %39 = vector.extract_strided_slice %33 {offsets = [0, 0], sizes = [16, 16], strides = [1, 1]} : vector<16x18xf32> to vector<16x16xf32>
    %40 = vector.extract_strided_slice %33 {offsets = [0, 1], sizes = [16, 16], strides = [1, 1]} : vector<16x18xf32> to vector<16x16xf32>
    %cst_29 = arith.constant 2.000000e+00 : f32
    %41 = vector.broadcast %cst_29 : f32 to vector<16x16xf32>
    %42 = arith.mulf %41, %40 : vector<16x16xf32>
    %43 = arith.addf %39, %42 : vector<16x16xf32>
    %44 = vector.extract_strided_slice %33 {offsets = [0, 2], sizes = [16, 16], strides = [1, 1]} : vector<16x18xf32> to vector<16x16xf32>
    %45 = arith.addf %43, %44 : vector<16x16xf32>
    %cst_30 = arith.constant 1.250000e-01 : f32
    %46 = vector.broadcast %cst_30 : f32 to vector<16x16xf32>
    %47 = arith.mulf %45, %46 : vector<16x16xf32>
    %c0_31 = arith.constant 0 : index
    %c0_32 = arith.constant 0 : index
    %c0_33 = arith.constant 0 : index
    %48 = vector.load %arg2[%c0_31, %c0_32, %c0_33] : memref<1x16x16xf32, #tpu.memory_space<vmem>>, vector<1x16x16xf32>
    %49 = vector.shape_cast %48 : vector<1x16x16xf32> to vector<16x16xf32>
    %c1_34 = arith.constant 1 : index
    %c1_35 = arith.constant 1 : index
    %c1_36 = arith.constant 1 : index
    %50 = vector.load %arg8[%c1_34, %c1_35, %c1_36] : memref<2x18x18xf32, #tpu.memory_space<vmem>>, vector<1x16x16xf32>
    %51 = vector.shape_cast %50 : vector<1x16x16xf32> to vector<16x16xf32>
    %52 = vector.shape_cast %49 : vector<16x16xf32> to vector<1x16x16xf32>
    tpu.vector_store %arg8[%c1_34, %c1_35, %c1_36], %52 {strides = array<i32>} : memref<2x18x18xf32, #tpu.memory_space<vmem>>, vector<1x16x16xf32>,
    %53 = vector.extract_strided_slice %49 {offsets = [0, 0], sizes = [1, 16], strides = [1, 1]} : vector<16x16xf32> to vector<1x16xf32>
    %c1_37 = arith.constant 1 : index
    %c0_38 = arith.constant 0 : index
    %c1_39 = arith.constant 1 : index
    %54 = vector.load %arg8[%c1_37, %c0_38, %c1_39] : memref<2x18x18xf32, #tpu.memory_space<vmem>>, vector<1x1x16xf32>
    %55 = vector.shape_cast %54 : vector<1x1x16xf32> to vector<1x16xf32>
    %56 = vector.shape_cast %53 : vector<1x16xf32> to vector<1x1x16xf32>
    tpu.vector_store %arg8[%c1_37, %c0_38, %c1_39], %56 {strides = array<i32>} : memref<2x18x18xf32, #tpu.memory_space<vmem>>, vector<1x1x16xf32>,
    %57 = vector.extract_strided_slice %49 {offsets = [15, 0], sizes = [1, 16], strides = [1, 1]} : vector<16x16xf32> to vector<1x16xf32>
    %c1_40 = arith.constant 1 : index
    %c17_41 = arith.constant 17 : index
    %c1_42 = arith.constant 1 : index
    %58 = vector.load %arg8[%c1_40, %c17_41, %c1_42] : memref<2x18x18xf32, #tpu.memory_space<vmem>>, vector<1x1x16xf32>
    %59 = vector.shape_cast %58 : vector<1x1x16xf32> to vector<1x16xf32>
    %60 = vector.shape_cast %57 : vector<1x16xf32> to vector<1x1x16xf32>
    tpu.vector_store %arg8[%c1_40, %c17_41, %c1_42], %60 {strides = array<i32>} : memref<2x18x18xf32, #tpu.memory_space<vmem>>, vector<1x1x16xf32>,
    %c1_43 = arith.constant 1 : index
    %c0_44 = arith.constant 0 : index
    %c1_45 = arith.constant 1 : index
    %61 = vector.load %arg8[%c1_43, %c0_44, %c1_45] : memref<2x18x18xf32, #tpu.memory_space<vmem>>, vector<1x18x1xf32>
    %62 = vector.shape_cast %61 : vector<1x18x1xf32> to vector<18x1xf32>
    %c1_46 = arith.constant 1 : index
    %c0_47 = arith.constant 0 : index
    %c0_48 = arith.constant 0 : index
    %63 = vector.load %arg8[%c1_46, %c0_47, %c0_48] : memref<2x18x18xf32, #tpu.memory_space<vmem>>, vector<1x18x1xf32>
    %64 = vector.shape_cast %63 : vector<1x18x1xf32> to vector<18x1xf32>
    %65 = vector.shape_cast %62 : vector<18x1xf32> to vector<1x18x1xf32>
    tpu.vector_store %arg8[%c1_46, %c0_47, %c0_48], %65 {strides = array<i32>} : memref<2x18x18xf32, #tpu.memory_space<vmem>>, vector<1x18x1xf32>,
    %c1_49 = arith.constant 1 : index
    %c0_50 = arith.constant 0 : index
    %c16_51 = arith.constant 16 : index
    %66 = vector.load %arg8[%c1_49, %c0_50, %c16_51] : memref<2x18x18xf32, #tpu.memory_space<vmem>>, vector<1x18x1xf32>
    %67 = vector.shape_cast %66 : vector<1x18x1xf32> to vector<18x1xf32>
    %c1_52 = arith.constant 1 : index
    %c0_53 = arith.constant 0 : index
    %c17_54 = arith.constant 17 : index
    %68 = vector.load %arg8[%c1_52, %c0_53, %c17_54] : memref<2x18x18xf32, #tpu.memory_space<vmem>>, vector<1x18x1xf32>
    %69 = vector.shape_cast %68 : vector<1x18x1xf32> to vector<18x1xf32>
    %70 = vector.shape_cast %67 : vector<18x1xf32> to vector<1x18x1xf32>
    tpu.vector_store %arg8[%c1_52, %c0_53, %c17_54], %70 {strides = array<i32>} : memref<2x18x18xf32, #tpu.memory_space<vmem>>, vector<1x18x1xf32>,
    %c1_55 = arith.constant 1 : index
    %c0_56 = arith.constant 0 : index
    %c0_57 = arith.constant 0 : index
    %71 = vector.load %arg8[%c1_55, %c0_56, %c0_57] : memref<2x18x18xf32, #tpu.memory_space<vmem>>, vector<1x16x18xf32>
    %72 = vector.shape_cast %71 : vector<1x16x18xf32> to vector<16x18xf32>
    %c1_58 = arith.constant 1 : index
    %c1_59 = arith.constant 1 : index
    %c0_60 = arith.constant 0 : index
    %73 = vector.load %arg8[%c1_58, %c1_59, %c0_60] : memref<2x18x18xf32, #tpu.memory_space<vmem>>, vector<1x16x18xf32>
    %74 = vector.shape_cast %73 : vector<1x16x18xf32> to vector<16x18xf32>
    %c1_61 = arith.constant 1 : index
    %c2_62 = arith.constant 2 : index
    %c0_63 = arith.constant 0 : index
    %75 = vector.load %arg8[%c1_61, %c2_62, %c0_63] : memref<2x18x18xf32, #tpu.memory_space<vmem>>, vector<1x16x18xf32>
    %76 = vector.shape_cast %75 : vector<1x16x18xf32> to vector<16x18xf32>
    %cst_64 = arith.constant 2.000000e+00 : f32
    %77 = vector.broadcast %cst_64 : f32 to vector<16x18xf32>
    %78 = arith.mulf %77, %74 : vector<16x18xf32>
    %79 = arith.addf %72, %78 : vector<16x18xf32>
    %80 = arith.addf %79, %76 : vector<16x18xf32>
    %81 = arith.subf %76, %72 : vector<16x18xf32>
    %82 = vector.extract_strided_slice %80 {offsets = [0, 2], sizes = [16, 16], strides = [1, 1]} : vector<16x18xf32> to vector<16x16xf32>
    %83 = vector.extract_strided_slice %80 {offsets = [0, 0], sizes = [16, 16], strides = [1, 1]} : vector<16x18xf32> to vector<16x16xf32>
    %84 = arith.subf %82, %83 : vector<16x16xf32>
    %cst_65 = arith.constant 1.250000e-01 : f32
    %85 = vector.broadcast %cst_65 : f32 to vector<16x16xf32>
    %86 = arith.mulf %84, %85 : vector<16x16xf32>
    %87 = vector.extract_strided_slice %81 {offsets = [0, 0], sizes = [16, 16], strides = [1, 1]} : vector<16x18xf32> to vector<16x16xf32>
    %88 = vector.extract_strided_slice %81 {offsets = [0, 1], sizes = [16, 16], strides = [1, 1]} : vector<16x18xf32> to vector<16x16xf32>
    %cst_66 = arith.constant 2.000000e+00 : f32
    %89 = vector.broadcast %cst_66 : f32 to vector<16x16xf32>
    %90 = arith.mulf %89, %88 : vector<16x16xf32>
    %91 = arith.addf %87, %90 : vector<16x16xf32>
    %92 = vector.extract_strided_slice %81 {offsets = [0, 2], sizes = [16, 16], strides = [1, 1]} : vector<16x18xf32> to vector<16x16xf32>
    %93 = arith.addf %91, %92 : vector<16x16xf32>
    %cst_67 = arith.constant 1.250000e-01 : f32
    %94 = vector.broadcast %cst_67 : f32 to vector<16x16xf32>
    %95 = arith.mulf %93, %94 : vector<16x16xf32>
    %96 = math.absf %38 : vector<16x16xf32>
    %cst_68 = arith.constant 0x7F800000 : f32
    %97 = vector.broadcast %cst_68 : f32 to vector<16x16xf32>
    %98 = arith.cmpf olt, %96, %97 : vector<16x16xf32>
    %99 = math.absf %47 : vector<16x16xf32>
    %cst_69 = arith.constant 0x7F800000 : f32
    %100 = vector.broadcast %cst_69 : f32 to vector<16x16xf32>
    %101 = arith.cmpf olt, %99, %100 : vector<16x16xf32>
    %102 = arith.subf %86, %38 : vector<16x16xf32>
    %103 = math.absf %102 : vector<16x16xf32>
    %cst_70 = arith.constant 0.000000e+00 : f32
    %104 = vector.broadcast %cst_70 : f32 to vector<16x16xf32>
    %105 = arith.select %98, %103, %104 : vector<16x16xi1>, vector<16x16xf32>
    %106 = arith.subf %95, %47 : vector<16x16xf32>
    %107 = math.absf %106 : vector<16x16xf32>
    %cst_71 = arith.constant 0.000000e+00 : f32
    %108 = vector.broadcast %cst_71 : f32 to vector<16x16xf32>
    %109 = arith.select %101, %107, %108 : vector<16x16xi1>, vector<16x16xf32>
    %110 = arith.addf %105, %109 : vector<16x16xf32>
    %111 = arith.extui %98 : vector<16x16xi1> to vector<16x16xi32>
    %112 = arith.sitofp %111 : vector<16x16xi32> to vector<16x16xf32>
    %113 = arith.extui %101 : vector<16x16xi1> to vector<16x16xi32>
    %114 = arith.sitofp %113 : vector<16x16xi32> to vector<16x16xf32>
    %115 = arith.addf %112, %114 : vector<16x16xf32>
    %cst_72 = arith.constant dense<0.000000e+00> : vector<16xf32>
    %116 = vector.multi_reduction <add>, %110, %cst_72 [1] : vector<16x16xf32> to vector<16xf32>
    %117 = vector.shape_cast %116 : vector<16xf32> to vector<16x1xf32>
    %cst_73 = arith.constant dense<0.000000e+00> : vector<1xf32>
    %118 = vector.multi_reduction <add>, %117, %cst_73 [0] : vector<16x1xf32> to vector<1xf32>
    %119 = vector.shape_cast %118 : vector<1xf32> to vector<1x1xf32>
    %cst_74 = arith.constant dense<0.000000e+00> : vector<16xf32>
    %120 = vector.multi_reduction <add>, %115, %cst_74 [1] : vector<16x16xf32> to vector<16xf32>
    %121 = vector.shape_cast %120 : vector<16xf32> to vector<16x1xf32>
    %cst_75 = arith.constant dense<0.000000e+00> : vector<1xf32>
    %122 = vector.multi_reduction <add>, %121, %cst_75 [0] : vector<16x1xf32> to vector<1xf32>
    %123 = vector.shape_cast %122 : vector<1xf32> to vector<1x1xf32>
    %c0_76 = arith.constant 0 : index
    %c0_77 = arith.constant 0 : index
    %c0_78 = arith.constant 0 : index
    %124 = vector.load %arg5[%c0_76, %c0_77, %c0_78] : memref<1x1x2xf32, #tpu.memory_space<vmem>>, vector<1x1x1xf32>
    %125 = vector.shape_cast %124 : vector<1x1x1xf32> to vector<1x1xf32>
    %126 = vector.shape_cast %119 : vector<1x1xf32> to vector<1x1x1xf32>
    tpu.vector_store %arg5[%c0_76, %c0_77, %c0_78], %126 {strides = array<i32>} : memref<1x1x2xf32, #tpu.memory_space<vmem>>, vector<1x1x1xf32>,
    %c0_79 = arith.constant 0 : index
    %c0_80 = arith.constant 0 : index
    %c1_81 = arith.constant 1 : index
    %127 = vector.load %arg5[%c0_79, %c0_80, %c1_81] : memref<1x1x2xf32, #tpu.memory_space<vmem>>, vector<1x1x1xf32>
    %128 = vector.shape_cast %127 : vector<1x1x1xf32> to vector<1x1xf32>
    %129 = vector.shape_cast %123 : vector<1x1xf32> to vector<1x1x1xf32>
    tpu.vector_store %arg5[%c0_79, %c0_80, %c1_81], %129 {strides = array<i32>} : memref<1x1x2xf32, #tpu.memory_space<vmem>>, vector<1x1x1xf32>,
    %c0_82 = arith.constant 0 : index
    %c0_83 = arith.constant 0 : index
    %130 = vector.load %arg3[%c0_82, %c0_83] : memref<8x16xf32, #tpu.memory_space<vmem>>, vector<8x16xf32>
    %c0_84 = arith.constant 0 : index
    %c0_85 = arith.constant 0 : index
    %131 = vector.load %arg4[%c0_84, %c0_85] : memref<16x8xf32, #tpu.memory_space<vmem>>, vector<16x8xf32>
    %132 = math.absf %1 : vector<16x16xf32>
    %cst_86 = arith.constant 0x7F800000 : f32
    %133 = vector.broadcast %cst_86 : f32 to vector<16x16xf32>
    %134 = arith.cmpf olt, %132, %133 : vector<16x16xf32>
    %cst_87 = arith.constant 0.000000e+00 : f32
    %135 = vector.broadcast %cst_87 : f32 to vector<16x16xf32>
    %136 = arith.select %134, %1, %135 : vector<16x16xi1>, vector<16x16xf32>
    %cst_88 = arith.constant 0.000000e+00 : f32
    %cst_89 = arith.constant 1.000000e+00 : f32
    %137 = vector.broadcast %cst_88 : f32 to vector<16x16xf32>
    %138 = vector.broadcast %cst_89 : f32 to vector<16x16xf32>
    %139 = arith.select %134, %137, %138 : vector<16x16xi1>, vector<16x16xf32>
    %cst_90 = arith.constant dense<0.000000e+00> : vector<8x16xf32>
    %140 = tpu.matmul %130, %136, %cst_90 {dimension_numbers = #tpu.dot_dimension_numbers<[1], [0], [0], [1], [0, 0, 1, 1], [], []>} : vector<8x16xf32>, vector<16x16xf32>, vector<8x16xf32> -> vector<8x16xf32>
    %cst_91 = arith.constant dense<0.000000e+00> : vector<8x8xf32>
    %141 = tpu.matmul %140, %131, %cst_91 {dimension_numbers = #tpu.dot_dimension_numbers<[1], [0], [0], [1], [0, 0, 1, 1], [], []>} : vector<8x16xf32>, vector<16x8xf32>, vector<8x8xf32> -> vector<8x8xf32>
    %cst_92 = arith.constant dense<0.000000e+00> : vector<8x16xf32>
    %142 = tpu.matmul %130, %139, %cst_92 {dimension_numbers = #tpu.dot_dimension_numbers<[1], [0], [0], [1], [0, 0, 1, 1], [], []>} : vector<8x16xf32>, vector<16x16xf32>, vector<8x16xf32> -> vector<8x16xf32>
    %cst_93 = arith.constant dense<0.000000e+00> : vector<8x8xf32>
    %143 = tpu.matmul %142, %131, %cst_93 {dimension_numbers = #tpu.dot_dimension_numbers<[1], [0], [0], [1], [0, 0, 1, 1], [], []>} : vector<8x16xf32>, vector<16x8xf32>, vector<8x8xf32> -> vector<8x8xf32>
    %cst_94 = arith.constant 0.000000e+00 : f32
    %144 = vector.broadcast %cst_94 : f32 to vector<8x8xf32>
    %145 = arith.cmpf ogt, %143, %144 : vector<8x8xf32>
    %cst_95 = arith.constant 0x7FC00000 : f32
    %146 = vector.broadcast %cst_95 : f32 to vector<8x8xf32>
    %147 = arith.select %145, %146, %141 : vector<8x8xi1>, vector<8x8xf32>
    %c0_96 = arith.constant 0 : index
    %c0_97 = arith.constant 0 : index
    %c0_98 = arith.constant 0 : index
    %148 = vector.load %arg6[%c0_96, %c0_97, %c0_98] : memref<1x8x8xf32, #tpu.memory_space<vmem>>, vector<1x8x8xf32>
    %149 = vector.shape_cast %148 : vector<1x8x8xf32> to vector<8x8xf32>
    %150 = vector.shape_cast %147 : vector<8x8xf32> to vector<1x8x8xf32>
    tpu.vector_store %arg6[%c0_96, %c0_97, %c0_98], %150 {strides = array<i32>} : memref<1x8x8xf32, #tpu.memory_space<vmem>>, vector<1x8x8xf32>,
    %151 = math.absf %49 : vector<16x16xf32>
    %cst_99 = arith.constant 0x7F800000 : f32
    %152 = vector.broadcast %cst_99 : f32 to vector<16x16xf32>
    %153 = arith.cmpf olt, %151, %152 : vector<16x16xf32>
    %cst_100 = arith.constant 0.000000e+00 : f32
    %154 = vector.broadcast %cst_100 : f32 to vector<16x16xf32>
    %155 = arith.select %153, %49, %154 : vector<16x16xi1>, vector<16x16xf32>
    %cst_101 = arith.constant 0.000000e+00 : f32
    %cst_102 = arith.constant 1.000000e+00 : f32
    %156 = vector.broadcast %cst_101 : f32 to vector<16x16xf32>
    %157 = vector.broadcast %cst_102 : f32 to vector<16x16xf32>
    %158 = arith.select %153, %156, %157 : vector<16x16xi1>, vector<16x16xf32>
    %cst_103 = arith.constant dense<0.000000e+00> : vector<8x16xf32>
    %159 = tpu.matmul %130, %155, %cst_103 {dimension_numbers = #tpu.dot_dimension_numbers<[1], [0], [0], [1], [0, 0, 1, 1], [], []>} : vector<8x16xf32>, vector<16x16xf32>, vector<8x16xf32> -> vector<8x16xf32>
    %cst_104 = arith.constant dense<0.000000e+00> : vector<8x8xf32>
    %160 = tpu.matmul %159, %131, %cst_104 {dimension_numbers = #tpu.dot_dimension_numbers<[1], [0], [0], [1], [0, 0, 1, 1], [], []>} : vector<8x16xf32>, vector<16x8xf32>, vector<8x8xf32> -> vector<8x8xf32>
    %cst_105 = arith.constant dense<0.000000e+00> : vector<8x16xf32>
    %161 = tpu.matmul %130, %158, %cst_105 {dimension_numbers = #tpu.dot_dimension_numbers<[1], [0], [0], [1], [0, 0, 1, 1], [], []>} : vector<8x16xf32>, vector<16x16xf32>, vector<8x16xf32> -> vector<8x16xf32>
    %cst_106 = arith.constant dense<0.000000e+00> : vector<8x8xf32>
    %162 = tpu.matmul %161, %131, %cst_106 {dimension_numbers = #tpu.dot_dimension_numbers<[1], [0], [0], [1], [0, 0, 1, 1], [], []>} : vector<8x16xf32>, vector<16x8xf32>, vector<8x8xf32> -> vector<8x8xf32>
    %cst_107 = arith.constant 0.000000e+00 : f32
    %163 = vector.broadcast %cst_107 : f32 to vector<8x8xf32>
    %164 = arith.cmpf ogt, %162, %163 : vector<8x8xf32>
    %cst_108 = arith.constant 0x7FC00000 : f32
    %165 = vector.broadcast %cst_108 : f32 to vector<8x8xf32>
    %166 = arith.select %164, %165, %160 : vector<8x8xi1>, vector<8x8xf32>
    %c0_109 = arith.constant 0 : index
    %c0_110 = arith.constant 0 : index
    %c0_111 = arith.constant 0 : index
    %167 = vector.load %arg7[%c0_109, %c0_110, %c0_111] : memref<1x8x8xf32, #tpu.memory_space<vmem>>, vector<1x8x8xf32>
    %168 = vector.shape_cast %167 : vector<1x8x8xf32> to vector<8x8xf32>
    %169 = vector.shape_cast %166 : vector<8x8xf32> to vector<1x8x8xf32>
    tpu.vector_store %arg7[%c0_109, %c0_110, %c0_111], %169 {strides = array<i32>} : memref<1x8x8xf32, #tpu.memory_space<vmem>>, vector<1x8x8xf32>,
    return
  }
  func.func @transform_0(%arg0: i32) -> (i32, i32, i32) {
    %c0_i32 = arith.constant 0 : i32
    %c0_i32_0 = arith.constant 0 : i32
    %c0_i32_1 = arith.constant 0 : i32
    return %arg0, %c0_i32, %c0_i32_0 : i32, i32, i32
  }
  func.func @transform_1(%arg0: i32) -> (i32, i32, i32) {
    %c0_i32 = arith.constant 0 : i32
    %c0_i32_0 = arith.constant 0 : i32
    %c0_i32_1 = arith.constant 0 : i32
    return %arg0, %c0_i32, %c0_i32_0 : i32, i32, i32
  }
  func.func @transform_2(%arg0: i32) -> (i32, i32) {
    %c0_i32 = arith.constant 0 : i32
    %c0_i32_0 = arith.constant 0 : i32
    %c0_i32_1 = arith.constant 0 : i32
    return %c0_i32, %c0_i32_0 : i32, i32
  }
  func.func @transform_3(%arg0: i32) -> (i32, i32) {
    %c0_i32 = arith.constant 0 : i32
    %c0_i32_0 = arith.constant 0 : i32
    %c0_i32_1 = arith.constant 0 : i32
    return %c0_i32, %c0_i32_0 : i32, i32
  }
  func.func @transform_4(%arg0: i32) -> (i32, i32, i32) {
    %c0_i32 = arith.constant 0 : i32
    %c0_i32_0 = arith.constant 0 : i32
    %c0_i32_1 = arith.constant 0 : i32
    return %arg0, %c0_i32, %c0_i32_0 : i32, i32, i32
  }
  func.func @transform_5(%arg0: i32) -> (i32, i32, i32) {
    %c0_i32 = arith.constant 0 : i32
    %c0_i32_0 = arith.constant 0 : i32
    %c0_i32_1 = arith.constant 0 : i32
    return %arg0, %c0_i32, %c0_i32_0 : i32, i32, i32
  }
  func.func @transform_6(%arg0: i32) -> (i32, i32, i32) {
    %c0_i32 = arith.constant 0 : i32
    %c0_i32_0 = arith.constant 0 : i32
    %c0_i32_1 = arith.constant 0 : i32
    return %arg0, %c0_i32, %c0_i32_0 : i32, i32, i32
  }
}

module attributes {stable_mosaic.version = 11 : i64} {
  func.func @_scale_kernel_with_down(%arg0: i32, %arg1: memref<1x32x32xf32, #tpu.memory_space<vmem>>, %arg2: memref<1x32x32xf32, #tpu.memory_space<vmem>>, %arg3: memref<16x32xf32, #tpu.memory_space<vmem>>, %arg4: memref<32x16xf32, #tpu.memory_space<vmem>>, %arg5: memref<1x1x2xf32, #tpu.memory_space<vmem>>, %arg6: memref<1x16x16xf32, #tpu.memory_space<vmem>>, %arg7: memref<1x16x16xf32, #tpu.memory_space<vmem>>, %arg8: memref<2x34x34xf32, #tpu.memory_space<vmem>>) attributes {dimension_semantics = [#tpu.dimension_semantics<parallel>], iteration_bounds = array<i64: 2>, scalar_prefetch = 0 : i64, scratch_operands = 1 : i64, tpu.core_type = #tpu.core_type<tc>, window_params = [{transform_indices = @transform_0, window_bounds = array<i64: 1, 32, 32>}, {transform_indices = @transform_1, window_bounds = array<i64: 1, 32, 32>}, {pipeline_mode = #tpu.pipeline_mode<synchronous>, transform_indices = @transform_2, window_bounds = array<i64: 16, 32>}, {pipeline_mode = #tpu.pipeline_mode<synchronous>, transform_indices = @transform_3, window_bounds = array<i64: 32, 16>}, {transform_indices = @transform_4, window_bounds = array<i64: 1, 1, 2>}, {transform_indices = @transform_5, window_bounds = array<i64: 1, 16, 16>}, {transform_indices = @transform_6, window_bounds = array<i64: 1, 16, 16>}]} {
    %c0 = arith.constant 0 : index
    %c0_0 = arith.constant 0 : index
    %c0_1 = arith.constant 0 : index
    %0 = vector.load %arg1[%c0, %c0_0, %c0_1] : memref<1x32x32xf32, #tpu.memory_space<vmem>>, vector<1x32x32xf32>
    %1 = vector.shape_cast %0 : vector<1x32x32xf32> to vector<32x32xf32>
    %c0_2 = arith.constant 0 : index
    %c1 = arith.constant 1 : index
    %c1_3 = arith.constant 1 : index
    %2 = vector.load %arg8[%c0_2, %c1, %c1_3] : memref<2x34x34xf32, #tpu.memory_space<vmem>>, vector<1x32x32xf32>
    %3 = vector.shape_cast %2 : vector<1x32x32xf32> to vector<32x32xf32>
    %4 = vector.shape_cast %1 : vector<32x32xf32> to vector<1x32x32xf32>
    tpu.vector_store %arg8[%c0_2, %c1, %c1_3], %4 {strides = array<i32>} : memref<2x34x34xf32, #tpu.memory_space<vmem>>, vector<1x32x32xf32>,
    %5 = vector.extract_strided_slice %1 {offsets = [0, 0], sizes = [1, 32], strides = [1, 1]} : vector<32x32xf32> to vector<1x32xf32>
    %c0_4 = arith.constant 0 : index
    %c0_5 = arith.constant 0 : index
    %c1_6 = arith.constant 1 : index
    %6 = vector.load %arg8[%c0_4, %c0_5, %c1_6] : memref<2x34x34xf32, #tpu.memory_space<vmem>>, vector<1x1x32xf32>
    %7 = vector.shape_cast %6 : vector<1x1x32xf32> to vector<1x32xf32>
    %8 = vector.shape_cast %5 : vector<1x32xf32> to vector<1x1x32xf32>
    tpu.vector_store %arg8[%c0_4, %c0_5, %c1_6], %8 {strides = array<i32>} : memref<2x34x34xf32, #tpu.memory_space<vmem>>, vector<1x1x32xf32>,
    %9 = vector.extract_strided_slice %1 {offsets = [31, 0], sizes = [1, 32], strides = [1, 1]} : vector<32x32xf32> to vector<1x32xf32>
    %c0_7 = arith.constant 0 : index
    %c33 = arith.constant 33 : index
    %c1_8 = arith.constant 1 : index
    %10 = vector.load %arg8[%c0_7, %c33, %c1_8] : memref<2x34x34xf32, #tpu.memory_space<vmem>>, vector<1x1x32xf32>
    %11 = vector.shape_cast %10 : vector<1x1x32xf32> to vector<1x32xf32>
    %12 = vector.shape_cast %9 : vector<1x32xf32> to vector<1x1x32xf32>
    tpu.vector_store %arg8[%c0_7, %c33, %c1_8], %12 {strides = array<i32>} : memref<2x34x34xf32, #tpu.memory_space<vmem>>, vector<1x1x32xf32>,
    %c0_9 = arith.constant 0 : index
    %c0_10 = arith.constant 0 : index
    %c1_11 = arith.constant 1 : index
    %13 = vector.load %arg8[%c0_9, %c0_10, %c1_11] : memref<2x34x34xf32, #tpu.memory_space<vmem>>, vector<1x34x1xf32>
    %14 = vector.shape_cast %13 : vector<1x34x1xf32> to vector<34x1xf32>
    %c0_12 = arith.constant 0 : index
    %c0_13 = arith.constant 0 : index
    %c0_14 = arith.constant 0 : index
    %15 = vector.load %arg8[%c0_12, %c0_13, %c0_14] : memref<2x34x34xf32, #tpu.memory_space<vmem>>, vector<1x34x1xf32>
    %16 = vector.shape_cast %15 : vector<1x34x1xf32> to vector<34x1xf32>
    %17 = vector.shape_cast %14 : vector<34x1xf32> to vector<1x34x1xf32>
    tpu.vector_store %arg8[%c0_12, %c0_13, %c0_14], %17 {strides = array<i32>} : memref<2x34x34xf32, #tpu.memory_space<vmem>>, vector<1x34x1xf32>,
    %c0_15 = arith.constant 0 : index
    %c0_16 = arith.constant 0 : index
    %c32 = arith.constant 32 : index
    %18 = vector.load %arg8[%c0_15, %c0_16, %c32] : memref<2x34x34xf32, #tpu.memory_space<vmem>>, vector<1x34x1xf32>
    %19 = vector.shape_cast %18 : vector<1x34x1xf32> to vector<34x1xf32>
    %c0_17 = arith.constant 0 : index
    %c0_18 = arith.constant 0 : index
    %c33_19 = arith.constant 33 : index
    %20 = vector.load %arg8[%c0_17, %c0_18, %c33_19] : memref<2x34x34xf32, #tpu.memory_space<vmem>>, vector<1x34x1xf32>
    %21 = vector.shape_cast %20 : vector<1x34x1xf32> to vector<34x1xf32>
    %22 = vector.shape_cast %19 : vector<34x1xf32> to vector<1x34x1xf32>
    tpu.vector_store %arg8[%c0_17, %c0_18, %c33_19], %22 {strides = array<i32>} : memref<2x34x34xf32, #tpu.memory_space<vmem>>, vector<1x34x1xf32>,
    %c0_20 = arith.constant 0 : index
    %c0_21 = arith.constant 0 : index
    %c0_22 = arith.constant 0 : index
    %23 = vector.load %arg8[%c0_20, %c0_21, %c0_22] : memref<2x34x34xf32, #tpu.memory_space<vmem>>, vector<1x32x34xf32>
    %24 = vector.shape_cast %23 : vector<1x32x34xf32> to vector<32x34xf32>
    %c0_23 = arith.constant 0 : index
    %c1_24 = arith.constant 1 : index
    %c0_25 = arith.constant 0 : index
    %25 = vector.load %arg8[%c0_23, %c1_24, %c0_25] : memref<2x34x34xf32, #tpu.memory_space<vmem>>, vector<1x32x34xf32>
    %26 = vector.shape_cast %25 : vector<1x32x34xf32> to vector<32x34xf32>
    %c0_26 = arith.constant 0 : index
    %c2 = arith.constant 2 : index
    %c0_27 = arith.constant 0 : index
    %27 = vector.load %arg8[%c0_26, %c2, %c0_27] : memref<2x34x34xf32, #tpu.memory_space<vmem>>, vector<1x32x34xf32>
    %28 = vector.shape_cast %27 : vector<1x32x34xf32> to vector<32x34xf32>
    %cst = arith.constant 2.000000e+00 : f32
    %29 = vector.broadcast %cst : f32 to vector<32x34xf32>
    %30 = arith.mulf %29, %26 : vector<32x34xf32>
    %31 = arith.addf %24, %30 : vector<32x34xf32>
    %32 = arith.addf %31, %28 : vector<32x34xf32>
    %33 = arith.subf %28, %24 : vector<32x34xf32>
    %34 = vector.extract_strided_slice %32 {offsets = [0, 2], sizes = [32, 32], strides = [1, 1]} : vector<32x34xf32> to vector<32x32xf32>
    %35 = vector.extract_strided_slice %32 {offsets = [0, 0], sizes = [32, 32], strides = [1, 1]} : vector<32x34xf32> to vector<32x32xf32>
    %36 = arith.subf %34, %35 : vector<32x32xf32>
    %cst_28 = arith.constant 1.250000e-01 : f32
    %37 = vector.broadcast %cst_28 : f32 to vector<32x32xf32>
    %38 = arith.mulf %36, %37 : vector<32x32xf32>
    %39 = vector.extract_strided_slice %33 {offsets = [0, 0], sizes = [32, 32], strides = [1, 1]} : vector<32x34xf32> to vector<32x32xf32>
    %40 = vector.extract_strided_slice %33 {offsets = [0, 1], sizes = [32, 32], strides = [1, 1]} : vector<32x34xf32> to vector<32x32xf32>
    %cst_29 = arith.constant 2.000000e+00 : f32
    %41 = vector.broadcast %cst_29 : f32 to vector<32x32xf32>
    %42 = arith.mulf %41, %40 : vector<32x32xf32>
    %43 = arith.addf %39, %42 : vector<32x32xf32>
    %44 = vector.extract_strided_slice %33 {offsets = [0, 2], sizes = [32, 32], strides = [1, 1]} : vector<32x34xf32> to vector<32x32xf32>
    %45 = arith.addf %43, %44 : vector<32x32xf32>
    %cst_30 = arith.constant 1.250000e-01 : f32
    %46 = vector.broadcast %cst_30 : f32 to vector<32x32xf32>
    %47 = arith.mulf %45, %46 : vector<32x32xf32>
    %c0_31 = arith.constant 0 : index
    %c0_32 = arith.constant 0 : index
    %c0_33 = arith.constant 0 : index
    %48 = vector.load %arg2[%c0_31, %c0_32, %c0_33] : memref<1x32x32xf32, #tpu.memory_space<vmem>>, vector<1x32x32xf32>
    %49 = vector.shape_cast %48 : vector<1x32x32xf32> to vector<32x32xf32>
    %c1_34 = arith.constant 1 : index
    %c1_35 = arith.constant 1 : index
    %c1_36 = arith.constant 1 : index
    %50 = vector.load %arg8[%c1_34, %c1_35, %c1_36] : memref<2x34x34xf32, #tpu.memory_space<vmem>>, vector<1x32x32xf32>
    %51 = vector.shape_cast %50 : vector<1x32x32xf32> to vector<32x32xf32>
    %52 = vector.shape_cast %49 : vector<32x32xf32> to vector<1x32x32xf32>
    tpu.vector_store %arg8[%c1_34, %c1_35, %c1_36], %52 {strides = array<i32>} : memref<2x34x34xf32, #tpu.memory_space<vmem>>, vector<1x32x32xf32>,
    %53 = vector.extract_strided_slice %49 {offsets = [0, 0], sizes = [1, 32], strides = [1, 1]} : vector<32x32xf32> to vector<1x32xf32>
    %c1_37 = arith.constant 1 : index
    %c0_38 = arith.constant 0 : index
    %c1_39 = arith.constant 1 : index
    %54 = vector.load %arg8[%c1_37, %c0_38, %c1_39] : memref<2x34x34xf32, #tpu.memory_space<vmem>>, vector<1x1x32xf32>
    %55 = vector.shape_cast %54 : vector<1x1x32xf32> to vector<1x32xf32>
    %56 = vector.shape_cast %53 : vector<1x32xf32> to vector<1x1x32xf32>
    tpu.vector_store %arg8[%c1_37, %c0_38, %c1_39], %56 {strides = array<i32>} : memref<2x34x34xf32, #tpu.memory_space<vmem>>, vector<1x1x32xf32>,
    %57 = vector.extract_strided_slice %49 {offsets = [31, 0], sizes = [1, 32], strides = [1, 1]} : vector<32x32xf32> to vector<1x32xf32>
    %c1_40 = arith.constant 1 : index
    %c33_41 = arith.constant 33 : index
    %c1_42 = arith.constant 1 : index
    %58 = vector.load %arg8[%c1_40, %c33_41, %c1_42] : memref<2x34x34xf32, #tpu.memory_space<vmem>>, vector<1x1x32xf32>
    %59 = vector.shape_cast %58 : vector<1x1x32xf32> to vector<1x32xf32>
    %60 = vector.shape_cast %57 : vector<1x32xf32> to vector<1x1x32xf32>
    tpu.vector_store %arg8[%c1_40, %c33_41, %c1_42], %60 {strides = array<i32>} : memref<2x34x34xf32, #tpu.memory_space<vmem>>, vector<1x1x32xf32>,
    %c1_43 = arith.constant 1 : index
    %c0_44 = arith.constant 0 : index
    %c1_45 = arith.constant 1 : index
    %61 = vector.load %arg8[%c1_43, %c0_44, %c1_45] : memref<2x34x34xf32, #tpu.memory_space<vmem>>, vector<1x34x1xf32>
    %62 = vector.shape_cast %61 : vector<1x34x1xf32> to vector<34x1xf32>
    %c1_46 = arith.constant 1 : index
    %c0_47 = arith.constant 0 : index
    %c0_48 = arith.constant 0 : index
    %63 = vector.load %arg8[%c1_46, %c0_47, %c0_48] : memref<2x34x34xf32, #tpu.memory_space<vmem>>, vector<1x34x1xf32>
    %64 = vector.shape_cast %63 : vector<1x34x1xf32> to vector<34x1xf32>
    %65 = vector.shape_cast %62 : vector<34x1xf32> to vector<1x34x1xf32>
    tpu.vector_store %arg8[%c1_46, %c0_47, %c0_48], %65 {strides = array<i32>} : memref<2x34x34xf32, #tpu.memory_space<vmem>>, vector<1x34x1xf32>,
    %c1_49 = arith.constant 1 : index
    %c0_50 = arith.constant 0 : index
    %c32_51 = arith.constant 32 : index
    %66 = vector.load %arg8[%c1_49, %c0_50, %c32_51] : memref<2x34x34xf32, #tpu.memory_space<vmem>>, vector<1x34x1xf32>
    %67 = vector.shape_cast %66 : vector<1x34x1xf32> to vector<34x1xf32>
    %c1_52 = arith.constant 1 : index
    %c0_53 = arith.constant 0 : index
    %c33_54 = arith.constant 33 : index
    %68 = vector.load %arg8[%c1_52, %c0_53, %c33_54] : memref<2x34x34xf32, #tpu.memory_space<vmem>>, vector<1x34x1xf32>
    %69 = vector.shape_cast %68 : vector<1x34x1xf32> to vector<34x1xf32>
    %70 = vector.shape_cast %67 : vector<34x1xf32> to vector<1x34x1xf32>
    tpu.vector_store %arg8[%c1_52, %c0_53, %c33_54], %70 {strides = array<i32>} : memref<2x34x34xf32, #tpu.memory_space<vmem>>, vector<1x34x1xf32>,
    %c1_55 = arith.constant 1 : index
    %c0_56 = arith.constant 0 : index
    %c0_57 = arith.constant 0 : index
    %71 = vector.load %arg8[%c1_55, %c0_56, %c0_57] : memref<2x34x34xf32, #tpu.memory_space<vmem>>, vector<1x32x34xf32>
    %72 = vector.shape_cast %71 : vector<1x32x34xf32> to vector<32x34xf32>
    %c1_58 = arith.constant 1 : index
    %c1_59 = arith.constant 1 : index
    %c0_60 = arith.constant 0 : index
    %73 = vector.load %arg8[%c1_58, %c1_59, %c0_60] : memref<2x34x34xf32, #tpu.memory_space<vmem>>, vector<1x32x34xf32>
    %74 = vector.shape_cast %73 : vector<1x32x34xf32> to vector<32x34xf32>
    %c1_61 = arith.constant 1 : index
    %c2_62 = arith.constant 2 : index
    %c0_63 = arith.constant 0 : index
    %75 = vector.load %arg8[%c1_61, %c2_62, %c0_63] : memref<2x34x34xf32, #tpu.memory_space<vmem>>, vector<1x32x34xf32>
    %76 = vector.shape_cast %75 : vector<1x32x34xf32> to vector<32x34xf32>
    %cst_64 = arith.constant 2.000000e+00 : f32
    %77 = vector.broadcast %cst_64 : f32 to vector<32x34xf32>
    %78 = arith.mulf %77, %74 : vector<32x34xf32>
    %79 = arith.addf %72, %78 : vector<32x34xf32>
    %80 = arith.addf %79, %76 : vector<32x34xf32>
    %81 = arith.subf %76, %72 : vector<32x34xf32>
    %82 = vector.extract_strided_slice %80 {offsets = [0, 2], sizes = [32, 32], strides = [1, 1]} : vector<32x34xf32> to vector<32x32xf32>
    %83 = vector.extract_strided_slice %80 {offsets = [0, 0], sizes = [32, 32], strides = [1, 1]} : vector<32x34xf32> to vector<32x32xf32>
    %84 = arith.subf %82, %83 : vector<32x32xf32>
    %cst_65 = arith.constant 1.250000e-01 : f32
    %85 = vector.broadcast %cst_65 : f32 to vector<32x32xf32>
    %86 = arith.mulf %84, %85 : vector<32x32xf32>
    %87 = vector.extract_strided_slice %81 {offsets = [0, 0], sizes = [32, 32], strides = [1, 1]} : vector<32x34xf32> to vector<32x32xf32>
    %88 = vector.extract_strided_slice %81 {offsets = [0, 1], sizes = [32, 32], strides = [1, 1]} : vector<32x34xf32> to vector<32x32xf32>
    %cst_66 = arith.constant 2.000000e+00 : f32
    %89 = vector.broadcast %cst_66 : f32 to vector<32x32xf32>
    %90 = arith.mulf %89, %88 : vector<32x32xf32>
    %91 = arith.addf %87, %90 : vector<32x32xf32>
    %92 = vector.extract_strided_slice %81 {offsets = [0, 2], sizes = [32, 32], strides = [1, 1]} : vector<32x34xf32> to vector<32x32xf32>
    %93 = arith.addf %91, %92 : vector<32x32xf32>
    %cst_67 = arith.constant 1.250000e-01 : f32
    %94 = vector.broadcast %cst_67 : f32 to vector<32x32xf32>
    %95 = arith.mulf %93, %94 : vector<32x32xf32>
    %96 = math.absf %38 : vector<32x32xf32>
    %cst_68 = arith.constant 0x7F800000 : f32
    %97 = vector.broadcast %cst_68 : f32 to vector<32x32xf32>
    %98 = arith.cmpf olt, %96, %97 : vector<32x32xf32>
    %99 = math.absf %47 : vector<32x32xf32>
    %cst_69 = arith.constant 0x7F800000 : f32
    %100 = vector.broadcast %cst_69 : f32 to vector<32x32xf32>
    %101 = arith.cmpf olt, %99, %100 : vector<32x32xf32>
    %102 = arith.subf %86, %38 : vector<32x32xf32>
    %103 = math.absf %102 : vector<32x32xf32>
    %cst_70 = arith.constant 0.000000e+00 : f32
    %104 = vector.broadcast %cst_70 : f32 to vector<32x32xf32>
    %105 = arith.select %98, %103, %104 : vector<32x32xi1>, vector<32x32xf32>
    %106 = arith.subf %95, %47 : vector<32x32xf32>
    %107 = math.absf %106 : vector<32x32xf32>
    %cst_71 = arith.constant 0.000000e+00 : f32
    %108 = vector.broadcast %cst_71 : f32 to vector<32x32xf32>
    %109 = arith.select %101, %107, %108 : vector<32x32xi1>, vector<32x32xf32>
    %110 = arith.addf %105, %109 : vector<32x32xf32>
    %111 = arith.extui %98 : vector<32x32xi1> to vector<32x32xi32>
    %112 = arith.sitofp %111 : vector<32x32xi32> to vector<32x32xf32>
    %113 = arith.extui %101 : vector<32x32xi1> to vector<32x32xi32>
    %114 = arith.sitofp %113 : vector<32x32xi32> to vector<32x32xf32>
    %115 = arith.addf %112, %114 : vector<32x32xf32>
    %cst_72 = arith.constant dense<0.000000e+00> : vector<32xf32>
    %116 = vector.multi_reduction <add>, %110, %cst_72 [1] : vector<32x32xf32> to vector<32xf32>
    %117 = vector.shape_cast %116 : vector<32xf32> to vector<32x1xf32>
    %cst_73 = arith.constant dense<0.000000e+00> : vector<1xf32>
    %118 = vector.multi_reduction <add>, %117, %cst_73 [0] : vector<32x1xf32> to vector<1xf32>
    %119 = vector.shape_cast %118 : vector<1xf32> to vector<1x1xf32>
    %cst_74 = arith.constant dense<0.000000e+00> : vector<32xf32>
    %120 = vector.multi_reduction <add>, %115, %cst_74 [1] : vector<32x32xf32> to vector<32xf32>
    %121 = vector.shape_cast %120 : vector<32xf32> to vector<32x1xf32>
    %cst_75 = arith.constant dense<0.000000e+00> : vector<1xf32>
    %122 = vector.multi_reduction <add>, %121, %cst_75 [0] : vector<32x1xf32> to vector<1xf32>
    %123 = vector.shape_cast %122 : vector<1xf32> to vector<1x1xf32>
    %c0_76 = arith.constant 0 : index
    %c0_77 = arith.constant 0 : index
    %c0_78 = arith.constant 0 : index
    %124 = vector.load %arg5[%c0_76, %c0_77, %c0_78] : memref<1x1x2xf32, #tpu.memory_space<vmem>>, vector<1x1x1xf32>
    %125 = vector.shape_cast %124 : vector<1x1x1xf32> to vector<1x1xf32>
    %126 = vector.shape_cast %119 : vector<1x1xf32> to vector<1x1x1xf32>
    tpu.vector_store %arg5[%c0_76, %c0_77, %c0_78], %126 {strides = array<i32>} : memref<1x1x2xf32, #tpu.memory_space<vmem>>, vector<1x1x1xf32>,
    %c0_79 = arith.constant 0 : index
    %c0_80 = arith.constant 0 : index
    %c1_81 = arith.constant 1 : index
    %127 = vector.load %arg5[%c0_79, %c0_80, %c1_81] : memref<1x1x2xf32, #tpu.memory_space<vmem>>, vector<1x1x1xf32>
    %128 = vector.shape_cast %127 : vector<1x1x1xf32> to vector<1x1xf32>
    %129 = vector.shape_cast %123 : vector<1x1xf32> to vector<1x1x1xf32>
    tpu.vector_store %arg5[%c0_79, %c0_80, %c1_81], %129 {strides = array<i32>} : memref<1x1x2xf32, #tpu.memory_space<vmem>>, vector<1x1x1xf32>,
    %c0_82 = arith.constant 0 : index
    %c0_83 = arith.constant 0 : index
    %130 = vector.load %arg3[%c0_82, %c0_83] : memref<16x32xf32, #tpu.memory_space<vmem>>, vector<16x32xf32>
    %c0_84 = arith.constant 0 : index
    %c0_85 = arith.constant 0 : index
    %131 = vector.load %arg4[%c0_84, %c0_85] : memref<32x16xf32, #tpu.memory_space<vmem>>, vector<32x16xf32>
    %132 = math.absf %1 : vector<32x32xf32>
    %cst_86 = arith.constant 0x7F800000 : f32
    %133 = vector.broadcast %cst_86 : f32 to vector<32x32xf32>
    %134 = arith.cmpf olt, %132, %133 : vector<32x32xf32>
    %cst_87 = arith.constant 0.000000e+00 : f32
    %135 = vector.broadcast %cst_87 : f32 to vector<32x32xf32>
    %136 = arith.select %134, %1, %135 : vector<32x32xi1>, vector<32x32xf32>
    %cst_88 = arith.constant 0.000000e+00 : f32
    %cst_89 = arith.constant 1.000000e+00 : f32
    %137 = vector.broadcast %cst_88 : f32 to vector<32x32xf32>
    %138 = vector.broadcast %cst_89 : f32 to vector<32x32xf32>
    %139 = arith.select %134, %137, %138 : vector<32x32xi1>, vector<32x32xf32>
    %cst_90 = arith.constant dense<0.000000e+00> : vector<16x32xf32>
    %140 = tpu.matmul %130, %136, %cst_90 {dimension_numbers = #tpu.dot_dimension_numbers<[1], [0], [0], [1], [0, 0, 1, 1], [], []>} : vector<16x32xf32>, vector<32x32xf32>, vector<16x32xf32> -> vector<16x32xf32>
    %cst_91 = arith.constant dense<0.000000e+00> : vector<16x16xf32>
    %141 = tpu.matmul %140, %131, %cst_91 {dimension_numbers = #tpu.dot_dimension_numbers<[1], [0], [0], [1], [0, 0, 1, 1], [], []>} : vector<16x32xf32>, vector<32x16xf32>, vector<16x16xf32> -> vector<16x16xf32>
    %cst_92 = arith.constant dense<0.000000e+00> : vector<16x32xf32>
    %142 = tpu.matmul %130, %139, %cst_92 {dimension_numbers = #tpu.dot_dimension_numbers<[1], [0], [0], [1], [0, 0, 1, 1], [], []>} : vector<16x32xf32>, vector<32x32xf32>, vector<16x32xf32> -> vector<16x32xf32>
    %cst_93 = arith.constant dense<0.000000e+00> : vector<16x16xf32>
    %143 = tpu.matmul %142, %131, %cst_93 {dimension_numbers = #tpu.dot_dimension_numbers<[1], [0], [0], [1], [0, 0, 1, 1], [], []>} : vector<16x32xf32>, vector<32x16xf32>, vector<16x16xf32> -> vector<16x16xf32>
    %cst_94 = arith.constant 0.000000e+00 : f32
    %144 = vector.broadcast %cst_94 : f32 to vector<16x16xf32>
    %145 = arith.cmpf ogt, %143, %144 : vector<16x16xf32>
    %cst_95 = arith.constant 0x7FC00000 : f32
    %146 = vector.broadcast %cst_95 : f32 to vector<16x16xf32>
    %147 = arith.select %145, %146, %141 : vector<16x16xi1>, vector<16x16xf32>
    %c0_96 = arith.constant 0 : index
    %c0_97 = arith.constant 0 : index
    %c0_98 = arith.constant 0 : index
    %148 = vector.load %arg6[%c0_96, %c0_97, %c0_98] : memref<1x16x16xf32, #tpu.memory_space<vmem>>, vector<1x16x16xf32>
    %149 = vector.shape_cast %148 : vector<1x16x16xf32> to vector<16x16xf32>
    %150 = vector.shape_cast %147 : vector<16x16xf32> to vector<1x16x16xf32>
    tpu.vector_store %arg6[%c0_96, %c0_97, %c0_98], %150 {strides = array<i32>} : memref<1x16x16xf32, #tpu.memory_space<vmem>>, vector<1x16x16xf32>,
    %151 = math.absf %49 : vector<32x32xf32>
    %cst_99 = arith.constant 0x7F800000 : f32
    %152 = vector.broadcast %cst_99 : f32 to vector<32x32xf32>
    %153 = arith.cmpf olt, %151, %152 : vector<32x32xf32>
    %cst_100 = arith.constant 0.000000e+00 : f32
    %154 = vector.broadcast %cst_100 : f32 to vector<32x32xf32>
    %155 = arith.select %153, %49, %154 : vector<32x32xi1>, vector<32x32xf32>
    %cst_101 = arith.constant 0.000000e+00 : f32
    %cst_102 = arith.constant 1.000000e+00 : f32
    %156 = vector.broadcast %cst_101 : f32 to vector<32x32xf32>
    %157 = vector.broadcast %cst_102 : f32 to vector<32x32xf32>
    %158 = arith.select %153, %156, %157 : vector<32x32xi1>, vector<32x32xf32>
    %cst_103 = arith.constant dense<0.000000e+00> : vector<16x32xf32>
    %159 = tpu.matmul %130, %155, %cst_103 {dimension_numbers = #tpu.dot_dimension_numbers<[1], [0], [0], [1], [0, 0, 1, 1], [], []>} : vector<16x32xf32>, vector<32x32xf32>, vector<16x32xf32> -> vector<16x32xf32>
    %cst_104 = arith.constant dense<0.000000e+00> : vector<16x16xf32>
    %160 = tpu.matmul %159, %131, %cst_104 {dimension_numbers = #tpu.dot_dimension_numbers<[1], [0], [0], [1], [0, 0, 1, 1], [], []>} : vector<16x32xf32>, vector<32x16xf32>, vector<16x16xf32> -> vector<16x16xf32>
    %cst_105 = arith.constant dense<0.000000e+00> : vector<16x32xf32>
    %161 = tpu.matmul %130, %158, %cst_105 {dimension_numbers = #tpu.dot_dimension_numbers<[1], [0], [0], [1], [0, 0, 1, 1], [], []>} : vector<16x32xf32>, vector<32x32xf32>, vector<16x32xf32> -> vector<16x32xf32>
    %cst_106 = arith.constant dense<0.000000e+00> : vector<16x16xf32>
    %162 = tpu.matmul %161, %131, %cst_106 {dimension_numbers = #tpu.dot_dimension_numbers<[1], [0], [0], [1], [0, 0, 1, 1], [], []>} : vector<16x32xf32>, vector<32x16xf32>, vector<16x16xf32> -> vector<16x16xf32>
    %cst_107 = arith.constant 0.000000e+00 : f32
    %163 = vector.broadcast %cst_107 : f32 to vector<16x16xf32>
    %164 = arith.cmpf ogt, %162, %163 : vector<16x16xf32>
    %cst_108 = arith.constant 0x7FC00000 : f32
    %165 = vector.broadcast %cst_108 : f32 to vector<16x16xf32>
    %166 = arith.select %164, %165, %160 : vector<16x16xi1>, vector<16x16xf32>
    %c0_109 = arith.constant 0 : index
    %c0_110 = arith.constant 0 : index
    %c0_111 = arith.constant 0 : index
    %167 = vector.load %arg7[%c0_109, %c0_110, %c0_111] : memref<1x16x16xf32, #tpu.memory_space<vmem>>, vector<1x16x16xf32>
    %168 = vector.shape_cast %167 : vector<1x16x16xf32> to vector<16x16xf32>
    %169 = vector.shape_cast %166 : vector<16x16xf32> to vector<1x16x16xf32>
    tpu.vector_store %arg7[%c0_109, %c0_110, %c0_111], %169 {strides = array<i32>} : memref<1x16x16xf32, #tpu.memory_space<vmem>>, vector<1x16x16xf32>,
    return
  }
  func.func @transform_0(%arg0: i32) -> (i32, i32, i32) {
    %c0_i32 = arith.constant 0 : i32
    %c0_i32_0 = arith.constant 0 : i32
    %c0_i32_1 = arith.constant 0 : i32
    return %arg0, %c0_i32, %c0_i32_0 : i32, i32, i32
  }
  func.func @transform_1(%arg0: i32) -> (i32, i32, i32) {
    %c0_i32 = arith.constant 0 : i32
    %c0_i32_0 = arith.constant 0 : i32
    %c0_i32_1 = arith.constant 0 : i32
    return %arg0, %c0_i32, %c0_i32_0 : i32, i32, i32
  }
  func.func @transform_2(%arg0: i32) -> (i32, i32) {
    %c0_i32 = arith.constant 0 : i32
    %c0_i32_0 = arith.constant 0 : i32
    %c0_i32_1 = arith.constant 0 : i32
    return %c0_i32, %c0_i32_0 : i32, i32
  }
  func.func @transform_3(%arg0: i32) -> (i32, i32) {
    %c0_i32 = arith.constant 0 : i32
    %c0_i32_0 = arith.constant 0 : i32
    %c0_i32_1 = arith.constant 0 : i32
    return %c0_i32, %c0_i32_0 : i32, i32
  }
  func.func @transform_4(%arg0: i32) -> (i32, i32, i32) {
    %c0_i32 = arith.constant 0 : i32
    %c0_i32_0 = arith.constant 0 : i32
    %c0_i32_1 = arith.constant 0 : i32
    return %arg0, %c0_i32, %c0_i32_0 : i32, i32, i32
  }
  func.func @transform_5(%arg0: i32) -> (i32, i32, i32) {
    %c0_i32 = arith.constant 0 : i32
    %c0_i32_0 = arith.constant 0 : i32
    %c0_i32_1 = arith.constant 0 : i32
    return %arg0, %c0_i32, %c0_i32_0 : i32, i32, i32
  }
  func.func @transform_6(%arg0: i32) -> (i32, i32, i32) {
    %c0_i32 = arith.constant 0 : i32
    %c0_i32_0 = arith.constant 0 : i32
    %c0_i32_1 = arith.constant 0 : i32
    return %arg0, %c0_i32, %c0_i32_0 : i32, i32, i32
  }
}

module attributes {stable_mosaic.version = 11 : i64} {
  func.func @_scale_kernel_with_down(%arg0: i32, %arg1: memref<1x8x8xf32, #tpu.memory_space<vmem>>, %arg2: memref<1x8x8xf32, #tpu.memory_space<vmem>>, %arg3: memref<4x8xf32, #tpu.memory_space<vmem>>, %arg4: memref<8x4xf32, #tpu.memory_space<vmem>>, %arg5: memref<1x1x2xf32, #tpu.memory_space<vmem>>, %arg6: memref<1x4x4xf32, #tpu.memory_space<vmem>>, %arg7: memref<1x4x4xf32, #tpu.memory_space<vmem>>, %arg8: memref<2x10x10xf32, #tpu.memory_space<vmem>>) attributes {dimension_semantics = [#tpu.dimension_semantics<parallel>], iteration_bounds = array<i64: 2>, scalar_prefetch = 0 : i64, scratch_operands = 1 : i64, tpu.core_type = #tpu.core_type<tc>, window_params = [{transform_indices = @transform_0, window_bounds = array<i64: 1, 8, 8>}, {transform_indices = @transform_1, window_bounds = array<i64: 1, 8, 8>}, {pipeline_mode = #tpu.pipeline_mode<synchronous>, transform_indices = @transform_2, window_bounds = array<i64: 4, 8>}, {pipeline_mode = #tpu.pipeline_mode<synchronous>, transform_indices = @transform_3, window_bounds = array<i64: 8, 4>}, {transform_indices = @transform_4, window_bounds = array<i64: 1, 1, 2>}, {transform_indices = @transform_5, window_bounds = array<i64: 1, 4, 4>}, {transform_indices = @transform_6, window_bounds = array<i64: 1, 4, 4>}]} {
    %c0 = arith.constant 0 : index
    %c0_0 = arith.constant 0 : index
    %c0_1 = arith.constant 0 : index
    %0 = vector.load %arg1[%c0, %c0_0, %c0_1] : memref<1x8x8xf32, #tpu.memory_space<vmem>>, vector<1x8x8xf32>
    %1 = vector.shape_cast %0 : vector<1x8x8xf32> to vector<8x8xf32>
    %c0_2 = arith.constant 0 : index
    %c1 = arith.constant 1 : index
    %c1_3 = arith.constant 1 : index
    %2 = vector.load %arg8[%c0_2, %c1, %c1_3] : memref<2x10x10xf32, #tpu.memory_space<vmem>>, vector<1x8x8xf32>
    %3 = vector.shape_cast %2 : vector<1x8x8xf32> to vector<8x8xf32>
    %4 = vector.shape_cast %1 : vector<8x8xf32> to vector<1x8x8xf32>
    tpu.vector_store %arg8[%c0_2, %c1, %c1_3], %4 {strides = array<i32>} : memref<2x10x10xf32, #tpu.memory_space<vmem>>, vector<1x8x8xf32>,
    %5 = vector.extract_strided_slice %1 {offsets = [0, 0], sizes = [1, 8], strides = [1, 1]} : vector<8x8xf32> to vector<1x8xf32>
    %c0_4 = arith.constant 0 : index
    %c0_5 = arith.constant 0 : index
    %c1_6 = arith.constant 1 : index
    %6 = vector.load %arg8[%c0_4, %c0_5, %c1_6] : memref<2x10x10xf32, #tpu.memory_space<vmem>>, vector<1x1x8xf32>
    %7 = vector.shape_cast %6 : vector<1x1x8xf32> to vector<1x8xf32>
    %8 = vector.shape_cast %5 : vector<1x8xf32> to vector<1x1x8xf32>
    tpu.vector_store %arg8[%c0_4, %c0_5, %c1_6], %8 {strides = array<i32>} : memref<2x10x10xf32, #tpu.memory_space<vmem>>, vector<1x1x8xf32>,
    %9 = vector.extract_strided_slice %1 {offsets = [7, 0], sizes = [1, 8], strides = [1, 1]} : vector<8x8xf32> to vector<1x8xf32>
    %c0_7 = arith.constant 0 : index
    %c9 = arith.constant 9 : index
    %c1_8 = arith.constant 1 : index
    %10 = vector.load %arg8[%c0_7, %c9, %c1_8] : memref<2x10x10xf32, #tpu.memory_space<vmem>>, vector<1x1x8xf32>
    %11 = vector.shape_cast %10 : vector<1x1x8xf32> to vector<1x8xf32>
    %12 = vector.shape_cast %9 : vector<1x8xf32> to vector<1x1x8xf32>
    tpu.vector_store %arg8[%c0_7, %c9, %c1_8], %12 {strides = array<i32>} : memref<2x10x10xf32, #tpu.memory_space<vmem>>, vector<1x1x8xf32>,
    %c0_9 = arith.constant 0 : index
    %c0_10 = arith.constant 0 : index
    %c1_11 = arith.constant 1 : index
    %13 = vector.load %arg8[%c0_9, %c0_10, %c1_11] : memref<2x10x10xf32, #tpu.memory_space<vmem>>, vector<1x10x1xf32>
    %14 = vector.shape_cast %13 : vector<1x10x1xf32> to vector<10x1xf32>
    %c0_12 = arith.constant 0 : index
    %c0_13 = arith.constant 0 : index
    %c0_14 = arith.constant 0 : index
    %15 = vector.load %arg8[%c0_12, %c0_13, %c0_14] : memref<2x10x10xf32, #tpu.memory_space<vmem>>, vector<1x10x1xf32>
    %16 = vector.shape_cast %15 : vector<1x10x1xf32> to vector<10x1xf32>
    %17 = vector.shape_cast %14 : vector<10x1xf32> to vector<1x10x1xf32>
    tpu.vector_store %arg8[%c0_12, %c0_13, %c0_14], %17 {strides = array<i32>} : memref<2x10x10xf32, #tpu.memory_space<vmem>>, vector<1x10x1xf32>,
    %c0_15 = arith.constant 0 : index
    %c0_16 = arith.constant 0 : index
    %c8 = arith.constant 8 : index
    %18 = vector.load %arg8[%c0_15, %c0_16, %c8] : memref<2x10x10xf32, #tpu.memory_space<vmem>>, vector<1x10x1xf32>
    %19 = vector.shape_cast %18 : vector<1x10x1xf32> to vector<10x1xf32>
    %c0_17 = arith.constant 0 : index
    %c0_18 = arith.constant 0 : index
    %c9_19 = arith.constant 9 : index
    %20 = vector.load %arg8[%c0_17, %c0_18, %c9_19] : memref<2x10x10xf32, #tpu.memory_space<vmem>>, vector<1x10x1xf32>
    %21 = vector.shape_cast %20 : vector<1x10x1xf32> to vector<10x1xf32>
    %22 = vector.shape_cast %19 : vector<10x1xf32> to vector<1x10x1xf32>
    tpu.vector_store %arg8[%c0_17, %c0_18, %c9_19], %22 {strides = array<i32>} : memref<2x10x10xf32, #tpu.memory_space<vmem>>, vector<1x10x1xf32>,
    %c0_20 = arith.constant 0 : index
    %c0_21 = arith.constant 0 : index
    %c0_22 = arith.constant 0 : index
    %23 = vector.load %arg8[%c0_20, %c0_21, %c0_22] : memref<2x10x10xf32, #tpu.memory_space<vmem>>, vector<1x8x10xf32>
    %24 = vector.shape_cast %23 : vector<1x8x10xf32> to vector<8x10xf32>
    %c0_23 = arith.constant 0 : index
    %c1_24 = arith.constant 1 : index
    %c0_25 = arith.constant 0 : index
    %25 = vector.load %arg8[%c0_23, %c1_24, %c0_25] : memref<2x10x10xf32, #tpu.memory_space<vmem>>, vector<1x8x10xf32>
    %26 = vector.shape_cast %25 : vector<1x8x10xf32> to vector<8x10xf32>
    %c0_26 = arith.constant 0 : index
    %c2 = arith.constant 2 : index
    %c0_27 = arith.constant 0 : index
    %27 = vector.load %arg8[%c0_26, %c2, %c0_27] : memref<2x10x10xf32, #tpu.memory_space<vmem>>, vector<1x8x10xf32>
    %28 = vector.shape_cast %27 : vector<1x8x10xf32> to vector<8x10xf32>
    %cst = arith.constant 2.000000e+00 : f32
    %29 = vector.broadcast %cst : f32 to vector<8x10xf32>
    %30 = arith.mulf %29, %26 : vector<8x10xf32>
    %31 = arith.addf %24, %30 : vector<8x10xf32>
    %32 = arith.addf %31, %28 : vector<8x10xf32>
    %33 = arith.subf %28, %24 : vector<8x10xf32>
    %34 = vector.extract_strided_slice %32 {offsets = [0, 2], sizes = [8, 8], strides = [1, 1]} : vector<8x10xf32> to vector<8x8xf32>
    %35 = vector.extract_strided_slice %32 {offsets = [0, 0], sizes = [8, 8], strides = [1, 1]} : vector<8x10xf32> to vector<8x8xf32>
    %36 = arith.subf %34, %35 : vector<8x8xf32>
    %cst_28 = arith.constant 1.250000e-01 : f32
    %37 = vector.broadcast %cst_28 : f32 to vector<8x8xf32>
    %38 = arith.mulf %36, %37 : vector<8x8xf32>
    %39 = vector.extract_strided_slice %33 {offsets = [0, 0], sizes = [8, 8], strides = [1, 1]} : vector<8x10xf32> to vector<8x8xf32>
    %40 = vector.extract_strided_slice %33 {offsets = [0, 1], sizes = [8, 8], strides = [1, 1]} : vector<8x10xf32> to vector<8x8xf32>
    %cst_29 = arith.constant 2.000000e+00 : f32
    %41 = vector.broadcast %cst_29 : f32 to vector<8x8xf32>
    %42 = arith.mulf %41, %40 : vector<8x8xf32>
    %43 = arith.addf %39, %42 : vector<8x8xf32>
    %44 = vector.extract_strided_slice %33 {offsets = [0, 2], sizes = [8, 8], strides = [1, 1]} : vector<8x10xf32> to vector<8x8xf32>
    %45 = arith.addf %43, %44 : vector<8x8xf32>
    %cst_30 = arith.constant 1.250000e-01 : f32
    %46 = vector.broadcast %cst_30 : f32 to vector<8x8xf32>
    %47 = arith.mulf %45, %46 : vector<8x8xf32>
    %c0_31 = arith.constant 0 : index
    %c0_32 = arith.constant 0 : index
    %c0_33 = arith.constant 0 : index
    %48 = vector.load %arg2[%c0_31, %c0_32, %c0_33] : memref<1x8x8xf32, #tpu.memory_space<vmem>>, vector<1x8x8xf32>
    %49 = vector.shape_cast %48 : vector<1x8x8xf32> to vector<8x8xf32>
    %c1_34 = arith.constant 1 : index
    %c1_35 = arith.constant 1 : index
    %c1_36 = arith.constant 1 : index
    %50 = vector.load %arg8[%c1_34, %c1_35, %c1_36] : memref<2x10x10xf32, #tpu.memory_space<vmem>>, vector<1x8x8xf32>
    %51 = vector.shape_cast %50 : vector<1x8x8xf32> to vector<8x8xf32>
    %52 = vector.shape_cast %49 : vector<8x8xf32> to vector<1x8x8xf32>
    tpu.vector_store %arg8[%c1_34, %c1_35, %c1_36], %52 {strides = array<i32>} : memref<2x10x10xf32, #tpu.memory_space<vmem>>, vector<1x8x8xf32>,
    %53 = vector.extract_strided_slice %49 {offsets = [0, 0], sizes = [1, 8], strides = [1, 1]} : vector<8x8xf32> to vector<1x8xf32>
    %c1_37 = arith.constant 1 : index
    %c0_38 = arith.constant 0 : index
    %c1_39 = arith.constant 1 : index
    %54 = vector.load %arg8[%c1_37, %c0_38, %c1_39] : memref<2x10x10xf32, #tpu.memory_space<vmem>>, vector<1x1x8xf32>
    %55 = vector.shape_cast %54 : vector<1x1x8xf32> to vector<1x8xf32>
    %56 = vector.shape_cast %53 : vector<1x8xf32> to vector<1x1x8xf32>
    tpu.vector_store %arg8[%c1_37, %c0_38, %c1_39], %56 {strides = array<i32>} : memref<2x10x10xf32, #tpu.memory_space<vmem>>, vector<1x1x8xf32>,
    %57 = vector.extract_strided_slice %49 {offsets = [7, 0], sizes = [1, 8], strides = [1, 1]} : vector<8x8xf32> to vector<1x8xf32>
    %c1_40 = arith.constant 1 : index
    %c9_41 = arith.constant 9 : index
    %c1_42 = arith.constant 1 : index
    %58 = vector.load %arg8[%c1_40, %c9_41, %c1_42] : memref<2x10x10xf32, #tpu.memory_space<vmem>>, vector<1x1x8xf32>
    %59 = vector.shape_cast %58 : vector<1x1x8xf32> to vector<1x8xf32>
    %60 = vector.shape_cast %57 : vector<1x8xf32> to vector<1x1x8xf32>
    tpu.vector_store %arg8[%c1_40, %c9_41, %c1_42], %60 {strides = array<i32>} : memref<2x10x10xf32, #tpu.memory_space<vmem>>, vector<1x1x8xf32>,
    %c1_43 = arith.constant 1 : index
    %c0_44 = arith.constant 0 : index
    %c1_45 = arith.constant 1 : index
    %61 = vector.load %arg8[%c1_43, %c0_44, %c1_45] : memref<2x10x10xf32, #tpu.memory_space<vmem>>, vector<1x10x1xf32>
    %62 = vector.shape_cast %61 : vector<1x10x1xf32> to vector<10x1xf32>
    %c1_46 = arith.constant 1 : index
    %c0_47 = arith.constant 0 : index
    %c0_48 = arith.constant 0 : index
    %63 = vector.load %arg8[%c1_46, %c0_47, %c0_48] : memref<2x10x10xf32, #tpu.memory_space<vmem>>, vector<1x10x1xf32>
    %64 = vector.shape_cast %63 : vector<1x10x1xf32> to vector<10x1xf32>
    %65 = vector.shape_cast %62 : vector<10x1xf32> to vector<1x10x1xf32>
    tpu.vector_store %arg8[%c1_46, %c0_47, %c0_48], %65 {strides = array<i32>} : memref<2x10x10xf32, #tpu.memory_space<vmem>>, vector<1x10x1xf32>,
    %c1_49 = arith.constant 1 : index
    %c0_50 = arith.constant 0 : index
    %c8_51 = arith.constant 8 : index
    %66 = vector.load %arg8[%c1_49, %c0_50, %c8_51] : memref<2x10x10xf32, #tpu.memory_space<vmem>>, vector<1x10x1xf32>
    %67 = vector.shape_cast %66 : vector<1x10x1xf32> to vector<10x1xf32>
    %c1_52 = arith.constant 1 : index
    %c0_53 = arith.constant 0 : index
    %c9_54 = arith.constant 9 : index
    %68 = vector.load %arg8[%c1_52, %c0_53, %c9_54] : memref<2x10x10xf32, #tpu.memory_space<vmem>>, vector<1x10x1xf32>
    %69 = vector.shape_cast %68 : vector<1x10x1xf32> to vector<10x1xf32>
    %70 = vector.shape_cast %67 : vector<10x1xf32> to vector<1x10x1xf32>
    tpu.vector_store %arg8[%c1_52, %c0_53, %c9_54], %70 {strides = array<i32>} : memref<2x10x10xf32, #tpu.memory_space<vmem>>, vector<1x10x1xf32>,
    %c1_55 = arith.constant 1 : index
    %c0_56 = arith.constant 0 : index
    %c0_57 = arith.constant 0 : index
    %71 = vector.load %arg8[%c1_55, %c0_56, %c0_57] : memref<2x10x10xf32, #tpu.memory_space<vmem>>, vector<1x8x10xf32>
    %72 = vector.shape_cast %71 : vector<1x8x10xf32> to vector<8x10xf32>
    %c1_58 = arith.constant 1 : index
    %c1_59 = arith.constant 1 : index
    %c0_60 = arith.constant 0 : index
    %73 = vector.load %arg8[%c1_58, %c1_59, %c0_60] : memref<2x10x10xf32, #tpu.memory_space<vmem>>, vector<1x8x10xf32>
    %74 = vector.shape_cast %73 : vector<1x8x10xf32> to vector<8x10xf32>
    %c1_61 = arith.constant 1 : index
    %c2_62 = arith.constant 2 : index
    %c0_63 = arith.constant 0 : index
    %75 = vector.load %arg8[%c1_61, %c2_62, %c0_63] : memref<2x10x10xf32, #tpu.memory_space<vmem>>, vector<1x8x10xf32>
    %76 = vector.shape_cast %75 : vector<1x8x10xf32> to vector<8x10xf32>
    %cst_64 = arith.constant 2.000000e+00 : f32
    %77 = vector.broadcast %cst_64 : f32 to vector<8x10xf32>
    %78 = arith.mulf %77, %74 : vector<8x10xf32>
    %79 = arith.addf %72, %78 : vector<8x10xf32>
    %80 = arith.addf %79, %76 : vector<8x10xf32>
    %81 = arith.subf %76, %72 : vector<8x10xf32>
    %82 = vector.extract_strided_slice %80 {offsets = [0, 2], sizes = [8, 8], strides = [1, 1]} : vector<8x10xf32> to vector<8x8xf32>
    %83 = vector.extract_strided_slice %80 {offsets = [0, 0], sizes = [8, 8], strides = [1, 1]} : vector<8x10xf32> to vector<8x8xf32>
    %84 = arith.subf %82, %83 : vector<8x8xf32>
    %cst_65 = arith.constant 1.250000e-01 : f32
    %85 = vector.broadcast %cst_65 : f32 to vector<8x8xf32>
    %86 = arith.mulf %84, %85 : vector<8x8xf32>
    %87 = vector.extract_strided_slice %81 {offsets = [0, 0], sizes = [8, 8], strides = [1, 1]} : vector<8x10xf32> to vector<8x8xf32>
    %88 = vector.extract_strided_slice %81 {offsets = [0, 1], sizes = [8, 8], strides = [1, 1]} : vector<8x10xf32> to vector<8x8xf32>
    %cst_66 = arith.constant 2.000000e+00 : f32
    %89 = vector.broadcast %cst_66 : f32 to vector<8x8xf32>
    %90 = arith.mulf %89, %88 : vector<8x8xf32>
    %91 = arith.addf %87, %90 : vector<8x8xf32>
    %92 = vector.extract_strided_slice %81 {offsets = [0, 2], sizes = [8, 8], strides = [1, 1]} : vector<8x10xf32> to vector<8x8xf32>
    %93 = arith.addf %91, %92 : vector<8x8xf32>
    %cst_67 = arith.constant 1.250000e-01 : f32
    %94 = vector.broadcast %cst_67 : f32 to vector<8x8xf32>
    %95 = arith.mulf %93, %94 : vector<8x8xf32>
    %96 = math.absf %38 : vector<8x8xf32>
    %cst_68 = arith.constant 0x7F800000 : f32
    %97 = vector.broadcast %cst_68 : f32 to vector<8x8xf32>
    %98 = arith.cmpf olt, %96, %97 : vector<8x8xf32>
    %99 = math.absf %47 : vector<8x8xf32>
    %cst_69 = arith.constant 0x7F800000 : f32
    %100 = vector.broadcast %cst_69 : f32 to vector<8x8xf32>
    %101 = arith.cmpf olt, %99, %100 : vector<8x8xf32>
    %102 = arith.subf %86, %38 : vector<8x8xf32>
    %103 = math.absf %102 : vector<8x8xf32>
    %cst_70 = arith.constant 0.000000e+00 : f32
    %104 = vector.broadcast %cst_70 : f32 to vector<8x8xf32>
    %105 = arith.select %98, %103, %104 : vector<8x8xi1>, vector<8x8xf32>
    %106 = arith.subf %95, %47 : vector<8x8xf32>
    %107 = math.absf %106 : vector<8x8xf32>
    %cst_71 = arith.constant 0.000000e+00 : f32
    %108 = vector.broadcast %cst_71 : f32 to vector<8x8xf32>
    %109 = arith.select %101, %107, %108 : vector<8x8xi1>, vector<8x8xf32>
    %110 = arith.addf %105, %109 : vector<8x8xf32>
    %111 = arith.extui %98 : vector<8x8xi1> to vector<8x8xi32>
    %112 = arith.sitofp %111 : vector<8x8xi32> to vector<8x8xf32>
    %113 = arith.extui %101 : vector<8x8xi1> to vector<8x8xi32>
    %114 = arith.sitofp %113 : vector<8x8xi32> to vector<8x8xf32>
    %115 = arith.addf %112, %114 : vector<8x8xf32>
    %cst_72 = arith.constant dense<0.000000e+00> : vector<8xf32>
    %116 = vector.multi_reduction <add>, %110, %cst_72 [1] : vector<8x8xf32> to vector<8xf32>
    %117 = vector.shape_cast %116 : vector<8xf32> to vector<8x1xf32>
    %cst_73 = arith.constant dense<0.000000e+00> : vector<1xf32>
    %118 = vector.multi_reduction <add>, %117, %cst_73 [0] : vector<8x1xf32> to vector<1xf32>
    %119 = vector.shape_cast %118 : vector<1xf32> to vector<1x1xf32>
    %cst_74 = arith.constant dense<0.000000e+00> : vector<8xf32>
    %120 = vector.multi_reduction <add>, %115, %cst_74 [1] : vector<8x8xf32> to vector<8xf32>
    %121 = vector.shape_cast %120 : vector<8xf32> to vector<8x1xf32>
    %cst_75 = arith.constant dense<0.000000e+00> : vector<1xf32>
    %122 = vector.multi_reduction <add>, %121, %cst_75 [0] : vector<8x1xf32> to vector<1xf32>
    %123 = vector.shape_cast %122 : vector<1xf32> to vector<1x1xf32>
    %c0_76 = arith.constant 0 : index
    %c0_77 = arith.constant 0 : index
    %c0_78 = arith.constant 0 : index
    %124 = vector.load %arg5[%c0_76, %c0_77, %c0_78] : memref<1x1x2xf32, #tpu.memory_space<vmem>>, vector<1x1x1xf32>
    %125 = vector.shape_cast %124 : vector<1x1x1xf32> to vector<1x1xf32>
    %126 = vector.shape_cast %119 : vector<1x1xf32> to vector<1x1x1xf32>
    tpu.vector_store %arg5[%c0_76, %c0_77, %c0_78], %126 {strides = array<i32>} : memref<1x1x2xf32, #tpu.memory_space<vmem>>, vector<1x1x1xf32>,
    %c0_79 = arith.constant 0 : index
    %c0_80 = arith.constant 0 : index
    %c1_81 = arith.constant 1 : index
    %127 = vector.load %arg5[%c0_79, %c0_80, %c1_81] : memref<1x1x2xf32, #tpu.memory_space<vmem>>, vector<1x1x1xf32>
    %128 = vector.shape_cast %127 : vector<1x1x1xf32> to vector<1x1xf32>
    %129 = vector.shape_cast %123 : vector<1x1xf32> to vector<1x1x1xf32>
    tpu.vector_store %arg5[%c0_79, %c0_80, %c1_81], %129 {strides = array<i32>} : memref<1x1x2xf32, #tpu.memory_space<vmem>>, vector<1x1x1xf32>,
    %c0_82 = arith.constant 0 : index
    %c0_83 = arith.constant 0 : index
    %130 = vector.load %arg3[%c0_82, %c0_83] : memref<4x8xf32, #tpu.memory_space<vmem>>, vector<4x8xf32>
    %c0_84 = arith.constant 0 : index
    %c0_85 = arith.constant 0 : index
    %131 = vector.load %arg4[%c0_84, %c0_85] : memref<8x4xf32, #tpu.memory_space<vmem>>, vector<8x4xf32>
    %132 = math.absf %1 : vector<8x8xf32>
    %cst_86 = arith.constant 0x7F800000 : f32
    %133 = vector.broadcast %cst_86 : f32 to vector<8x8xf32>
    %134 = arith.cmpf olt, %132, %133 : vector<8x8xf32>
    %cst_87 = arith.constant 0.000000e+00 : f32
    %135 = vector.broadcast %cst_87 : f32 to vector<8x8xf32>
    %136 = arith.select %134, %1, %135 : vector<8x8xi1>, vector<8x8xf32>
    %cst_88 = arith.constant 0.000000e+00 : f32
    %cst_89 = arith.constant 1.000000e+00 : f32
    %137 = vector.broadcast %cst_88 : f32 to vector<8x8xf32>
    %138 = vector.broadcast %cst_89 : f32 to vector<8x8xf32>
    %139 = arith.select %134, %137, %138 : vector<8x8xi1>, vector<8x8xf32>
    %cst_90 = arith.constant dense<0.000000e+00> : vector<4x8xf32>
    %140 = tpu.matmul %130, %136, %cst_90 {dimension_numbers = #tpu.dot_dimension_numbers<[1], [0], [0], [1], [0, 0, 1, 1], [], []>} : vector<4x8xf32>, vector<8x8xf32>, vector<4x8xf32> -> vector<4x8xf32>
    %cst_91 = arith.constant dense<0.000000e+00> : vector<4x4xf32>
    %141 = tpu.matmul %140, %131, %cst_91 {dimension_numbers = #tpu.dot_dimension_numbers<[1], [0], [0], [1], [0, 0, 1, 1], [], []>} : vector<4x8xf32>, vector<8x4xf32>, vector<4x4xf32> -> vector<4x4xf32>
    %cst_92 = arith.constant dense<0.000000e+00> : vector<4x8xf32>
    %142 = tpu.matmul %130, %139, %cst_92 {dimension_numbers = #tpu.dot_dimension_numbers<[1], [0], [0], [1], [0, 0, 1, 1], [], []>} : vector<4x8xf32>, vector<8x8xf32>, vector<4x8xf32> -> vector<4x8xf32>
    %cst_93 = arith.constant dense<0.000000e+00> : vector<4x4xf32>
    %143 = tpu.matmul %142, %131, %cst_93 {dimension_numbers = #tpu.dot_dimension_numbers<[1], [0], [0], [1], [0, 0, 1, 1], [], []>} : vector<4x8xf32>, vector<8x4xf32>, vector<4x4xf32> -> vector<4x4xf32>
    %cst_94 = arith.constant 0.000000e+00 : f32
    %144 = vector.broadcast %cst_94 : f32 to vector<4x4xf32>
    %145 = arith.cmpf ogt, %143, %144 : vector<4x4xf32>
    %cst_95 = arith.constant 0x7FC00000 : f32
    %146 = vector.broadcast %cst_95 : f32 to vector<4x4xf32>
    %147 = arith.select %145, %146, %141 : vector<4x4xi1>, vector<4x4xf32>
    %c0_96 = arith.constant 0 : index
    %c0_97 = arith.constant 0 : index
    %c0_98 = arith.constant 0 : index
    %148 = vector.load %arg6[%c0_96, %c0_97, %c0_98] : memref<1x4x4xf32, #tpu.memory_space<vmem>>, vector<1x4x4xf32>
    %149 = vector.shape_cast %148 : vector<1x4x4xf32> to vector<4x4xf32>
    %150 = vector.shape_cast %147 : vector<4x4xf32> to vector<1x4x4xf32>
    tpu.vector_store %arg6[%c0_96, %c0_97, %c0_98], %150 {strides = array<i32>} : memref<1x4x4xf32, #tpu.memory_space<vmem>>, vector<1x4x4xf32>,
    %151 = math.absf %49 : vector<8x8xf32>
    %cst_99 = arith.constant 0x7F800000 : f32
    %152 = vector.broadcast %cst_99 : f32 to vector<8x8xf32>
    %153 = arith.cmpf olt, %151, %152 : vector<8x8xf32>
    %cst_100 = arith.constant 0.000000e+00 : f32
    %154 = vector.broadcast %cst_100 : f32 to vector<8x8xf32>
    %155 = arith.select %153, %49, %154 : vector<8x8xi1>, vector<8x8xf32>
    %cst_101 = arith.constant 0.000000e+00 : f32
    %cst_102 = arith.constant 1.000000e+00 : f32
    %156 = vector.broadcast %cst_101 : f32 to vector<8x8xf32>
    %157 = vector.broadcast %cst_102 : f32 to vector<8x8xf32>
    %158 = arith.select %153, %156, %157 : vector<8x8xi1>, vector<8x8xf32>
    %cst_103 = arith.constant dense<0.000000e+00> : vector<4x8xf32>
    %159 = tpu.matmul %130, %155, %cst_103 {dimension_numbers = #tpu.dot_dimension_numbers<[1], [0], [0], [1], [0, 0, 1, 1], [], []>} : vector<4x8xf32>, vector<8x8xf32>, vector<4x8xf32> -> vector<4x8xf32>
    %cst_104 = arith.constant dense<0.000000e+00> : vector<4x4xf32>
    %160 = tpu.matmul %159, %131, %cst_104 {dimension_numbers = #tpu.dot_dimension_numbers<[1], [0], [0], [1], [0, 0, 1, 1], [], []>} : vector<4x8xf32>, vector<8x4xf32>, vector<4x4xf32> -> vector<4x4xf32>
    %cst_105 = arith.constant dense<0.000000e+00> : vector<4x8xf32>
    %161 = tpu.matmul %130, %158, %cst_105 {dimension_numbers = #tpu.dot_dimension_numbers<[1], [0], [0], [1], [0, 0, 1, 1], [], []>} : vector<4x8xf32>, vector<8x8xf32>, vector<4x8xf32> -> vector<4x8xf32>
    %cst_106 = arith.constant dense<0.000000e+00> : vector<4x4xf32>
    %162 = tpu.matmul %161, %131, %cst_106 {dimension_numbers = #tpu.dot_dimension_numbers<[1], [0], [0], [1], [0, 0, 1, 1], [], []>} : vector<4x8xf32>, vector<8x4xf32>, vector<4x4xf32> -> vector<4x4xf32>
    %cst_107 = arith.constant 0.000000e+00 : f32
    %163 = vector.broadcast %cst_107 : f32 to vector<4x4xf32>
    %164 = arith.cmpf ogt, %162, %163 : vector<4x4xf32>
    %cst_108 = arith.constant 0x7FC00000 : f32
    %165 = vector.broadcast %cst_108 : f32 to vector<4x4xf32>
    %166 = arith.select %164, %165, %160 : vector<4x4xi1>, vector<4x4xf32>
    %c0_109 = arith.constant 0 : index
    %c0_110 = arith.constant 0 : index
    %c0_111 = arith.constant 0 : index
    %167 = vector.load %arg7[%c0_109, %c0_110, %c0_111] : memref<1x4x4xf32, #tpu.memory_space<vmem>>, vector<1x4x4xf32>
    %168 = vector.shape_cast %167 : vector<1x4x4xf32> to vector<4x4xf32>
    %169 = vector.shape_cast %166 : vector<4x4xf32> to vector<1x4x4xf32>
    tpu.vector_store %arg7[%c0_109, %c0_110, %c0_111], %169 {strides = array<i32>} : memref<1x4x4xf32, #tpu.memory_space<vmem>>, vector<1x4x4xf32>,
    return
  }
  func.func @transform_0(%arg0: i32) -> (i32, i32, i32) {
    %c0_i32 = arith.constant 0 : i32
    %c0_i32_0 = arith.constant 0 : i32
    %c0_i32_1 = arith.constant 0 : i32
    return %arg0, %c0_i32, %c0_i32_0 : i32, i32, i32
  }
  func.func @transform_1(%arg0: i32) -> (i32, i32, i32) {
    %c0_i32 = arith.constant 0 : i32
    %c0_i32_0 = arith.constant 0 : i32
    %c0_i32_1 = arith.constant 0 : i32
    return %arg0, %c0_i32, %c0_i32_0 : i32, i32, i32
  }
  func.func @transform_2(%arg0: i32) -> (i32, i32) {
    %c0_i32 = arith.constant 0 : i32
    %c0_i32_0 = arith.constant 0 : i32
    %c0_i32_1 = arith.constant 0 : i32
    return %c0_i32, %c0_i32_0 : i32, i32
  }
  func.func @transform_3(%arg0: i32) -> (i32, i32) {
    %c0_i32 = arith.constant 0 : i32
    %c0_i32_0 = arith.constant 0 : i32
    %c0_i32_1 = arith.constant 0 : i32
    return %c0_i32, %c0_i32_0 : i32, i32
  }
  func.func @transform_4(%arg0: i32) -> (i32, i32, i32) {
    %c0_i32 = arith.constant 0 : i32
    %c0_i32_0 = arith.constant 0 : i32
    %c0_i32_1 = arith.constant 0 : i32
    return %arg0, %c0_i32, %c0_i32_0 : i32, i32, i32
  }
  func.func @transform_5(%arg0: i32) -> (i32, i32, i32) {
    %c0_i32 = arith.constant 0 : i32
    %c0_i32_0 = arith.constant 0 : i32
    %c0_i32_1 = arith.constant 0 : i32
    return %arg0, %c0_i32, %c0_i32_0 : i32, i32, i32
  }
  func.func @transform_6(%arg0: i32) -> (i32, i32, i32) {
    %c0_i32 = arith.constant 0 : i32
    %c0_i32_0 = arith.constant 0 : i32
    %c0_i32_1 = arith.constant 0 : i32
    return %arg0, %c0_i32, %c0_i32_0 : i32, i32, i32
  }
}

module attributes {stable_mosaic.version = 11 : i64} {
  func.func @_scale_kernel_last(%arg0: i32, %arg1: memref<1x4x4xf32, #tpu.memory_space<vmem>>, %arg2: memref<1x4x4xf32, #tpu.memory_space<vmem>>, %arg3: memref<1x1x2xf32, #tpu.memory_space<vmem>>, %arg4: memref<2x6x6xf32, #tpu.memory_space<vmem>>) attributes {dimension_semantics = [#tpu.dimension_semantics<parallel>], iteration_bounds = array<i64: 2>, scalar_prefetch = 0 : i64, scratch_operands = 1 : i64, tpu.core_type = #tpu.core_type<tc>, window_params = [{transform_indices = @transform_0, window_bounds = array<i64: 1, 4, 4>}, {transform_indices = @transform_1, window_bounds = array<i64: 1, 4, 4>}, {transform_indices = @transform_2, window_bounds = array<i64: 1, 1, 2>}]} {
    %c0 = arith.constant 0 : index
    %c0_0 = arith.constant 0 : index
    %c0_1 = arith.constant 0 : index
    %0 = vector.load %arg1[%c0, %c0_0, %c0_1] : memref<1x4x4xf32, #tpu.memory_space<vmem>>, vector<1x4x4xf32>
    %1 = vector.shape_cast %0 : vector<1x4x4xf32> to vector<4x4xf32>
    %c0_2 = arith.constant 0 : index
    %c1 = arith.constant 1 : index
    %c1_3 = arith.constant 1 : index
    %2 = vector.load %arg4[%c0_2, %c1, %c1_3] : memref<2x6x6xf32, #tpu.memory_space<vmem>>, vector<1x4x4xf32>
    %3 = vector.shape_cast %2 : vector<1x4x4xf32> to vector<4x4xf32>
    %4 = vector.shape_cast %1 : vector<4x4xf32> to vector<1x4x4xf32>
    tpu.vector_store %arg4[%c0_2, %c1, %c1_3], %4 {strides = array<i32>} : memref<2x6x6xf32, #tpu.memory_space<vmem>>, vector<1x4x4xf32>,
    %5 = vector.extract_strided_slice %1 {offsets = [0, 0], sizes = [1, 4], strides = [1, 1]} : vector<4x4xf32> to vector<1x4xf32>
    %c0_4 = arith.constant 0 : index
    %c0_5 = arith.constant 0 : index
    %c1_6 = arith.constant 1 : index
    %6 = vector.load %arg4[%c0_4, %c0_5, %c1_6] : memref<2x6x6xf32, #tpu.memory_space<vmem>>, vector<1x1x4xf32>
    %7 = vector.shape_cast %6 : vector<1x1x4xf32> to vector<1x4xf32>
    %8 = vector.shape_cast %5 : vector<1x4xf32> to vector<1x1x4xf32>
    tpu.vector_store %arg4[%c0_4, %c0_5, %c1_6], %8 {strides = array<i32>} : memref<2x6x6xf32, #tpu.memory_space<vmem>>, vector<1x1x4xf32>,
    %9 = vector.extract_strided_slice %1 {offsets = [3, 0], sizes = [1, 4], strides = [1, 1]} : vector<4x4xf32> to vector<1x4xf32>
    %c0_7 = arith.constant 0 : index
    %c5 = arith.constant 5 : index
    %c1_8 = arith.constant 1 : index
    %10 = vector.load %arg4[%c0_7, %c5, %c1_8] : memref<2x6x6xf32, #tpu.memory_space<vmem>>, vector<1x1x4xf32>
    %11 = vector.shape_cast %10 : vector<1x1x4xf32> to vector<1x4xf32>
    %12 = vector.shape_cast %9 : vector<1x4xf32> to vector<1x1x4xf32>
    tpu.vector_store %arg4[%c0_7, %c5, %c1_8], %12 {strides = array<i32>} : memref<2x6x6xf32, #tpu.memory_space<vmem>>, vector<1x1x4xf32>,
    %c0_9 = arith.constant 0 : index
    %c0_10 = arith.constant 0 : index
    %c1_11 = arith.constant 1 : index
    %13 = vector.load %arg4[%c0_9, %c0_10, %c1_11] : memref<2x6x6xf32, #tpu.memory_space<vmem>>, vector<1x6x1xf32>
    %14 = vector.shape_cast %13 : vector<1x6x1xf32> to vector<6x1xf32>
    %c0_12 = arith.constant 0 : index
    %c0_13 = arith.constant 0 : index
    %c0_14 = arith.constant 0 : index
    %15 = vector.load %arg4[%c0_12, %c0_13, %c0_14] : memref<2x6x6xf32, #tpu.memory_space<vmem>>, vector<1x6x1xf32>
    %16 = vector.shape_cast %15 : vector<1x6x1xf32> to vector<6x1xf32>
    %17 = vector.shape_cast %14 : vector<6x1xf32> to vector<1x6x1xf32>
    tpu.vector_store %arg4[%c0_12, %c0_13, %c0_14], %17 {strides = array<i32>} : memref<2x6x6xf32, #tpu.memory_space<vmem>>, vector<1x6x1xf32>,
    %c0_15 = arith.constant 0 : index
    %c0_16 = arith.constant 0 : index
    %c4 = arith.constant 4 : index
    %18 = vector.load %arg4[%c0_15, %c0_16, %c4] : memref<2x6x6xf32, #tpu.memory_space<vmem>>, vector<1x6x1xf32>
    %19 = vector.shape_cast %18 : vector<1x6x1xf32> to vector<6x1xf32>
    %c0_17 = arith.constant 0 : index
    %c0_18 = arith.constant 0 : index
    %c5_19 = arith.constant 5 : index
    %20 = vector.load %arg4[%c0_17, %c0_18, %c5_19] : memref<2x6x6xf32, #tpu.memory_space<vmem>>, vector<1x6x1xf32>
    %21 = vector.shape_cast %20 : vector<1x6x1xf32> to vector<6x1xf32>
    %22 = vector.shape_cast %19 : vector<6x1xf32> to vector<1x6x1xf32>
    tpu.vector_store %arg4[%c0_17, %c0_18, %c5_19], %22 {strides = array<i32>} : memref<2x6x6xf32, #tpu.memory_space<vmem>>, vector<1x6x1xf32>,
    %c0_20 = arith.constant 0 : index
    %c0_21 = arith.constant 0 : index
    %c0_22 = arith.constant 0 : index
    %23 = vector.load %arg4[%c0_20, %c0_21, %c0_22] : memref<2x6x6xf32, #tpu.memory_space<vmem>>, vector<1x4x6xf32>
    %24 = vector.shape_cast %23 : vector<1x4x6xf32> to vector<4x6xf32>
    %c0_23 = arith.constant 0 : index
    %c1_24 = arith.constant 1 : index
    %c0_25 = arith.constant 0 : index
    %25 = vector.load %arg4[%c0_23, %c1_24, %c0_25] : memref<2x6x6xf32, #tpu.memory_space<vmem>>, vector<1x4x6xf32>
    %26 = vector.shape_cast %25 : vector<1x4x6xf32> to vector<4x6xf32>
    %c0_26 = arith.constant 0 : index
    %c2 = arith.constant 2 : index
    %c0_27 = arith.constant 0 : index
    %27 = vector.load %arg4[%c0_26, %c2, %c0_27] : memref<2x6x6xf32, #tpu.memory_space<vmem>>, vector<1x4x6xf32>
    %28 = vector.shape_cast %27 : vector<1x4x6xf32> to vector<4x6xf32>
    %cst = arith.constant 2.000000e+00 : f32
    %29 = vector.broadcast %cst : f32 to vector<4x6xf32>
    %30 = arith.mulf %29, %26 : vector<4x6xf32>
    %31 = arith.addf %24, %30 : vector<4x6xf32>
    %32 = arith.addf %31, %28 : vector<4x6xf32>
    %33 = arith.subf %28, %24 : vector<4x6xf32>
    %34 = vector.extract_strided_slice %32 {offsets = [0, 2], sizes = [4, 4], strides = [1, 1]} : vector<4x6xf32> to vector<4x4xf32>
    %35 = vector.extract_strided_slice %32 {offsets = [0, 0], sizes = [4, 4], strides = [1, 1]} : vector<4x6xf32> to vector<4x4xf32>
    %36 = arith.subf %34, %35 : vector<4x4xf32>
    %cst_28 = arith.constant 1.250000e-01 : f32
    %37 = vector.broadcast %cst_28 : f32 to vector<4x4xf32>
    %38 = arith.mulf %36, %37 : vector<4x4xf32>
    %39 = vector.extract_strided_slice %33 {offsets = [0, 0], sizes = [4, 4], strides = [1, 1]} : vector<4x6xf32> to vector<4x4xf32>
    %40 = vector.extract_strided_slice %33 {offsets = [0, 1], sizes = [4, 4], strides = [1, 1]} : vector<4x6xf32> to vector<4x4xf32>
    %cst_29 = arith.constant 2.000000e+00 : f32
    %41 = vector.broadcast %cst_29 : f32 to vector<4x4xf32>
    %42 = arith.mulf %41, %40 : vector<4x4xf32>
    %43 = arith.addf %39, %42 : vector<4x4xf32>
    %44 = vector.extract_strided_slice %33 {offsets = [0, 2], sizes = [4, 4], strides = [1, 1]} : vector<4x6xf32> to vector<4x4xf32>
    %45 = arith.addf %43, %44 : vector<4x4xf32>
    %cst_30 = arith.constant 1.250000e-01 : f32
    %46 = vector.broadcast %cst_30 : f32 to vector<4x4xf32>
    %47 = arith.mulf %45, %46 : vector<4x4xf32>
    %c0_31 = arith.constant 0 : index
    %c0_32 = arith.constant 0 : index
    %c0_33 = arith.constant 0 : index
    %48 = vector.load %arg2[%c0_31, %c0_32, %c0_33] : memref<1x4x4xf32, #tpu.memory_space<vmem>>, vector<1x4x4xf32>
    %49 = vector.shape_cast %48 : vector<1x4x4xf32> to vector<4x4xf32>
    %c1_34 = arith.constant 1 : index
    %c1_35 = arith.constant 1 : index
    %c1_36 = arith.constant 1 : index
    %50 = vector.load %arg4[%c1_34, %c1_35, %c1_36] : memref<2x6x6xf32, #tpu.memory_space<vmem>>, vector<1x4x4xf32>
    %51 = vector.shape_cast %50 : vector<1x4x4xf32> to vector<4x4xf32>
    %52 = vector.shape_cast %49 : vector<4x4xf32> to vector<1x4x4xf32>
    tpu.vector_store %arg4[%c1_34, %c1_35, %c1_36], %52 {strides = array<i32>} : memref<2x6x6xf32, #tpu.memory_space<vmem>>, vector<1x4x4xf32>,
    %53 = vector.extract_strided_slice %49 {offsets = [0, 0], sizes = [1, 4], strides = [1, 1]} : vector<4x4xf32> to vector<1x4xf32>
    %c1_37 = arith.constant 1 : index
    %c0_38 = arith.constant 0 : index
    %c1_39 = arith.constant 1 : index
    %54 = vector.load %arg4[%c1_37, %c0_38, %c1_39] : memref<2x6x6xf32, #tpu.memory_space<vmem>>, vector<1x1x4xf32>
    %55 = vector.shape_cast %54 : vector<1x1x4xf32> to vector<1x4xf32>
    %56 = vector.shape_cast %53 : vector<1x4xf32> to vector<1x1x4xf32>
    tpu.vector_store %arg4[%c1_37, %c0_38, %c1_39], %56 {strides = array<i32>} : memref<2x6x6xf32, #tpu.memory_space<vmem>>, vector<1x1x4xf32>,
    %57 = vector.extract_strided_slice %49 {offsets = [3, 0], sizes = [1, 4], strides = [1, 1]} : vector<4x4xf32> to vector<1x4xf32>
    %c1_40 = arith.constant 1 : index
    %c5_41 = arith.constant 5 : index
    %c1_42 = arith.constant 1 : index
    %58 = vector.load %arg4[%c1_40, %c5_41, %c1_42] : memref<2x6x6xf32, #tpu.memory_space<vmem>>, vector<1x1x4xf32>
    %59 = vector.shape_cast %58 : vector<1x1x4xf32> to vector<1x4xf32>
    %60 = vector.shape_cast %57 : vector<1x4xf32> to vector<1x1x4xf32>
    tpu.vector_store %arg4[%c1_40, %c5_41, %c1_42], %60 {strides = array<i32>} : memref<2x6x6xf32, #tpu.memory_space<vmem>>, vector<1x1x4xf32>,
    %c1_43 = arith.constant 1 : index
    %c0_44 = arith.constant 0 : index
    %c1_45 = arith.constant 1 : index
    %61 = vector.load %arg4[%c1_43, %c0_44, %c1_45] : memref<2x6x6xf32, #tpu.memory_space<vmem>>, vector<1x6x1xf32>
    %62 = vector.shape_cast %61 : vector<1x6x1xf32> to vector<6x1xf32>
    %c1_46 = arith.constant 1 : index
    %c0_47 = arith.constant 0 : index
    %c0_48 = arith.constant 0 : index
    %63 = vector.load %arg4[%c1_46, %c0_47, %c0_48] : memref<2x6x6xf32, #tpu.memory_space<vmem>>, vector<1x6x1xf32>
    %64 = vector.shape_cast %63 : vector<1x6x1xf32> to vector<6x1xf32>
    %65 = vector.shape_cast %62 : vector<6x1xf32> to vector<1x6x1xf32>
    tpu.vector_store %arg4[%c1_46, %c0_47, %c0_48], %65 {strides = array<i32>} : memref<2x6x6xf32, #tpu.memory_space<vmem>>, vector<1x6x1xf32>,
    %c1_49 = arith.constant 1 : index
    %c0_50 = arith.constant 0 : index
    %c4_51 = arith.constant 4 : index
    %66 = vector.load %arg4[%c1_49, %c0_50, %c4_51] : memref<2x6x6xf32, #tpu.memory_space<vmem>>, vector<1x6x1xf32>
    %67 = vector.shape_cast %66 : vector<1x6x1xf32> to vector<6x1xf32>
    %c1_52 = arith.constant 1 : index
    %c0_53 = arith.constant 0 : index
    %c5_54 = arith.constant 5 : index
    %68 = vector.load %arg4[%c1_52, %c0_53, %c5_54] : memref<2x6x6xf32, #tpu.memory_space<vmem>>, vector<1x6x1xf32>
    %69 = vector.shape_cast %68 : vector<1x6x1xf32> to vector<6x1xf32>
    %70 = vector.shape_cast %67 : vector<6x1xf32> to vector<1x6x1xf32>
    tpu.vector_store %arg4[%c1_52, %c0_53, %c5_54], %70 {strides = array<i32>} : memref<2x6x6xf32, #tpu.memory_space<vmem>>, vector<1x6x1xf32>,
    %c1_55 = arith.constant 1 : index
    %c0_56 = arith.constant 0 : index
    %c0_57 = arith.constant 0 : index
    %71 = vector.load %arg4[%c1_55, %c0_56, %c0_57] : memref<2x6x6xf32, #tpu.memory_space<vmem>>, vector<1x4x6xf32>
    %72 = vector.shape_cast %71 : vector<1x4x6xf32> to vector<4x6xf32>
    %c1_58 = arith.constant 1 : index
    %c1_59 = arith.constant 1 : index
    %c0_60 = arith.constant 0 : index
    %73 = vector.load %arg4[%c1_58, %c1_59, %c0_60] : memref<2x6x6xf32, #tpu.memory_space<vmem>>, vector<1x4x6xf32>
    %74 = vector.shape_cast %73 : vector<1x4x6xf32> to vector<4x6xf32>
    %c1_61 = arith.constant 1 : index
    %c2_62 = arith.constant 2 : index
    %c0_63 = arith.constant 0 : index
    %75 = vector.load %arg4[%c1_61, %c2_62, %c0_63] : memref<2x6x6xf32, #tpu.memory_space<vmem>>, vector<1x4x6xf32>
    %76 = vector.shape_cast %75 : vector<1x4x6xf32> to vector<4x6xf32>
    %cst_64 = arith.constant 2.000000e+00 : f32
    %77 = vector.broadcast %cst_64 : f32 to vector<4x6xf32>
    %78 = arith.mulf %77, %74 : vector<4x6xf32>
    %79 = arith.addf %72, %78 : vector<4x6xf32>
    %80 = arith.addf %79, %76 : vector<4x6xf32>
    %81 = arith.subf %76, %72 : vector<4x6xf32>
    %82 = vector.extract_strided_slice %80 {offsets = [0, 2], sizes = [4, 4], strides = [1, 1]} : vector<4x6xf32> to vector<4x4xf32>
    %83 = vector.extract_strided_slice %80 {offsets = [0, 0], sizes = [4, 4], strides = [1, 1]} : vector<4x6xf32> to vector<4x4xf32>
    %84 = arith.subf %82, %83 : vector<4x4xf32>
    %cst_65 = arith.constant 1.250000e-01 : f32
    %85 = vector.broadcast %cst_65 : f32 to vector<4x4xf32>
    %86 = arith.mulf %84, %85 : vector<4x4xf32>
    %87 = vector.extract_strided_slice %81 {offsets = [0, 0], sizes = [4, 4], strides = [1, 1]} : vector<4x6xf32> to vector<4x4xf32>
    %88 = vector.extract_strided_slice %81 {offsets = [0, 1], sizes = [4, 4], strides = [1, 1]} : vector<4x6xf32> to vector<4x4xf32>
    %cst_66 = arith.constant 2.000000e+00 : f32
    %89 = vector.broadcast %cst_66 : f32 to vector<4x4xf32>
    %90 = arith.mulf %89, %88 : vector<4x4xf32>
    %91 = arith.addf %87, %90 : vector<4x4xf32>
    %92 = vector.extract_strided_slice %81 {offsets = [0, 2], sizes = [4, 4], strides = [1, 1]} : vector<4x6xf32> to vector<4x4xf32>
    %93 = arith.addf %91, %92 : vector<4x4xf32>
    %cst_67 = arith.constant 1.250000e-01 : f32
    %94 = vector.broadcast %cst_67 : f32 to vector<4x4xf32>
    %95 = arith.mulf %93, %94 : vector<4x4xf32>
    %96 = math.absf %38 : vector<4x4xf32>
    %cst_68 = arith.constant 0x7F800000 : f32
    %97 = vector.broadcast %cst_68 : f32 to vector<4x4xf32>
    %98 = arith.cmpf olt, %96, %97 : vector<4x4xf32>
    %99 = math.absf %47 : vector<4x4xf32>
    %cst_69 = arith.constant 0x7F800000 : f32
    %100 = vector.broadcast %cst_69 : f32 to vector<4x4xf32>
    %101 = arith.cmpf olt, %99, %100 : vector<4x4xf32>
    %102 = arith.subf %86, %38 : vector<4x4xf32>
    %103 = math.absf %102 : vector<4x4xf32>
    %cst_70 = arith.constant 0.000000e+00 : f32
    %104 = vector.broadcast %cst_70 : f32 to vector<4x4xf32>
    %105 = arith.select %98, %103, %104 : vector<4x4xi1>, vector<4x4xf32>
    %106 = arith.subf %95, %47 : vector<4x4xf32>
    %107 = math.absf %106 : vector<4x4xf32>
    %cst_71 = arith.constant 0.000000e+00 : f32
    %108 = vector.broadcast %cst_71 : f32 to vector<4x4xf32>
    %109 = arith.select %101, %107, %108 : vector<4x4xi1>, vector<4x4xf32>
    %110 = arith.addf %105, %109 : vector<4x4xf32>
    %111 = arith.extui %98 : vector<4x4xi1> to vector<4x4xi32>
    %112 = arith.sitofp %111 : vector<4x4xi32> to vector<4x4xf32>
    %113 = arith.extui %101 : vector<4x4xi1> to vector<4x4xi32>
    %114 = arith.sitofp %113 : vector<4x4xi32> to vector<4x4xf32>
    %115 = arith.addf %112, %114 : vector<4x4xf32>
    %cst_72 = arith.constant dense<0.000000e+00> : vector<4xf32>
    %116 = vector.multi_reduction <add>, %110, %cst_72 [1] : vector<4x4xf32> to vector<4xf32>
    %117 = vector.shape_cast %116 : vector<4xf32> to vector<4x1xf32>
    %cst_73 = arith.constant dense<0.000000e+00> : vector<1xf32>
    %118 = vector.multi_reduction <add>, %117, %cst_73 [0] : vector<4x1xf32> to vector<1xf32>
    %119 = vector.shape_cast %118 : vector<1xf32> to vector<1x1xf32>
    %cst_74 = arith.constant dense<0.000000e+00> : vector<4xf32>
    %120 = vector.multi_reduction <add>, %115, %cst_74 [1] : vector<4x4xf32> to vector<4xf32>
    %121 = vector.shape_cast %120 : vector<4xf32> to vector<4x1xf32>
    %cst_75 = arith.constant dense<0.000000e+00> : vector<1xf32>
    %122 = vector.multi_reduction <add>, %121, %cst_75 [0] : vector<4x1xf32> to vector<1xf32>
    %123 = vector.shape_cast %122 : vector<1xf32> to vector<1x1xf32>
    %c0_76 = arith.constant 0 : index
    %c0_77 = arith.constant 0 : index
    %c0_78 = arith.constant 0 : index
    %124 = vector.load %arg3[%c0_76, %c0_77, %c0_78] : memref<1x1x2xf32, #tpu.memory_space<vmem>>, vector<1x1x1xf32>
    %125 = vector.shape_cast %124 : vector<1x1x1xf32> to vector<1x1xf32>
    %126 = vector.shape_cast %119 : vector<1x1xf32> to vector<1x1x1xf32>
    tpu.vector_store %arg3[%c0_76, %c0_77, %c0_78], %126 {strides = array<i32>} : memref<1x1x2xf32, #tpu.memory_space<vmem>>, vector<1x1x1xf32>,
    %c0_79 = arith.constant 0 : index
    %c0_80 = arith.constant 0 : index
    %c1_81 = arith.constant 1 : index
    %127 = vector.load %arg3[%c0_79, %c0_80, %c1_81] : memref<1x1x2xf32, #tpu.memory_space<vmem>>, vector<1x1x1xf32>
    %128 = vector.shape_cast %127 : vector<1x1x1xf32> to vector<1x1xf32>
    %129 = vector.shape_cast %123 : vector<1x1xf32> to vector<1x1x1xf32>
    tpu.vector_store %arg3[%c0_79, %c0_80, %c1_81], %129 {strides = array<i32>} : memref<1x1x2xf32, #tpu.memory_space<vmem>>, vector<1x1x1xf32>,
    return
  }
  func.func @transform_0(%arg0: i32) -> (i32, i32, i32) {
    %c0_i32 = arith.constant 0 : i32
    %c0_i32_0 = arith.constant 0 : i32
    %c0_i32_1 = arith.constant 0 : i32
    return %arg0, %c0_i32, %c0_i32_0 : i32, i32, i32
  }
  func.func @transform_1(%arg0: i32) -> (i32, i32, i32) {
    %c0_i32 = arith.constant 0 : i32
    %c0_i32_0 = arith.constant 0 : i32
    %c0_i32_1 = arith.constant 0 : i32
    return %arg0, %c0_i32, %c0_i32_0 : i32, i32, i32
  }
  func.func @transform_2(%arg0: i32) -> (i32, i32, i32) {
    %c0_i32 = arith.constant 0 : i32
    %c0_i32_0 = arith.constant 0 : i32
    %c0_i32_1 = arith.constant 0 : i32
    return %arg0, %c0_i32, %c0_i32_0 : i32, i32, i32
  }
}

</mosaic_0001>

<bundles_post_ra>
// kernel: ms_gradient_loss.7
= control target key start
LH: loop header
LB: loop body
LE: loop exit
PB: predicated region body
PF: predicated region fallthrough
CT: control target
= control target key end

     0   :  { %s419_s9 = smov 0   ;;  %s451_s0 = inlined_call_operand.vmem [shape: f32[2,4,4], index: 0, kind: input, shape index: {}]   ;;  %s452_s1 = inlined_call_operand.vmem [shape: f32[2,4,4], index: 1, kind: input, shape index: {}]   ;;  %s453_s2 = inlined_call_operand.vmem [shape: f32[2,1,2], index: 2, kind: output, shape index: {}]  }
   0x1 LB: > { %s367_s10 = sadd.s32 4294967295, %s397_s9   ;;  %p371_p0 = scmp.ge.s32.totalorder %s397_s9, 1  ;;  %s397_s9 = sphi %s419_s9, %s12_s9  }
   0x2   : > { %p120_p1 = scmp.lt.s32.totalorder %s397_s9, 3 }
   0x4   : > { %p121_p2 = pnand %p371_p0, %p120_p1 }
   0x5   : > { %p143_p3 = scmp.lt.s32.totalorder (!%p121_p2), %s367_s10, 1  ;;  %s399_s18 = smov (!%p121_p2), 1  }
   0x6   : > { %124 = sbr.rel (%p121_p2) target bundleno = 909 (0x38d), region = 28  ;;  %s400_s19 = smov (!%p121_p2), 127  }
   0x7   : > { %s401_s20 = smov (!%p121_p2), 126   ;;  %s402_s21 = smov (!%p121_p2), 2  }
   0xb   : > { %s455_s10 = smov (!%p143_p3, %s367_s10), 1  ;;  %vm159_vm0 = vcmask 35848   ;;  %vm161_vm1 = vcmask 32776   ;;  %vm163_vm2 = vcmask 35851   ;;  %vm170_vm3 = vcmask 5120  }
   0xc   : > { %s372_s11 = sshll.u32 %s455_s10, 2  ;;  %vm177_vm4 = vcmask 46120   ;;  %v403_v39 = vmov 0.0   ;;  %vm278_vm7 = vcmask 27648   ;;  %vm282_vm8 = vcmask 1043456   ;;  %s153_s24 = scalar_lea.vmem %s453_s2, %s455_s10 }
   0xd   : > { %s146_s14 = scalar_lea.vmem %s451_s0, %s372_s11  ;;  %s150_s17 = scalar_lea.vmem %s452_s1, %s372_s11  ;;  %vm304_vm9 = vcmask 0   ;;  %vm306_vm10 = vcmask 8200  }
   0xe   : > { %v154_v0 = vld [vmem:[%s146_s14] sm:$0xf] }
   0xf   : > { %156 = vrot.lane.b32.xlu0 %v154_v0, %s399_s18  ;;  %v204_v1 = vld [vmem:[%s150_s17] sm:$0xf] }
  0x13   : > { %206 = vrot.lane.b32.xlu0 %v204_v1, %s399_s18 }
  0x81   : > { %v157_v2 = vpop.permute.xlu0 %156 }
  0x82   : > { %160 = vst.msk [vmem:[#allocation2 + $0x1] sm:$0xf] %vm159_vm0, %v157_v2 }
  0x83   : > { %162 = vst.msk [vmem:[#allocation2] sm:$0x1] %vm161_vm1, %v157_v2 }
  0x84   : > { %164 = vst.msk [vmem:[#allocation2 + $0x2] sm:$0x8] %vm163_vm2, %v157_v2 }
  0x85   : > { %v207_v3 = vpop.permute.xlu0 %206 }
  0x86   : > { %210 = vst.msk [vmem:[#allocation2 + $0x9] sm:$0xf] %vm159_vm0, %v207_v3 }
  0x87   : > { %211 = vst.msk [vmem:[#allocation2 + $0x8] sm:$0x1] %vm161_vm1, %v207_v3 }
  0x88   : > { %212 = vst.msk [vmem:[#allocation2 + $0xa] sm:$0x8] %vm163_vm2, %v207_v3 }
  0x8b   : > { %v165_v4 = vld [vmem:[#allocation2] sm:$0x3f] }
  0x8c   : > { %167 = vrot.lane.b32.xlu1 %v165_v4, %s400_s19 }
  0x8f   : > { %v213_v5 = vld [vmem:[#allocation2 + $0x8] sm:$0x3f] }
  0x90   : > { %215 = vrot.lane.b32.xlu1 %v213_v5, %s400_s19 }
  0xfe   : > { %v168_v6 = vpop.permute.xlu1 %167 }
  0xff   : > { %171 = vst.msk [vmem:[#allocation2] sm:$0x3f] %vm170_vm3, %v168_v6 }
 0x102   : > { %v216_v7 = vpop.permute.xlu1 %215 }
 0x103   : > { %218 = vst.msk [vmem:[#allocation2 + $0x8] sm:$0x3f] %vm170_vm3, %v216_v7 }
 0x106   : > { %v172_v8 = vld [vmem:[#allocation2] sm:$0x3f] }
 0x107   : > { %174 = vrot.lane.b32.xlu0 %v172_v8, %s399_s18 }
 0x10a   : > { %v219_v9 = vld [vmem:[#allocation2 + $0x8] sm:$0x3f] }
 0x10b   : > { %221 = vrot.lane.b32.xlu1 %v219_v9, %s399_s18 }
 0x179   : > { %v175_v10 = vpop.permute.xlu0 %174 }
 0x17a   : > { %178 = vst.msk [vmem:[#allocation2] sm:$0x3f] %vm177_vm4, %v175_v10 }
 0x17d   : > { %v222_v11 = vpop.permute.xlu1 %221 }
 0x17e   : > { %224 = vst.msk [vmem:[#allocation2 + $0x8] sm:$0x3f] %vm177_vm4, %v222_v11 }
 0x181   : > { %v179_v12 = vld [vmem:[#allocation2] sm:$0xf] }
 0x182   : > { %v181_v13 = vld [vmem:[#allocation2 + $0x2] sm:$0xf] }
 0x183   : > { %v180_v14 = vld [vmem:[#allocation2 + $0x1] sm:$0xf]  ;;  %v185_v15 = vsub.f32 %v181_v13, %v179_v12 }
 0x184   : > { %v182_v17 = vmul.f32 2.0, %v180_v14 }
 0x185   : > { %v192_v16 = vmul.f32 2.0, %v185_v15  ;;  %v225_v18 = vld [vmem:[#allocation2 + $0x8] sm:$0xf] }
 0x186   : > { %v227_v19 = vld [vmem:[#allocation2 + $0xa] sm:$0xf]  ;;  %v183_v23 = vadd.f32 %v182_v17, %v179_v12 }
 0x187   : > { %v226_v20 = vld [vmem:[#allocation2 + $0x9] sm:$0xf]  ;;  %194 = vrot.lane.b32.xlu0 %v192_v16, %s400_s19  ;;  %v231_v21 = vsub.f32 %v227_v19, %v225_v18 }
 0x188   : > { %v228_v24 = vmul.f32 2.0, %v226_v20  ;;  %v184_v25 = vadd.f32 %v183_v23, %v181_v13 }
 0x189   : > { %v238_v22 = vmul.f32 2.0, %v231_v21 }
 0x18a   : > { %v229_v26 = vadd.f32 %v228_v24, %v225_v18 }
 0x18b   : > { %240 = vrot.lane.b32.xlu1 %v238_v22, %s400_s19  ;;  %199 = vrot.lane.b32.xlu0 %v185_v15, %s401_s20 }
 0x18c   : > { %v230_v27 = vadd.f32 %v229_v26, %v227_v19 }
 0x18f   : > { %245 = vrot.lane.b32.xlu1 %v231_v21, %s401_s20  ;;  %187 = vrot.lane.b32.xlu0 %v184_v25, %s402_s21 }
 0x193   : > { %233 = vrot.lane.b32.xlu1 %v230_v27, %s402_s21 }
 0x1f9   : > { %v195_v28 = vpop.permute.xlu0 %194 }
 0x1fa   : > { %v197_v29 = vadd.f32 %v195_v28, %v185_v15 }
 0x1fd   : > { %v241_v30 = vpop.permute.xlu1 %240  ;;  %v200_v31 = vpop.permute.xlu0 %199 }
 0x1fe   : > { %v202_v32 = vadd.f32 %v200_v31, %v197_v29  ;;  %v243_v33 = vadd.f32 %v241_v30, %v231_v21 }
 0x200   : > { %v203_v34 = vmul.f32 0.125, %v202_v32 }
 0x201   : > { %v246_v35 = vpop.permute.xlu1 %245  ;;  %v188_v44 = vpop.permute.xlu0 %187 }
 0x202   : > { %v252_v36 = vand.u32 2147483647, %v203_v34  ;;  %v248_v37 = vadd.f32 %v246_v35, %v243_v33  ;;  %v190_v45 = vsub.f32 %v184_v25, %v188_v44 }
 0x204   : > { %v249_v38 = vmul.f32 0.125, %v248_v37  ;;  %vm253_vm5 = vcmp.lt.f32.partialorder %v252_v36, inf  ;;  %v191_v47 = vmul.f32 0.125, %v190_v45 }
 0x205   : > { %v375_v40 = vsel %vm253_vm5, 1.0, %v403_v39  ;;  %v234_v46 = vpop.permute.xlu1 %233 }
 0x206   : > { %v257_v41 = vsub.f32 %v249_v38, %v203_v34  ;;  %270 = vrot.lane.b32.xlu1 %v375_v40, %s402_s21  ;;  %v236_v48 = vsub.f32 %v230_v27, %v234_v46  ;;  %v250_v50 = vand.u32 2147483647, %v191_v47 }
 0x208   : > { %v258_v42 = vand.u32 2147483647, %v257_v41  ;;  %v237_v49 = vmul.f32 0.125, %v236_v48  ;;  %vm251_vm6 = vcmp.lt.f32.partialorder %v250_v50, inf }
 0x209   : > { %v374_v53 = vsel %vm251_vm6, 1.0, %v403_v39 }
 0x20a   : > { %v259_v43 = vsel %vm253_vm5, %v258_v42, 0.0  ;;  %v254_v51 = vsub.f32 %v237_v49, %v191_v47 }
 0x20b   : > { %261 = vrot.lane.b32.xlu0 %v259_v43, %s402_s21 }
 0x20c   : > { %v255_v55 = vand.u32 2147483647, %v254_v51 }
 0x20e   : > { %v256_v56 = vsel %vm251_vm6, %v255_v55, 0.0 }
 0x278   : > { %v271_v52 = vpop.permute.xlu1 %270 }
 0x279   : > { %v273_v54 = vadd.f32 %v374_v53, %v271_v52 }
 0x27b   : > { %291 = vrot.lane.b32.xlu1 %v273_v54, %s401_s20 }
 0x27d   : > { %v262_v57 = vpop.permute.xlu0 %261 }
 0x27e   : > { %v264_v58 = vadd.f32 %v262_v57, %v256_v56 }
 0x280   : > { %275 = vrot.lane.b32.xlu0 %v264_v58, %s401_s20 }
 0x2ed   : > { %v292_v59 = vpop.permute.xlu1 %291 }
 0x2ee   : > { %v294_v60 = vsel %vm278_vm7, %v292_v59, 0.0 }
 0x2ef   : > { %295 = vadd.xlane.f32.xlu1 %v294_v60 }
 0x2f2   : > { %v276_v61 = vpop.permute.xlu0 %275 }
 0x2f3   : > { %v279_v62 = vsel %vm278_vm7, %v276_v61, 0.0 }
 0x2f4   : > { %280 = vadd.xlane.f32.xlu0 %v279_v62 }
 0x378   : > { %v296_v63 = vpop.xlane.xlu1 %295 }
 0x379   : > { %v297_v0 = vsel %vm282_vm8, %v296_v63, 0.0 }
 0x37a   : > { %v298_v1 = vrot.slane %v297_v0, 4 }
 0x37c   : > { %v299_v2 = vadd.f32 %v298_v1, %v297_v0 }
 0x37d   : > { %v281_v3 = vpop.xlane.xlu0 %280 }
 0x37e   : > { %v300_v4 = vrot.slane %v299_v2, 2  ;;  %v283_v5 = vsel %vm282_vm8, %v281_v3, 0.0 }
 0x37f   : > { %v284_v6 = vrot.slane %v283_v5, 4 }
 0x380   : > { %v301_v8 = vadd.f32 %v300_v4, %v299_v2 }
 0x381   : > { %v285_v7 = vadd.f32 %v284_v6, %v283_v5 }
 0x382   : > { %v302_v11 = vrot.slane %v301_v8, 1 }
 0x383   : > { %v286_v9 = vrot.slane %v285_v7, 2 }
 0x384   : > { %v303_v14 = vadd.f32 %v302_v11, %v301_v8 }
 0x385   : > { %v287_v10 = vadd.f32 %v286_v9, %v285_v7 }
 0x387   : > { %v288_v12 = vrot.slane %v287_v10, 1 }
 0x389   : > { %v289_v13 = vadd.f32 %v288_v12, %v287_v10 }
 0x38b   : > { %305 = vst.msk [vmem:[%s153_s24] sm:$0x1] %vm304_vm9, %v289_v13 }
 0x38c   : > { %307 = vst.msk [vmem:[%s153_s24] sm:$0x1] %vm306_vm10, %v303_v14 }
 0x38d PF: > { %s12_s9 = sadd.s32 1, %s397_s9  }
 0x38e   : > { %p9_p4 = scmp.ge.s32.totalorder %s12_s9, 4  }
 0x390   :  { %11 = sbr.rel (!%p9_p4) target bundleno = 1 (0x1), region = 62 }

// kernel: ms_gradient_loss.5
= control target key start
LH: loop header
LB: loop body
LE: loop exit
PB: predicated region body
PF: predicated region fallthrough
CT: control target
= control target key end

     0   :  { %s1505_s21 = smov 0   ;;  %s1710_s0 = inlined_call_operand.vmem [shape: f32[2,16,16], index: 0, kind: input, shape index: {}]   ;;  %s1711_s1 = inlined_call_operand.vmem [shape: f32[2,16,16], index: 1, kind: input, shape index: {}]   ;;  %s1712_s2 = inlined_call_operand.vmem [shape: f32[8,16], index: 2, kind: input, shape index: {}]   ;;  %s1713_s3 = inlined_call_operand.vmem [shape: f32[16,8], index: 3, kind: input, shape index: {}]   ;;  %s1714_s4 = inlined_call_operand.vmem [shape: f32[2,1,2], index: 4, kind: output, shape index: {0}]   ;;  %s1715_s5 = inlined_call_operand.vmem [shape: f32[2,8,8], index: 5, kind: output, shape index: {1}]   ;;  %s1716_s6 = inlined_call_operand.vmem [shape: f32[2,8,8], index: 6, kind: output, shape index: {2}]  }
   0x1 LB: > { %s1314_s22 = sadd.s32 4294967295, %s1461_s21   ;;  %p1318_p0 = scmp.ge.s32.totalorder %s1461_s21, 1  ;;  %s1461_s21 = sphi %s1505_s21, %s17_s21  }
   0x2   : > { %p227_p1 = scmp.lt.s32.totalorder %s1461_s21, 3 }
   0x4   : > { %p228_p2 = pnand %p1318_p0, %p227_p1 }
   0x5   : > { %p268_p3 = scmp.lt.s32.totalorder (!%p228_p2), %s1314_s22, 1  ;;  %s1463_s30 = smov (!%p228_p2), 1  }
   0x6   : > { %231 = sbr.rel (%p228_p2) target bundleno = 918 (0x396), region = 36  ;;  %s1464_s7 = smov (!%p228_p2), 127  }
   0x7   : > { %s1468_s10 = smov (!%p228_p2), 126   ;;  %s1469_s11 = smov (!%p228_p2), 2  }
   0xb   : > { %s1726_s22 = smov (!%p268_p3, %s1314_s22), 1  ;;  %vm299_vm0 = vcmask 138248   ;;  %vm302_vm1 = vcmask 131080   ;;  %vm304_vm2 = vcmask 138255   ;;  %vm321_vm3 = vcmask 7168   ;;  %v592_v37 = vld [vmem:[%s1712_s2] sm:$0xff] }
   0xc   : > { %s1351_s23 = sshll.u32 %s1726_s22, 4  ;;  %vm324_vm4 = vcmask 1024   ;;  %vm341_vm5 = vcmask 146568   ;;  %vm344_vm6 = vcmask 140424   ;;  %v1465_v27 = vmov 0.0   ;;  %v594_v35 = vld [vmem:[%s1713_s3 + $0x8] sm:$0xff]  ;;  %s280_s27 = scalar_lea.vmem %s1714_s4, %s1726_s22 }
   0xd   : > { %s272_s26 = scalar_lea.vmem %s1710_s0, %s1351_s23  ;;  %s277_s29 = scalar_lea.vmem %s1711_s1, %s1351_s23  ;;  %1377 = vmatprep.subr.mxu0 %v1465_v27  ;;  %1384 = vmatprep.subr.mxu1 %v1465_v27  ;;  %vm1466_vm9 = vmmov 0   ;;  %vm553_vm10 = vcmask 130048   ;;  %v1467_v40 = vmov 1.0  }
   0xe   : > { %v1522_v0 = vld [vmem:[%s272_s26] sm:$0xff]  ;;  %v1530_v2 = vld [vmem:[%s272_s26 + $0x8] sm:$0xff]  ;;  %1381 = vmatprep.mubr.msk.f32.mxu0 %vm1466_vm9, %v1465_v27  ;;  %1388 = vmatprep.mubr.msk.f32.mxu1 %vm1466_vm9, %v1465_v27  ;;  %s1323_s16 = sshll.u32 %s1726_s22, 3 }
   0xf   : > { %v1524_v1 = vld [vmem:[%s277_s29] sm:$0xff]  ;;  %293 = vrot.lane.b32.xlu0 %v1522_v0, %s1463_s30  ;;  %v1532_v3 = vld [vmem:[%s277_s29 + $0x8] sm:$0xff]  ;;  %v596_v30 = vand.u32 2147483647, %v1530_v2  ;;  %v595_v32 = vand.u32 2147483647, %v1522_v0  ;;  %1385 = vmatpush3.msra.mxu1 %v594_v35  ;;  %s284_s19 = scalar_lea.vmem %s1715_s5, %s1323_s16  ;;  %s288_s24 = scalar_lea.vmem %s1716_s6, %s1323_s16 }
  0x10   : > { %400 = vrot.lane.b32.xlu1 %v1524_v1, %s1463_s30  ;;  %v897_v36 = vand.u32 2147483647, %v1532_v3  ;;  %v896_v38 = vand.u32 2147483647, %v1524_v1  ;;  %1386 = vmatprep.subr.mxu1 %v1465_v27 }
  0x11   : > { %vm1556_vm7 = vcmp.lt.f32.partialorder %v596_v30, inf  ;;  %vm1565_vm8 = vcmp.lt.f32.partialorder %v595_v32, inf }
  0x12   : > { %1378 = vmatpush3.msk.msra.mxu0 %vm1556_vm7, %v1530_v2  ;;  %vm1333_vm11 = vmneg %vm1556_vm7  ;;  %vm1592_vm13 = vcmp.lt.f32.partialorder %v897_v36, inf  ;;  %vm1601_vm14 = vcmp.lt.f32.partialorder %v896_v38, inf  ;;  %v593_v36 = vld [vmem:[%s1713_s3] sm:$0xff] }
  0x13   : > { %295 = vrot.lane.b32.xlu0 %v1530_v2, %s1463_s30  ;;  %1379 = vmatprep.subr.mxu0 %v1465_v27  ;;  %vm1335_vm12 = vmneg %vm1565_vm8 }
  0x14   : > { %402 = vrot.lane.b32.xlu1 %v1532_v3, %s1463_s30  ;;  %1380 = vmatpush3.msk.msra.mxu0 %vm1565_vm8, %v1522_v0  ;;  %vm1343_vm15 = vmneg %vm1592_vm13  ;;  %vm588_vm8 = vcmask 0  }
  0x15   : > { %1382 = vmatmul.mubr.msk.f32.vlgmr.msra.gmra.mxu0 %vm553_vm10, %v592_v37  ;;  %1391 = vmatprep.subr.mxu0 %v1465_v27 }
  0x16   : > { %1392 = vmatpush3.msk.msra.mxu0 %vm1333_vm11, %v1467_v40  ;;  %1395 = vmatprep.mubr.msk.f32.mxu0 %vm1466_vm9, %v1465_v27 }
  0x17   : > { %1393 = vmatprep.subr.mxu0 %v1465_v27  ;;  %1387 = vmatpush3.msra.mxu1 %v593_v36 }
  0x18   : > { %1394 = vmatpush3.msk.msra.mxu0 %vm1335_vm12, %v1467_v40  ;;  %1398 = vmatprep.subr.mxu1 %v1465_v27 }
  0x19   : > { %1396 = vmatmul.mubr.msk.f32.vlgmr.msra.gmra.mxu0 %vm553_vm10, %v592_v37  ;;  %1405 = vmatprep.subr.mxu0 %v1465_v27 }
  0x1a   : > { %1406 = vmatpush3.msk.msra.mxu0 %vm1592_vm13, %v1532_v3  ;;  %1409 = vmatprep.mubr.msk.f32.mxu0 %vm1466_vm9, %v1465_v27 }
  0x1b   : > { %1407 = vmatprep.subr.mxu0 %v1465_v27 }
  0x1c   : > { %1408 = vmatpush3.msk.msra.mxu0 %vm1601_vm14, %v1524_v1 }
  0x1d   : > { %1410 = vmatmul.mubr.msk.f32.vlgmr.msra.gmra.mxu0 %vm553_vm10, %v592_v37  ;;  %1419 = vmatprep.subr.mxu0 %v1465_v27 }
  0x1e   : > { %1420 = vmatpush3.msk.msra.mxu0 %vm1343_vm15, %v1467_v40  ;;  %1423 = vmatprep.mubr.msk.f32.mxu0 %vm1466_vm9, %v1465_v27 }
  0x1f   : > { %1421 = vmatprep.subr.mxu0 %v1465_v27 }
  0x81   : > { %v294_v4 = vpop.permute.xlu0 %293 }
  0x82   : > { %v401_v5 = vpop.permute.xlu1 %400  ;;  %300 = vst.msk [vmem:[#allocation2 + $0x1] sm:$0xff] %vm299_vm0, %v294_v4 }
  0x83   : > { %303 = vst.msk [vmem:[#allocation2] sm:$0x1] %vm302_vm1, %v294_v4  ;;  %409 = vst.msk [vmem:[#allocation2 + $0x18] sm:$0x1] %vm302_vm1, %v401_v5 }
  0x84   : > { %407 = vst.msk [vmem:[#allocation2 + $0x19] sm:$0xff] %vm299_vm0, %v401_v5 }
  0x85   : > { %v296_v6 = vpop.permute.xlu0 %295 }
  0x86   : > { %v403_v7 = vpop.permute.xlu1 %402  ;;  %301 = vst.msk [vmem:[#allocation2 + $0x9] sm:$0xff] %vm299_vm0, %v296_v6 }
  0x87   : > { %305 = vst.msk [vmem:[#allocation2 + $0xa] sm:$0x80] %vm304_vm2, %v296_v6  ;;  %410 = vst.msk [vmem:[#allocation2 + $0x22] sm:$0x80] %vm304_vm2, %v403_v7 }
  0x88   : > { %408 = vst.msk [vmem:[#allocation2 + $0x21] sm:$0xff] %vm299_vm0, %v403_v7  ;;  %vm1345_vm0 = vmneg %vm1601_vm14 }
  0x89   : > { %1422 = vmatpush3.msk.msra.mxu0 %vm1345_vm0, %v1467_v40 }
  0x8a   : > { %v306_v8 = vld [vmem:[#allocation2] sm:$0xff]  ;;  %1424 = vmatmul.mubr.msk.f32.vlgmr.msra.gmra.mxu0 %vm553_vm10, %v592_v37 }
  0x8b   : > { %312 = vrot.lane.b32.xlu0 %v306_v8, %s1464_s7  ;;  %v411_v12 = vld [vmem:[#allocation2 + $0x18] sm:$0xff] }
  0x8d   : > { %v307_v10 = vld [vmem:[#allocation2 + $0x8] sm:$0xff] }
  0x8e   : > { %v308_v9 = vld [vmem:[#allocation2 + $0x10] sm:$0x3]  ;;  %314 = vrot.lane.b32.xlu1 %v307_v10, %s1464_s7 }
  0x8f   : > { %316 = vrot.lane.b32.xlu0 %v308_v9, %s1464_s7  ;;  %v412_v11 = vld [vmem:[#allocation2 + $0x20] sm:$0xff]  ;;  %v413_v13 = vld [vmem:[#allocation2 + $0x28] sm:$0x3] }
  0x92   : > { %417 = vrot.lane.b32.xlu1 %v411_v12, %s1464_s7 }
  0x93   : > { %419 = vrot.lane.b32.xlu0 %v412_v11, %s1464_s7 }
  0x96   : > { %421 = vrot.lane.b32.xlu1 %v413_v13, %s1464_s7 }
  0xd5   : > { %v672_v45 = vpop.f32.mrf.mxu0 }
  0xd6   : > { %1389 = vmatmul.mubr.msk.f32.vlgmr.msra.gmra.mxu1 %vm553_vm10, %v672_v45 }
  0xd7   : > { %1399 = vmatpush3.msra.mxu1 %v594_v35  ;;  %1402 = vmatprep.mubr.msk.f32.mxu1 %vm1466_vm9, %v1465_v27 }
  0xd8   : > { %1400 = vmatprep.subr.mxu1 %v1465_v27 }
  0xd9   : > { %1401 = vmatpush3.msra.mxu1 %v593_v36 }
  0xda   : > { %1412 = vmatprep.subr.mxu1 %v1465_v27 }
  0xfd   : > { %v313_v14 = vpop.permute.xlu0 %312 }
  0xfe   : > { %322 = vst.msk [vmem:[#allocation2] sm:$0xff] %vm321_vm3, %v313_v14 }
 0x100   : > { %v315_v15 = vpop.permute.xlu1 %314 }
 0x101   : > { %v317_v16 = vpop.permute.xlu0 %316  ;;  %323 = vst.msk [vmem:[#allocation2 + $0x8] sm:$0xff] %vm321_vm3, %v315_v15 }
 0x102   : > { %325 = vst.msk [vmem:[#allocation2 + $0x10] sm:$0x3] %vm324_vm4, %v317_v16 }
 0x104   : > { %v418_v17 = vpop.permute.xlu1 %417 }
 0x105   : > { %v420_v18 = vpop.permute.xlu0 %419  ;;  %v326_v19 = vld [vmem:[#allocation2] sm:$0xff]  ;;  %426 = vst.msk [vmem:[#allocation2 + $0x18] sm:$0xff] %vm321_vm3, %v418_v17 }
 0x106   : > { %427 = vst.msk [vmem:[#allocation2 + $0x20] sm:$0xff] %vm321_vm3, %v420_v18  ;;  %332 = vrot.lane.b32.xlu0 %v326_v19, %s1463_s30 }
 0x108   : > { %v422_v20 = vpop.permute.xlu1 %421  ;;  %v327_v21 = vld [vmem:[#allocation2 + $0x8] sm:$0xff] }
 0x109   : > { %v328_v22 = vld [vmem:[#allocation2 + $0x10] sm:$0x3]  ;;  %428 = vst.msk [vmem:[#allocation2 + $0x28] sm:$0x3] %vm324_vm4, %v422_v20  ;;  %334 = vrot.lane.b32.xlu1 %v327_v21, %s1463_s30 }
 0x10a   : > { %336 = vrot.lane.b32.xlu0 %v328_v22, %s1463_s30 }
 0x10c   : > { %v429_v23 = vld [vmem:[#allocation2 + $0x18] sm:$0xff] }
 0x10d   : > { %v430_v24 = vld [vmem:[#allocation2 + $0x20] sm:$0xff]  ;;  %435 = vrot.lane.b32.xlu1 %v429_v23, %s1463_s30 }
 0x10e   : > { %437 = vrot.lane.b32.xlu0 %v430_v24, %s1463_s30 }
 0x110   : > { %v431_v25 = vld [vmem:[#allocation2 + $0x28] sm:$0x3] }
 0x111   : > { %439 = vrot.lane.b32.xlu1 %v431_v25, %s1463_s30 }
 0x178   : > { %v333_v26 = vpop.permute.xlu0 %332 }
 0x179   : > { %342 = vst.msk [vmem:[#allocation2] sm:$0xff] %vm341_vm5, %v333_v26 }
 0x17b   : > { %v335_v28 = vpop.permute.xlu1 %334 }
 0x17c   : > { %v337_v29 = vpop.permute.xlu0 %336  ;;  %343 = vst.msk [vmem:[#allocation2 + $0x8] sm:$0xff] %vm341_vm5, %v335_v28 }
 0x17d   : > { %345 = vst.msk [vmem:[#allocation2 + $0x10] sm:$0x3] %vm344_vm6, %v337_v29 }
 0x17f   : > { %v436_v33 = vpop.permute.xlu1 %435 }
 0x180   : > { %v438_v34 = vpop.permute.xlu0 %437  ;;  %444 = vst.msk [vmem:[#allocation2 + $0x18] sm:$0xff] %vm341_vm5, %v436_v33  ;;  %v346_v39 = vld [vmem:[#allocation2] sm:$0xff] }
 0x181   : > { %445 = vst.msk [vmem:[#allocation2 + $0x20] sm:$0xff] %vm341_vm5, %v438_v34 }
 0x183   : > { %v440_v41 = vpop.permute.xlu1 %439  ;;  %v350_v42 = vld [vmem:[#allocation2 + $0x2] sm:$0xff] }
 0x184   : > { %v347_v43 = vld [vmem:[#allocation2 + $0x8] sm:$0xff]  ;;  %446 = vst.msk [vmem:[#allocation2 + $0x28] sm:$0x3] %vm344_vm6, %v440_v41  ;;  %v1597_v46 = vsub.f32 %v350_v42, %v346_v39  ;;  %vm894_vm6 = vcmask 64512  }
 0x185   : > { %v351_v44 = vld [vmem:[#allocation2 + $0xa] sm:$0xff]  ;;  %v348_v54 = vld [vmem:[#allocation2 + $0x1] sm:$0xff] }
 0x186   : > { %v359_v47 = vsub.f32 %v351_v44, %v347_v43  ;;  %386 = vrot.lane.b32.xlu0 %v1597_v46, %s1468_s10  ;;  %v372_v51 = vmul.f32 2.0, %v1597_v46  ;;  %v349_v57 = vld [vmem:[#allocation2 + $0x9] sm:$0xff]  ;;  %v352_v60 = vmul.f32 2.0, %v348_v54 }
 0x187   : > { %v447_v49 = vld [vmem:[#allocation2 + $0x18] sm:$0xff]  ;;  %v353_v63 = vmul.f32 2.0, %v349_v57 }
 0x188   : > { %388 = vrot.lane.b32.xlu1 %v359_v47, %s1468_s10  ;;  %v451_v50 = vld [vmem:[#allocation2 + $0x1a] sm:$0xff]  ;;  %v373_v52 = vmul.f32 2.0, %v359_v47  ;;  %v354_v1 = vadd.f32 %v352_v60, %v346_v39 }
 0x189   : > { %v459_v53 = vsub.f32 %v451_v50, %v447_v49  ;;  %v448_v55 = vld [vmem:[#allocation2 + $0x20] sm:$0xff]  ;;  %v355_v3 = vadd.f32 %v353_v63, %v347_v43 }
 0x18a   : > { %376 = vrot.lane.b32.xlu0 %v372_v51, %s1464_s7  ;;  %v449_v61 = vld [vmem:[#allocation2 + $0x19] sm:$0xff]  ;;  %v1637_v5 = vadd.f32 %v354_v1, %v350_v42 }
 0x18b   : > { %v452_v56 = vld [vmem:[#allocation2 + $0x22] sm:$0xff]  ;;  %v473_v58 = vmul.f32 2.0, %v459_v53  ;;  %v453_v2 = vmul.f32 2.0, %v449_v61  ;;  %v1641_v7 = vadd.f32 %v355_v3, %v351_v44 }
 0x18c   : > { %378 = vrot.lane.b32.xlu1 %v373_v52, %s1464_s7  ;;  %v460_v59 = vsub.f32 %v452_v56, %v448_v55  ;;  %v450_v0 = vld [vmem:[#allocation2 + $0x21] sm:$0xff] }
 0x18d   : > { %v454_v4 = vmul.f32 2.0, %v450_v0  ;;  %v455_v6 = vadd.f32 %v453_v2, %v447_v49 }
 0x18e   : > { %477 = vrot.lane.b32.xlu0 %v473_v58, %s1464_s7  ;;  %v474_v62 = vmul.f32 2.0, %v460_v59 }
 0x18f   : > { %v456_v8 = vadd.f32 %v454_v4, %v448_v55  ;;  %v1645_v9 = vadd.f32 %v455_v6, %v451_v50 }
 0x190   : > { %479 = vrot.lane.b32.xlu1 %v474_v62, %s1464_s7 }
 0x191   : > { %v1649_v10 = vadd.f32 %v456_v8, %v452_v56 }
 0x192   : > { %487 = vrot.lane.b32.xlu0 %v459_v53, %s1468_s10 }
 0x194   : > { %489 = vrot.lane.b32.xlu1 %v460_v59, %s1468_s10 }
 0x196   : > { %362 = vrot.lane.b32.xlu0 %v1637_v5, %s1469_s11 }
 0x198   : > { %364 = vrot.lane.b32.xlu1 %v1641_v7, %s1469_s11 }
 0x19a   : > { %463 = vrot.lane.b32.xlu0 %v1645_v9, %s1469_s11 }
 0x19c   : > { %465 = vrot.lane.b32.xlu1 %v1649_v10, %s1469_s11 }
 0x1f8   : > { %v387_v12 = vpop.permute.xlu0 %386 }
 0x1fa   : > { %v389_v11 = vpop.permute.xlu1 %388 }
 0x1fc   : > { %v377_v14 = vpop.permute.xlu0 %376 }
 0x1fd   : > { %v382_v16 = vadd.f32 %v377_v14, %v1597_v46  ;;  %v1383_v46 = vpop.f32.mrf.mxu0 }
 0x1fe   : > { %v379_v13 = vpop.permute.xlu1 %378 }
 0x1ff   : > { %v383_v15 = vadd.f32 %v379_v13, %v359_v47  ;;  %v392_v18 = vadd.f32 %v387_v12, %v382_v16  ;;  %v815_v47 = vpop.f32.mrf.mxu0 }
 0x200   : > { %v478_v19 = vpop.permute.xlu0 %477  ;;  %1403 = vmatmul.mubr.msk.f32.vlgmr.msra.gmra.mxu1 %vm553_vm10, %v815_v47 }
 0x201   : > { %v393_v17 = vadd.f32 %v389_v11, %v383_v15  ;;  %v394_v21 = vmul.f32 0.125, %v392_v18  ;;  %v483_v23 = vadd.f32 %v478_v19, %v459_v53  ;;  %v1397_v48 = vpop.f32.mrf.mxu0  ;;  %1413 = vmatpush3.msra.mxu1 %v594_v35  ;;  %1416 = vmatprep.mubr.msk.f32.mxu1 %vm1466_vm9, %v1465_v27 }
 0x202   : > { %v480_v22 = vpop.permute.xlu1 %479  ;;  %1414 = vmatprep.subr.mxu1 %v1465_v27 }
 0x203   : > { %v395_v20 = vmul.f32 0.125, %v393_v17  ;;  %v484_v25 = vadd.f32 %v480_v22, %v460_v59  ;;  %v501_v29 = vand.u32 2147483647, %v394_v21  ;;  %1415 = vmatpush3.msra.mxu1 %v593_v36  ;;  %v970_v49 = vpop.f32.mrf.mxu0 }
 0x204   : > { %v488_v24 = vpop.permute.xlu0 %487  ;;  %1426 = vmatprep.subr.mxu1 %v1465_v27  ;;  %1417 = vmatmul.mubr.msk.f32.vlgmr.msra.gmra.mxu1 %vm553_vm10, %v970_v49 }
 0x205   : > { %v493_v26 = vadd.f32 %v488_v24, %v483_v23  ;;  %v502_v30 = vand.u32 2147483647, %v395_v20  ;;  %vm503_vm1 = vcmp.lt.f32.partialorder %v501_v29, inf  ;;  %v1411_v50 = vpop.f32.mrf.mxu0  ;;  %1427 = vmatpush3.msra.mxu1 %v594_v35  ;;  %1430 = vmatprep.mubr.msk.f32.mxu1 %vm1466_vm9, %v1465_v27  ;;  %vm590_vm9 = vcmask 8200  }
 0x206   : > { %v490_v28 = vpop.permute.xlu1 %489  ;;  %v1327_v41 = vsel %vm503_vm1, 1.0, %v1465_v27  ;;  %1428 = vmatprep.subr.mxu1 %v1465_v27 }
 0x207   : > { %v495_v31 = vmul.f32 0.125, %v493_v26  ;;  %v494_v32 = vadd.f32 %v490_v28, %v484_v25  ;;  %vm504_vm2 = vcmp.lt.f32.partialorder %v502_v30, inf  ;;  %v1113_v51 = vpop.f32.mrf.mxu0  ;;  %1429 = vmatpush3.msra.mxu1 %v593_v36  ;;  %v745_v25 = vpop.f32.mrf.mxu1 }
 0x208   : > { %v1328_v42 = vsel %vm504_vm2, 1.0, %v1465_v27  ;;  %1431 = vmatmul.mubr.msk.f32.vlgmr.msra.gmra.mxu1 %vm553_vm10, %v1113_v51  ;;  %v363_v53 = vpop.permute.xlu0 %362 }
 0x209   : > { %v511_v33 = vsub.f32 %v495_v31, %v394_v21  ;;  %v496_v34 = vmul.f32 0.125, %v494_v32  ;;  %v1448_v44 = vpack.i.bf16 %v1328_v42, %v1327_v41  ;;  %v1425_v52 = vpop.f32.mrf.mxu0  ;;  %v368_v58 = vsub.f32 %v1637_v5, %v363_v53  ;;  %v1390_v26 = vpop.f32.mrf.mxu1 }
 0x20a   : > { %v365_v54 = vpop.permute.xlu1 %364 }
 0x20b   : > { %v513_v37 = vand.u32 2147483647, %v511_v33  ;;  %v512_v38 = vsub.f32 %v496_v34, %v395_v20  ;;  %v369_v60 = vsub.f32 %v1641_v7, %v365_v54  ;;  %v370_v62 = vmul.f32 0.125, %v368_v58 }
 0x20c   : > { %v464_v55 = vpop.permute.xlu0 %463 }
 0x20d   : > { %v514_v39 = vand.u32 2147483647, %v512_v38  ;;  %v515_v40 = vsel %vm503_vm1, %v513_v37, 0.0  ;;  %v469_v57 = vsub.f32 %v1645_v9, %v464_v55  ;;  %v371_v0 = vmul.f32 0.125, %v369_v60 }
 0x20e   : > { %519 = vrot.lane.b32.xlu0 %v515_v40, %s1469_s11  ;;  %v466_v56 = vpop.permute.xlu1 %465  ;;  %v497_v3 = vand.u32 2147483647, %v370_v62 }
 0x20f   : > { %v516_v43 = vsel %vm504_vm2, %v514_v39, 0.0  ;;  %v470_v59 = vsub.f32 %v1649_v10, %v466_v56  ;;  %v471_v61 = vmul.f32 0.125, %v469_v57  ;;  %v498_v6 = vand.u32 2147483647, %v371_v0 }
 0x210   : > { %521 = vrot.lane.b32.xlu1 %v516_v43, %s1469_s11  ;;  %vm499_vm3 = vcmp.lt.f32.partialorder %v497_v3, inf }
 0x211   : > { %v472_v63 = vmul.f32 0.125, %v470_v59  ;;  %v505_v1 = vsub.f32 %v471_v61, %v370_v62  ;;  %vm500_vm4 = vcmp.lt.f32.partialorder %v498_v6, inf  ;;  %v1325_v14 = vsel %vm499_vm3, 1.0, %v1465_v27 }
 0x212   : > { %1449 = vrot.lane.b32.xlu0 %v1448_v44, %s1469_s11  ;;  %v1326_v15 = vsel %vm500_vm4, 1.0, %v1465_v27 }
 0x213   : > { %v506_v2 = vsub.f32 %v472_v63, %v371_v0  ;;  %v507_v4 = vand.u32 2147483647, %v505_v1 }
 0x215   : > { %v508_v8 = vand.u32 2147483647, %v506_v2  ;;  %v509_v11 = vsel %vm499_vm3, %v507_v4, 0.0 }
 0x217   : > { %v510_v5 = vsel %vm500_vm4, %v508_v8, 0.0 }
 0x280   : > { %v520_v12 = vpop.permute.xlu0 %519 }
 0x281   : > { %v525_v9 = vadd.f32 %v520_v12, %v509_v11 }
 0x282   : > { %v522_v13 = vpop.permute.xlu1 %521 }
 0x283   : > { %v526_v10 = vadd.f32 %v522_v13, %v510_v5  ;;  %547 = vrot.lane.b32.xlu1 %v525_v9, %s1468_s10 }
 0x284   : > { %v1450_v7 = vpop.permute.xlu0 %1449 }
 0x285   : > { %549 = vrot.lane.b32.xlu0 %v526_v10, %s1468_s10  ;;  %v1453_v16 = vadd.high.f32.bf16 %v1326_v15, %v1450_v7  ;;  %v1454_v17 = vadd.low.f32.bf16 %v1325_v14, %v1450_v7 }
 0x287   : > { %569 = vrot.lane.b32.xlu1 %v1454_v17, %s1468_s10 }
 0x289   : > { %571 = vrot.lane.b32.xlu0 %v1453_v16, %s1468_s10 }
 0x2c0   : > { %v888_v28 = vpop.f32.mrf.mxu1 }
 0x2c1   : > { %vm892_vm5 = vcmp.gt.f32.partialorder %v888_v28, 0.0 }
 0x2c2   : > { %v893_v29 = vsel %vm892_vm5, nan, %v745_v25  ;;  %v1404_v30 = vpop.f32.mrf.mxu1 }
 0x2c3   : > { %895 = vst.msk [vmem:[%s284_s19] sm:$0xff] %vm894_vm6, %v893_v29 }
 0x2c4   : > { %v1043_v31 = vpop.f32.mrf.mxu1 }
 0x2c6   : > { %v1418_v32 = vpop.f32.mrf.mxu1 }
 0x2c8   : > { %v1186_v33 = vpop.f32.mrf.mxu1 }
 0x2c9   : > { %vm1190_vm7 = vcmp.gt.f32.partialorder %v1186_v33, 0.0 }
 0x2ca   : > { %v1191_v34 = vsel %vm1190_vm7, nan, %v1043_v31  ;;  %v1432_v35 = vpop.f32.mrf.mxu1 }
 0x2cb   : > { %1192 = vst.msk [vmem:[%s288_s24] sm:$0xff] %vm894_vm6, %v1191_v34 }
 0x2f5   : > { %v548_v18 = vpop.permute.xlu1 %547 }
 0x2f6   : > { %v554_v19 = vsel %vm553_vm10, %v548_v18, 0.0 }
 0x2f7   : > { %v550_v20 = vpop.permute.xlu0 %549  ;;  %555 = vadd.xlane.f32.xlu1 %v554_v19 }
 0x2f8   : > { %v557_v21 = vsel %vm553_vm10, %v550_v20, 0.0 }
 0x2f9   : > { %558 = vadd.xlane.f32.xlu0 %v557_v21  ;;  %v570_v23 = vpop.permute.xlu1 %569 }
 0x2fa   : > { %v575_v27 = vsel %vm553_vm10, %v570_v23, 0.0 }
 0x2fb   : > { %v572_v22 = vpop.permute.xlu0 %571 }
 0x2fc   : > { %v578_v24 = vsel %vm553_vm10, %v572_v22, 0.0 }
 0x2fd   : > { %579 = vadd.xlane.f32.xlu1 %v578_v24  ;;  %576 = vadd.xlane.f32.xlu0 %v575_v27 }
 0x380   : > { %v556_v36 = vpop.xlane.xlu1 %555 }
 0x382   : > { %v559_v37 = vpop.xlane.xlu0 %558 }
 0x383   : > { %v560_v38 = vadd.f32 %v559_v37, %v556_v36 }
 0x385   : > { %v561_v39 = vrot.slane %v560_v38, 4 }
 0x386   : > { %v577_v40 = vpop.xlane.xlu0 %576  ;;  %v580_v41 = vpop.xlane.xlu1 %579 }
 0x387   : > { %v562_v42 = vadd.f32 %v561_v39, %v560_v38  ;;  %v581_v43 = vadd.f32 %v580_v41, %v577_v40 }
 0x389   : > { %v563_v44 = vrot.slane %v562_v42, 2  ;;  %v582_v45 = vrot.slane %v581_v43, 4 }
 0x38b   : > { %v564_v46 = vadd.f32 %v563_v44, %v562_v42  ;;  %v583_v47 = vadd.f32 %v582_v45, %v581_v43 }
 0x38d   : > { %v565_v48 = vrot.slane %v564_v46, 1  ;;  %v584_v49 = vrot.slane %v583_v47, 2 }
 0x38f   : > { %v566_v50 = vadd.f32 %v565_v48, %v564_v46  ;;  %v585_v51 = vadd.f32 %v584_v49, %v583_v47 }
 0x391   : > { %589 = vst.msk [vmem:[%s280_s27] sm:$0x1] %vm588_vm8, %v566_v50  ;;  %v586_v52 = vrot.slane %v585_v51, 1 }
 0x393   : > { %v587_v53 = vadd.f32 %v586_v52, %v585_v51 }
 0x395   : > { %591 = vst.msk [vmem:[%s280_s27] sm:$0x1] %vm590_vm9, %v587_v53 }
 0x396 PF: > { %s17_s21 = sadd.s32 1, %s1461_s21  }
 0x397   : > { %p14_p4 = scmp.ge.s32.totalorder %s17_s21, 4  }
 0x399   :  { %16 = sbr.rel (!%p14_p4) target bundleno = 1 (0x1), region = 94 }

// kernel: ms_gradient_loss.6
= control target key start
LH: loop header
LB: loop body
LE: loop exit
PB: predicated region body
PF: predicated region fallthrough
CT: control target
= control target key end

     0   :  { %s1321_s21 = smov 0   ;;  %s1435_s0 = inlined_call_operand.vmem [shape: f32[2,8,8], index: 0, kind: input, shape index: {}]   ;;  %s1436_s1 = inlined_call_operand.vmem [shape: f32[2,8,8], index: 1, kind: input, shape index: {}]   ;;  %s1437_s2 = inlined_call_operand.vmem [shape: f32[4,8], index: 2, kind: input, shape index: {}]   ;;  %s1438_s3 = inlined_call_operand.vmem [shape: f32[8,4], index: 3, kind: input, shape index: {}]   ;;  %s1439_s4 = inlined_call_operand.vmem [shape: f32[2,1,2], index: 4, kind: output, shape index: {0}]   ;;  %s1440_s5 = inlined_call_operand.vmem [shape: f32[2,4,4], index: 5, kind: output, shape index: {1}]   ;;  %s1441_s6 = inlined_call_operand.vmem [shape: f32[2,4,4], index: 6, kind: output, shape index: {2}]  }
   0x1 LB: > { %s1173_s22 = sadd.s32 4294967295, %s1277_s21   ;;  %p1177_p0 = scmp.ge.s32.totalorder %s1277_s21, 1  ;;  %s1277_s21 = sphi %s1321_s21, %s17_s21  }
   0x2   : > { %p225_p1 = scmp.lt.s32.totalorder %s1277_s21, 3 }
   0x4   : > { %p226_p2 = pnand %p1177_p0, %p225_p1 }
   0x5   : > { %p264_p3 = scmp.lt.s32.totalorder (!%p226_p2), %s1173_s22, 1  ;;  %s1279_s30 = smov (!%p226_p2), 1  }
   0x6   : > { %229 = sbr.rel (%p226_p2) target bundleno = 910 (0x38e), region = 36  ;;  %s1280_s7 = smov (!%p226_p2), 127  }
   0x7   : > { %s1284_s10 = smov (!%p226_p2), 126   ;;  %s1285_s11 = smov (!%p226_p2), 2  }
   0xb   : > { %s1447_s22 = smov (!%p264_p3, %s1173_s22), 1  ;;  %vm288_vm0 = vcmask 72712   ;;  %vm290_vm1 = vcmask 65544   ;;  %vm292_vm2 = vcmask 72719   ;;  %vm304_vm3 = vcmask 7168   ;;  %v461_v51 = vld [vmem:[%s1438_s3] sm:$0xff] }
   0xc   : > { %s1178_s23 = sshll.u32 %s1447_s22, 3  ;;  %vm306_vm4 = vcmask 1024   ;;  %v1281_v17 = vmov 0.0   ;;  %vm1282_vm5 = vmmov 0   ;;  %vm433_vm6 = vcmask 64512   ;;  %s1180_s14 = sshll.u32 %s1447_s22, 2 }
   0xd   : > { %s267_s26 = scalar_lea.vmem %s1435_s0, %s1178_s23  ;;  %s271_s29 = scalar_lea.vmem %s1436_s1, %s1178_s23  ;;  %1216 = vmatprep.subr.mxu0 %v1281_v17  ;;  %1218 = vmatprep.mubr.msk.f32.mxu0 %vm1282_vm5, %v1281_v17  ;;  %v460_v18 = vld [vmem:[%s1437_s2] sm:$0xf]  ;;  %vm318_vm8 = vcmask 80968   ;;  %vm320_vm11 = vcmask 74824   ;;  %v1283_v23 = vmov 1.0  }
   0xe   : > { %v283_v0 = vld [vmem:[%s267_s26] sm:$0xff]  ;;  %1221 = vmatprep.subr.mxu1 %v1281_v17  ;;  %1223 = vmatprep.mubr.msk.f32.mxu1 %vm1282_vm5, %v1281_v17  ;;  %s278_s17 = scalar_lea.vmem %s1440_s5, %s1180_s14  ;;  %s282_s20 = scalar_lea.vmem %s1441_s6, %s1180_s14 }
   0xf   : > { %285 = vrot.lane.b32.xlu0 %v283_v0, %s1279_s30  ;;  %v1339_v1 = vld [vmem:[%s271_s29] sm:$0xff]  ;;  %v462_v16 = vand.u32 2147483647, %v283_v0  ;;  %1222 = vmatpush3.msra.mxu1 %v461_v51  ;;  %s274_s25 = scalar_lea.vmem %s1439_s4, %s1447_s22 }
  0x10   : > { %v759_v20 = vand.u32 2147483647, %v1339_v1  ;;  %1231 = vmatprep.subr.mxu1 %v1281_v17 }
  0x11   : > { %vm1357_vm7 = vcmp.lt.f32.partialorder %v462_v16, inf }
  0x12   : > { %1217 = vmatpush3.msk.msra.mxu0 %vm1357_vm7, %v283_v0  ;;  %vm1187_vm9 = vmneg %vm1357_vm7  ;;  %vm1373_vm10 = vcmp.lt.f32.partialorder %v759_v20, inf }
  0x13   : > { %349 = vrot.lane.b32.xlu0 %v1339_v1, %s1279_s30  ;;  %1219 = vmatmul.mubr.msk.f32.vlgmr.msra.gmra.mxu0 %vm433_vm6, %v460_v18  ;;  %vm1194_vm12 = vmneg %vm1373_vm10 }
  0x14   : > { %1226 = vmatprep.subr.mxu0 %v1281_v17  ;;  %1228 = vmatprep.mubr.msk.f32.mxu0 %vm1282_vm5, %v1281_v17 }
  0x15   : > { %1227 = vmatpush3.msk.msra.mxu0 %vm1187_vm9, %v1283_v23 }
  0x16   : > { %1236 = vmatprep.subr.mxu0 %v1281_v17 }
  0x17   : > { %1229 = vmatmul.mubr.msk.f32.vlgmr.msra.gmra.mxu0 %vm433_vm6, %v460_v18 }
  0x18   : > { %1237 = vmatpush3.msk.msra.mxu0 %vm1373_vm10, %v1339_v1  ;;  %1238 = vmatprep.mubr.msk.f32.mxu0 %vm1282_vm5, %v1281_v17 }
  0x19   : > { %1246 = vmatprep.subr.mxu0 %v1281_v17 }
  0x1b   : > { %1239 = vmatmul.mubr.msk.f32.vlgmr.msra.gmra.mxu0 %vm433_vm6, %v460_v18 }
  0x1c   : > { %1247 = vmatpush3.msk.msra.mxu0 %vm1194_vm12, %v1283_v23  ;;  %1248 = vmatprep.mubr.msk.f32.mxu0 %vm1282_vm5, %v1281_v17 }
  0x1f   : > { %1249 = vmatmul.mubr.msk.f32.vlgmr.msra.gmra.mxu0 %vm433_vm6, %v460_v18 }
  0x81   : > { %v286_v2 = vpop.permute.xlu0 %285 }
  0x82   : > { %289 = vst.msk [vmem:[#allocation2 + $0x1] sm:$0xff] %vm288_vm0, %v286_v2 }
  0x83   : > { %291 = vst.msk [vmem:[#allocation2] sm:$0x1] %vm290_vm1, %v286_v2 }
  0x84   : > { %293 = vst.msk [vmem:[#allocation2 + $0x2] sm:$0x80] %vm292_vm2, %v286_v2 }
  0x85   : > { %v350_v3 = vpop.permute.xlu0 %349 }
  0x86   : > { %353 = vst.msk [vmem:[#allocation2 + $0x11] sm:$0xff] %vm288_vm0, %v350_v3  ;;  %vm757_vm0 = vcmask 27648  }
  0x87   : > { %354 = vst.msk [vmem:[#allocation2 + $0x10] sm:$0x1] %vm290_vm1, %v350_v3 }
  0x88   : > { %355 = vst.msk [vmem:[#allocation2 + $0x12] sm:$0x80] %vm292_vm2, %v350_v3  ;;  %vm456_vm2 = vcmask 0  }
  0x8a   : > { %v294_v4 = vld [vmem:[#allocation2] sm:$0xff] }
  0x8b   : > { %298 = vrot.lane.b32.xlu1 %v294_v4, %s1280_s7  ;;  %v295_v5 = vld [vmem:[#allocation2 + $0x8] sm:$0x3] }
  0x8e   : > { %v356_v6 = vld [vmem:[#allocation2 + $0x10] sm:$0xff] }
  0x8f   : > { %300 = vrot.lane.b32.xlu1 %v295_v5, %s1280_s7  ;;  %360 = vrot.lane.b32.xlu0 %v356_v6, %s1280_s7  ;;  %v357_v7 = vld [vmem:[#allocation2 + $0x18] sm:$0x3] }
  0x93   : > { %362 = vrot.lane.b32.xlu1 %v357_v7, %s1280_s7 }
  0xd3   : > { %v535_v50 = vpop.f32.mrf.mxu0 }
  0xd4   : > { %1224 = vmatmul.mubr.msk.f32.vlgmr.msra.gmra.mxu1 %vm433_vm6, %v535_v50 }
  0xd5   : > { %v1220_v55 = vpop.f32.mrf.mxu0  ;;  %1232 = vmatpush3.msra.mxu1 %v461_v51  ;;  %1233 = vmatprep.mubr.msk.f32.mxu1 %vm1282_vm5, %v1281_v17 }
  0xd6   : > { %1241 = vmatprep.subr.mxu1 %v1281_v17 }
  0xd7   : > { %v678_v61 = vpop.f32.mrf.mxu0 }
  0xd8   : > { %1234 = vmatmul.mubr.msk.f32.vlgmr.msra.gmra.mxu1 %vm433_vm6, %v678_v61 }
  0xd9   : > { %v1230_v62 = vpop.f32.mrf.mxu0  ;;  %1242 = vmatpush3.msra.mxu1 %v461_v51  ;;  %1243 = vmatprep.mubr.msk.f32.mxu1 %vm1282_vm5, %v1281_v17 }
  0xda   : > { %1251 = vmatprep.subr.mxu1 %v1281_v17 }
  0xdb   : > { %v829_v63 = vpop.f32.mrf.mxu0 }
  0xdc   : > { %1244 = vmatmul.mubr.msk.f32.vlgmr.msra.gmra.mxu1 %vm433_vm6, %v829_v63 }
  0xdd   : > { %v1240_v0 = vpop.f32.mrf.mxu0  ;;  %1252 = vmatpush3.msra.mxu1 %v461_v51  ;;  %1253 = vmatprep.mubr.msk.f32.mxu1 %vm1282_vm5, %v1281_v17 }
  0xdf   : > { %v972_v1 = vpop.f32.mrf.mxu0 }
  0xe0   : > { %1254 = vmatmul.mubr.msk.f32.vlgmr.msra.gmra.mxu1 %vm433_vm6, %v972_v1 }
  0xe1   : > { %v1250_v2 = vpop.f32.mrf.mxu0 }
  0xfd   : > { %v299_v8 = vpop.permute.xlu1 %298 }
  0xfe   : > { %305 = vst.msk [vmem:[#allocation2] sm:$0xff] %vm304_vm3, %v299_v8 }
 0x101   : > { %v301_v9 = vpop.permute.xlu1 %300  ;;  %v361_v10 = vpop.permute.xlu0 %360 }
 0x102   : > { %307 = vst.msk [vmem:[#allocation2 + $0x8] sm:$0x3] %vm306_vm4, %v301_v9 }
 0x103   : > { %366 = vst.msk [vmem:[#allocation2 + $0x10] sm:$0xff] %vm304_vm3, %v361_v10  ;;  %vm458_vm3 = vcmask 8200  }
 0x105   : > { %v363_v11 = vpop.permute.xlu1 %362  ;;  %v308_v12 = vld [vmem:[#allocation2] sm:$0xff] }
 0x106   : > { %367 = vst.msk [vmem:[#allocation2 + $0x18] sm:$0x3] %vm306_vm4, %v363_v11  ;;  %312 = vrot.lane.b32.xlu0 %v308_v12, %s1279_s30 }
 0x109   : > { %v309_v13 = vld [vmem:[#allocation2 + $0x8] sm:$0x3] }
 0x10a   : > { %v368_v14 = vld [vmem:[#allocation2 + $0x10] sm:$0xff]  ;;  %314 = vrot.lane.b32.xlu1 %v309_v13, %s1279_s30 }
 0x10b   : > { %372 = vrot.lane.b32.xlu0 %v368_v14, %s1279_s30 }
 0x10d   : > { %v369_v15 = vld [vmem:[#allocation2 + $0x18] sm:$0x3] }
 0x10e   : > { %374 = vrot.lane.b32.xlu1 %v369_v15, %s1279_s30 }
 0x178   : > { %v313_v21 = vpop.permute.xlu0 %312 }
 0x179   : > { %319 = vst.msk [vmem:[#allocation2] sm:$0xff] %vm318_vm8, %v313_v21 }
 0x17c   : > { %v315_v24 = vpop.permute.xlu1 %314 }
 0x17d   : > { %v373_v25 = vpop.permute.xlu0 %372  ;;  %321 = vst.msk [vmem:[#allocation2 + $0x8] sm:$0x3] %vm320_vm11, %v315_v24 }
 0x17e   : > { %378 = vst.msk [vmem:[#allocation2 + $0x10] sm:$0xff] %vm318_vm8, %v373_v25 }
 0x180   : > { %v375_v26 = vpop.permute.xlu1 %374  ;;  %v322_v27 = vld [vmem:[#allocation2] sm:$0xff] }
 0x181   : > { %379 = vst.msk [vmem:[#allocation2 + $0x18] sm:$0x3] %vm320_vm11, %v375_v26 }
 0x184   : > { %v324_v28 = vld [vmem:[#allocation2 + $0x2] sm:$0xff] }
 0x185   : > { %v323_v29 = vld [vmem:[#allocation2 + $0x1] sm:$0xff]  ;;  %v328_v30 = vsub.f32 %v324_v28, %v322_v27  ;;  %v380_v31 = vld [vmem:[#allocation2 + $0x10] sm:$0xff] }
 0x186   : > { %v325_v33 = vmul.f32 2.0, %v323_v29 }
 0x187   : > { %v335_v32 = vmul.f32 2.0, %v328_v30 }
 0x188   : > { %v382_v34 = vld [vmem:[#allocation2 + $0x12] sm:$0xff]  ;;  %v326_v38 = vadd.f32 %v325_v33, %v322_v27 }
 0x189   : > { %v381_v35 = vld [vmem:[#allocation2 + $0x11] sm:$0xff]  ;;  %337 = vrot.lane.b32.xlu0 %v335_v32, %s1280_s7  ;;  %v386_v36 = vsub.f32 %v382_v34, %v380_v31 }
 0x18a   : > { %v383_v39 = vmul.f32 2.0, %v381_v35  ;;  %v327_v40 = vadd.f32 %v326_v38, %v324_v28 }
 0x18b   : > { %v393_v37 = vmul.f32 2.0, %v386_v36 }
 0x18c   : > { %v384_v41 = vadd.f32 %v383_v39, %v380_v31 }
 0x18d   : > { %342 = vrot.lane.b32.xlu0 %v328_v30, %s1284_s10  ;;  %395 = vrot.lane.b32.xlu1 %v393_v37, %s1280_s7 }
 0x18e   : > { %v385_v42 = vadd.f32 %v384_v41, %v382_v34 }
 0x191   : > { %330 = vrot.lane.b32.xlu0 %v327_v40, %s1285_s11  ;;  %400 = vrot.lane.b32.xlu1 %v386_v36, %s1284_s10 }
 0x194   : > { %v608_v19 = vpop.f32.mrf.mxu1 }
 0x195   : > { %388 = vrot.lane.b32.xlu1 %v385_v42, %s1285_s11 }
 0x196   : > { %v1225_v20 = vpop.f32.mrf.mxu1 }
 0x1fb   : > { %v338_v43 = vpop.permute.xlu0 %337 }
 0x1fc   : > { %v340_v44 = vadd.f32 %v338_v43, %v328_v30 }
 0x1ff   : > { %v396_v45 = vpop.permute.xlu1 %395  ;;  %v343_v46 = vpop.permute.xlu0 %342 }
 0x200   : > { %v345_v47 = vadd.f32 %v343_v46, %v340_v44  ;;  %v398_v48 = vadd.f32 %v396_v45, %v386_v36 }
 0x202   : > { %v346_v49 = vmul.f32 0.125, %v345_v47 }
 0x203   : > { %v401_v52 = vpop.permute.xlu1 %400  ;;  %v331_v3 = vpop.permute.xlu0 %330 }
 0x204   : > { %v407_v53 = vand.u32 2147483647, %v346_v49  ;;  %v403_v54 = vadd.f32 %v401_v52, %v398_v48  ;;  %v333_v4 = vsub.f32 %v327_v40, %v331_v3 }
 0x206   : > { %v404_v56 = vmul.f32 0.125, %v403_v54  ;;  %vm408_vm13 = vcmp.lt.f32.partialorder %v407_v53, inf  ;;  %v334_v6 = vmul.f32 0.125, %v333_v4 }
 0x207   : > { %v1183_v57 = vsel %vm408_vm13, 1.0, %v1281_v17  ;;  %v389_v5 = vpop.permute.xlu1 %388 }
 0x208   : > { %v412_v58 = vsub.f32 %v404_v56, %v346_v49  ;;  %425 = vrot.lane.b32.xlu1 %v1183_v57, %s1285_s11  ;;  %v391_v7 = vsub.f32 %v385_v42, %v389_v5  ;;  %v405_v9 = vand.u32 2147483647, %v334_v6 }
 0x20a   : > { %v413_v59 = vand.u32 2147483647, %v412_v58  ;;  %v392_v8 = vmul.f32 0.125, %v391_v7  ;;  %vm406_vm14 = vcmp.lt.f32.partialorder %v405_v9, inf }
 0x20b   : > { %v1182_v12 = vsel %vm406_vm14, 1.0, %v1281_v17  ;;  %v751_v17 = vpop.f32.mrf.mxu1 }
 0x20c   : > { %v414_v60 = vsel %vm408_vm13, %v413_v59, 0.0  ;;  %v409_v10 = vsub.f32 %v392_v8, %v334_v6  ;;  %vm755_vm15 = vcmp.gt.f32.partialorder %v751_v17, 0.0 }
 0x20d   : > { %416 = vrot.lane.b32.xlu0 %v414_v60, %s1285_s11  ;;  %v756_v25 = vsel %vm755_vm15, nan, %v608_v19  ;;  %v1235_v26 = vpop.f32.mrf.mxu1 }
 0x20e   : > { %v410_v14 = vand.u32 2147483647, %v409_v10  ;;  %758 = vst.msk [vmem:[%s278_s17] sm:$0xf] %vm757_vm0, %v756_v25 }
 0x20f   : > { %v902_v27 = vpop.f32.mrf.mxu1 }
 0x210   : > { %v411_v15 = vsel %vm406_vm14, %v410_v14, 0.0 }
 0x211   : > { %v1245_v28 = vpop.f32.mrf.mxu1 }
 0x213   : > { %v1045_v29 = vpop.f32.mrf.mxu1 }
 0x214   : > { %vm1049_vm1 = vcmp.gt.f32.partialorder %v1045_v29, 0.0 }
 0x215   : > { %v1050_v30 = vsel %vm1049_vm1, nan, %v902_v27  ;;  %v1255_v31 = vpop.f32.mrf.mxu1 }
 0x216   : > { %1051 = vst.msk [vmem:[%s282_s20] sm:$0xf] %vm757_vm0, %v1050_v30 }
 0x27a   : > { %v426_v11 = vpop.permute.xlu1 %425 }
 0x27b   : > { %v428_v13 = vadd.f32 %v1182_v12, %v426_v11 }
 0x27d   : > { %444 = vrot.lane.b32.xlu1 %v428_v13, %s1284_s10 }
 0x27f   : > { %v417_v16 = vpop.permute.xlu0 %416 }
 0x280   : > { %v419_v18 = vadd.f32 %v417_v16, %v411_v15 }
 0x282   : > { %430 = vrot.lane.b32.xlu0 %v419_v18, %s1284_s10 }
 0x2ef   : > { %v445_v21 = vpop.permute.xlu1 %444 }
 0x2f0   : > { %v447_v22 = vsel %vm433_vm6, %v445_v21, 0.0 }
 0x2f1   : > { %448 = vadd.xlane.f32.xlu1 %v447_v22 }
 0x2f4   : > { %v431_v23 = vpop.permute.xlu0 %430 }
 0x2f5   : > { %v434_v24 = vsel %vm433_vm6, %v431_v23, 0.0 }
 0x2f6   : > { %435 = vadd.xlane.f32.xlu0 %v434_v24 }
 0x37a   : > { %v449_v32 = vpop.xlane.xlu1 %448 }
 0x37b   : > { %v450_v33 = vrot.slane %v449_v32, 4 }
 0x37d   : > { %v451_v34 = vadd.f32 %v450_v33, %v449_v32 }
 0x37f   : > { %v452_v35 = vrot.slane %v451_v34, 2  ;;  %v436_v36 = vpop.xlane.xlu0 %435 }
 0x380   : > { %v437_v37 = vrot.slane %v436_v36, 4 }
 0x381   : > { %v453_v39 = vadd.f32 %v452_v35, %v451_v34 }
 0x382   : > { %v438_v38 = vadd.f32 %v437_v37, %v436_v36 }
 0x383   : > { %v454_v42 = vrot.slane %v453_v39, 1 }
 0x384   : > { %v439_v40 = vrot.slane %v438_v38, 2 }
 0x385   : > { %v455_v45 = vadd.f32 %v454_v42, %v453_v39 }
 0x386   : > { %v440_v41 = vadd.f32 %v439_v40, %v438_v38 }
 0x388   : > { %v441_v43 = vrot.slane %v440_v41, 1 }
 0x38a   : > { %v442_v44 = vadd.f32 %v441_v43, %v440_v41 }
 0x38c   : > { %457 = vst.msk [vmem:[%s274_s25] sm:$0x1] %vm456_vm2, %v442_v44 }
 0x38d   : > { %459 = vst.msk [vmem:[%s274_s25] sm:$0x1] %vm458_vm3, %v455_v45 }
 0x38e PF: > { %s17_s21 = sadd.s32 1, %s1277_s21  }
 0x38f   : > { %p14_p4 = scmp.ge.s32.totalorder %s17_s21, 4  }
 0x391   :  { %16 = sbr.rel (!%p14_p4) target bundleno = 1 (0x1), region = 94 }

// kernel: ms_gradient_loss.4
= control target key start
LH: loop header
LB: loop body
LE: loop exit
PB: predicated region body
PF: predicated region fallthrough
CT: control target
= control target key end

     0   :  { %12 = vsyncpa [#allocation4], 0  ;;  %s2838_s0 = inlined_call_operand.hbm [shape: f32[2,32,32], index: 0, kind: input, shape index: {}]   ;;  %s2839_s1 = inlined_call_operand.hbm [shape: f32[2,32,32], index: 1, kind: input, shape index: {}]   ;;  %s2840_s2 = inlined_call_operand.vmem [shape: f32[16,32], index: 2, kind: input, shape index: {}]   ;;  %s2841_s3 = inlined_call_operand.hbm [shape: f32[32,16], index: 3, kind: input, shape index: {}]   ;;  %s2842_s4 = inlined_call_operand.vmem [shape: f32[2,1,2], index: 4, kind: output, shape index: {0}]   ;;  %s2843_s5 = inlined_call_operand.vmem [shape: f32[2,16,16], index: 5, kind: output, shape index: {1}]   ;;  %s2844_s6 = inlined_call_operand.vmem [shape: f32[2,16,16], index: 6, kind: output, shape index: {2}]  }
   0x1   :  { %14 = vsyncpa [#allocation4 + $0x1], 0 }
   0x2   :  { %15 = vsyncpa [#allocation6], 0 }
   0x3   :  { %17 = vsyncpa [#allocation6 + $0x1], 0  ;;  %s2190_s21 = smov 0   ;;  %s2192_s22 = smov 0  }
   0x4   :  { %s2194_s23 = smov 0   ;;  %s2196_s24 = smov 0  }
   0x5 LB: > { %s2209_s25 = sadd.s32 4294967295, %s2142_s24   ;;  %p43_p0 = scmp.ne.s32.totalorder %s2134_s22, %s2130_s21  ;;  %s2142_s24 = sphi %s2196_s24, %s2884_s24   ;;  %s2138_s23 = sphi %s2194_s23, %s2883_s23   ;;  %s2134_s22 = sphi %s2192_s22, %s2882_s22   ;;  %s2130_s21 = sphi %s2190_s21, %s2881_s21  }
   0x6   : > { %p2847_p1 = scmp.eq.s32.totalorder %s2209_s25, 0  ;;  %p1741_p2 = scmp.ge.s32.totalorder %s2142_s24, 1 }
   0x7   : > { %p200_p3 = scmp.lt.s32.totalorder %s2142_s24, 3  ;;  %s2144_s28 = smov [#allocation7]  }
   0x8   : > { %p2217_p4 = por %p2847_p1, %p43_p0  ;;  %s215_s29 = sshll.u32 %s2144_s28, 4  ;;  %s216_s29 = int_to_ptr.vmem [resolvable:$true] %s215_s29 }
   0x9   : > { %p2221_p5 = pnand %p1741_p2, %p200_p3  ;;  %s2234_s7 = sadd.s32 1, %s2142_s24  }
   0xa   : > { %s2849_s26 = scalar_select %p2217_p4, 1, 0 }
   0xb   : > { %p1956_p6 = pneg %p2221_p5  ;;  %s30_s8 = sadd.s32 1, %s2138_s23 }
   0xc   : > { %s27_s9 = ssub.s32 %s2142_s24, %s2234_s7  ;;  %s2029_s10 = scalar_lea.vmem %s216_s29, 512 }
   0xd   : > { %p2229_p7 = pnand %p1956_p6, %p2847_p1  ;;  %p2030_p9 = scmp.ne.s32.totalorder %s216_s29, %s2029_s10 }
   0xe   : > { %p2037_p12 = scmp.lt.s32.totalorder %s216_s29, %s216_s29  ;;  %p2038_p13 = scmp.lt.s32.totalorder %s2029_s10, %s2029_s10 }
   0xf   : > { %p2020_p8 = pneg %p2229_p7 }
  0x10   : > { %p2039_p0 = por %p2038_p13, %p2037_p12 }
  0x11   : > { %p2032_p10 = pnand %p2030_p9, %p2020_p8 }
  0x13   : > { %p2033_p11 = pneg %p2032_p10 }
  0x15   : > { %p2040_p2 = pnand %p2039_p0, %p2033_p11 }
  0x17   : > { %2043 = shalt.err (!%p2040_p2)
}
  0x18   : > { %s2845_s11 = smov 128   ;;  %s2146_s12 = smov 8  }
  0x19   : > { %1959 = dma.hbm_to_vmem [thread:$0]  (!%p2229_p7), %s2841_s3, 512, %s216_s29, [#allocation6], %s2845_s11, %s2845_s11, %s2146_s12  }
  0x1a   : > { %p28_p3 = scmp.eq.s32.totalorder %s27_s9, 0  ;;  %p37_p6 = scmp.ne.s32.totalorder %s2138_s23, %s2134_s22 }
  0x1b   : > { %p38_p8 = scmp.eq.s32.totalorder %s2142_s24, 0  ;;  %p1968_p9 = scmp.lt.s32.totalorder %s2142_s24, 2 }
  0x1c   : > { %s2254_s15 = scalar_select %p28_p3, %s2138_s23, %s30_s8  }
  0x1d   : > { %p39_p10 = por %p38_p8, %p37_p6  ;;  %s229_s16 = sand.u32 1, %s2138_s23  }
  0x1e   : > { %s1744_s17 = sshll.u32 %s229_s16, 5  ;;  %s1808_s18 = sshll.u32 %s2142_s24, 9 }
  0x1f   : > { %s2261_s21 = scalar_lea.hbm %s2838_s0, %s1808_s18  ;;  %s233_s28 = scalar_lea.vmem [#allocation3], %s1744_s17 }
  0x20   : > { %s240_s29 = sshll.u32 %s233_s28, 4  ;;  %p2265_p7 = pnand %p1968_p9, %p39_p10  ;;  %s2263_s29 = int_to_ptr.vmem [resolvable:$true] %s240_s29 }
  0x21   : > { %s2272_s10 = scalar_lea.hbm %s2839_s1, %s1808_s18  ;;  %s254_s13 = scalar_lea.vmem [#allocation5], %s1744_s17 }
  0x22   : > { %s2274_s14 = sshll.u32 %s254_s13, 4  ;;  %s2276_s19 = scalar_lea.sflag [#allocation4], %s229_s16  ;;  %s2307_s14 = int_to_ptr.vmem [resolvable:$true] %s2274_s14 }
  0x23   : > { %s2044_s20 = scalar_lea.hbm %s2261_s21, 512  ;;  %p2046_p12 = pneg %p2265_p7 }
  0x24   : > { %p2045_p11 = scmp.ne.s32.totalorder %s2261_s21, %s2044_s20  ;;  %s2049_s8 = scalar_lea.hbm %s2838_s0, 1024 }
  0x25   : > { %p2050_p2 = scmp.lt.s32.totalorder %s2261_s21, %s2838_s0  ;;  %p2051_p3 = scmp.lt.s32.totalorder %s2049_s8, %s2044_s20 }
  0x26   : > { %p2047_p13 = pnand %p2046_p12, %p2045_p11 }
  0x27   : > { %p2052_p6 = por %p2051_p3, %p2050_p2 }
  0x28   : > { %p2048_p0 = pneg %p2047_p13 }
  0x2a   : > { %p2053_p8 = pnand %p2052_p6, %p2048_p0 }
  0x2c   : > { %2056 = shalt.err (!%p2053_p8)
}
  0x2d   : > { %s2057_s16 = scalar_lea.vmem %s2263_s29, 512  ;;  %s2147_s11 = smov [#allocation3]  }
  0x2e   : > { %p2058_p9 = scmp.ne.s32.totalorder %s2263_s29, %s2057_s16  ;;  %s2062_s17 = sshll.u32 %s2147_s11, 4  ;;  %s2063_s17 = int_to_ptr.vmem [resolvable:$false] %s2062_s17 }
  0x2f   : > { %s2064_s13 = scalar_lea.vmem %s2063_s17, 1024  ;;  %p2065_p13 = scmp.lt.s32.totalorder %s2263_s29, %s2063_s17 }
  0x30   : > { %p2060_p10 = pnand %p2058_p9, %p2046_p12  ;;  %p2066_p1 = scmp.lt.s32.totalorder %s2064_s13, %s2057_s16 }
  0x32   : > { %p2061_p11 = pneg %p2060_p10  ;;  %p2067_p4 = por %p2066_p1, %p2065_p13 }
  0x34   : > { %p2068_p2 = pnand %p2067_p4, %p2061_p11 }
  0x36   : > { %2071 = shalt.err (!%p2068_p2)
}
  0x37   : > { %s2853_s20 = smov 128   ;;  %s250_s28 = sand.u32 1, %s2142_s24  }
  0x38   : > { %1963 = dma.hbm_to_vmem [thread:$0]  (!%p2265_p7), %s2261_s21, 512, %s2263_s29, %s2276_s19, %s2853_s20, %s2853_s20, %s2146_s12  }
  0x39   : > { %s251_s8 = scalar_lea.sflag [#allocation6], %s250_s28  ;;  %s2072_s9 = scalar_lea.hbm %s2272_s10, 512 }
  0x3a   : > { %p2073_p1 = scmp.ne.s32.totalorder %s2272_s10, %s2072_s9  ;;  %s2077_s11 = scalar_lea.hbm %s2839_s1, 1024 }
  0x3b   : > { %p2078_p3 = scmp.lt.s32.totalorder %s2272_s10, %s2839_s1  ;;  %p2079_p6 = scmp.lt.s32.totalorder %s2077_s11, %s2072_s9 }
  0x3c   : > { %p2075_p4 = pnand %p2073_p1, %p2046_p12 }
  0x3d   : > { %p2080_p8 = por %p2079_p6, %p2078_p3 }
  0x3e   : > { %p2076_p0 = pneg %p2075_p4 }
  0x40   : > { %p2081_p9 = pnand %p2080_p8, %p2076_p0 }
  0x42   : > { %2084 = shalt.err (!%p2081_p9)
}
  0x43   : > { %s2085_s24 = scalar_lea.vmem %s2307_s14, 512  ;;  %s2148_s21 = smov [#allocation5]  }
  0x44   : > { %p2086_p10 = scmp.ne.s32.totalorder %s2307_s14, %s2085_s24  ;;  %s2090_s29 = sshll.u32 %s2148_s21, 4  ;;  %s2091_s29 = int_to_ptr.vmem [resolvable:$false] %s2090_s29 }
  0x45   : > { %s2092_s19 = scalar_lea.vmem %s2091_s29, 1024  ;;  %p2093_p2 = scmp.lt.s32.totalorder %s2307_s14, %s2091_s29 }
  0x46   : > { %p2088_p11 = pnand %p2086_p10, %p2046_p12  ;;  %p2094_p1 = scmp.lt.s32.totalorder %s2092_s19, %s2085_s24 }
  0x48   : > { %p2089_p13 = pneg %p2088_p11  ;;  %p2095_p4 = por %p2094_p1, %p2093_p2 }
  0x4a   : > { %p2096_p3 = pnand %p2095_p4, %p2089_p13 }
  0x4c   : > { %2099 = shalt.err (!%p2096_p3)
}
  0x4d   : > { %1966 = dma.hbm_to_vmem [thread:$0]  (!%p2265_p7), %s2272_s10, 512, %s2307_s14, %s251_s8, %s2853_s20, %s2853_s20, %s2146_s12  }
  0x4e   : > { %273 = sbr.rel (%p2221_p5) target bundleno = 1012 (0x3f4), region = 36  ;;  %s275_s28 = sand.u32 (!%p2221_p5), 1, %s2134_s22  }
  0x4f   : > { %s1751_s9 = sshll.u32 (!%p2221_p5), %s275_s28, 5  ;;  %s276_s18 = scalar_lea.sflag (!%p2221_p5), [#allocation4], %s275_s28 }
  0x50   : > { %s279_s16 = scalar_lea.vmem (!%p2221_p5), [#allocation3], %s1751_s9  ;;  %p2854_p12 = scmp.ne.s32.totalorder (!%p2221_p5), %s2849_s26, 0 }
  0x53   : > { %2117 = dma.done.wait (%p2854_p12), %s276_s18, 512  }
  0x54   : > { %2119 = vsyncadd (%p2854_p12), %s276_s18, 4294966784  ;;  %s284_s30 = sand.u32 1, %s2209_s25   ;;  %s288_s17 = scalar_lea.vmem [#allocation5], %s1751_s9 }
  0x55   : > { %s285_s11 = scalar_lea.sflag [#allocation6], %s284_s30 }
  0x56   : > { %2121 = dma.done.wait (%p2854_p12), %s285_s11, 512  }
  0x57   : > { %2123 = vsyncadd (%p2854_p12), %s285_s11, 4294966784  ;;  %p2855_p5 = scmp.eq.s32.totalorder %s2209_s25, 0 }
  0x59   : > { %2125 = dma.done.wait (%p2855_p5), [#allocation6], 512   ;;  %p2856_p7 = pmov %p2855_p5 }
  0x5a   : > { %v2351_v0 = vld [vmem:[%s279_s16 + $0x10] sm:$0xff]  ;;  %v2353_v1 = vld [vmem:[%s279_s16] sm:$0xff]  ;;  %s2149_s27 = smov 1   ;;  %v2361_v3 = vld [vmem:[%s279_s16 + $0x8] sm:$0xff]  ;;  %vm367_vm0 = vcmask 269320   ;;  %vm372_vm1 = vcmask 262152  }
  0x5b   : > { %2127 = vsyncadd (%p2856_p7), [#allocation6], 4294966784  ;;  %359 = vrot.lane.b32.xlu1 %v2351_v0, %s2149_s27  ;;  %355 = vrot.lane.b32.xlu0 %v2353_v1, %s2149_s27  ;;  %v2359_v2 = vld [vmem:[%s288_s17] sm:$0xff]  ;;  %v2367_v4 = vld [vmem:[%s288_s17 + $0x10] sm:$0xff]  ;;  %s2150_s26 = smov 127   ;;  %vm374_vm2 = vcmask 269327  }
  0x5c   : > { %v2369_v5 = vld [vmem:[%s288_s17 + $0x8] sm:$0xff]  ;;  %v2375_v6 = vld [vmem:[%s288_s17 + $0x18] sm:$0xff]  ;;  %vm401_vm3 = vcmask 7168   ;;  %vm406_vm4 = vcmask 1024   ;;  %v910_v47 = vand.u32 2147483647, %v2351_v0 }
  0x5d   : > { %v2377_v7 = vld [vmem:[%s279_s16 + $0x18] sm:$0xff]  ;;  %v909_v48 = vand.u32 2147483647, %v2361_v3  ;;  %vm433_vm8 = vcmask 277768   ;;  %v908_v53 = vand.u32 2147483647, %v2353_v1 }
  0x5e   : > { %v911_v46 = vand.u32 2147483647, %v2377_v7  ;;  %vm2426_vm6 = vcmp.lt.f32.partialorder %v910_v47, inf  ;;  %vm839_vm9 = vcmask 261120   ;;  %v2457_v54 = vld [vmem:[%s2840_s2] sm:$0xff]  ;;  %v2151_v58 = vmov 1.0  }
  0x5f   : > { %548 = vrot.lane.b32.xlu1 %v2359_v2, %s2149_s27  ;;  %357 = vrot.lane.b32.xlu0 %v2361_v3, %s2149_s27  ;;  %vm2436_vm7 = vcmp.lt.f32.partialorder %v909_v48, inf  ;;  %vm2459_vm10 = vcmp.lt.f32.partialorder %v908_v53, inf  ;;  %v2479_v59 = vld [vmem:[%s2840_s2 + $0x8] sm:$0xff]  ;;  %vm1776_vm12 = vmneg %vm2426_vm6  ;;  %v1252_v62 = vand.u32 2147483647, %v2375_v6  ;;  %s2152_s8 = smov 126  }
  0x60   : > { %vm2422_vm5 = vcmp.lt.f32.partialorder %v911_v46, inf  ;;  %1868 = vmatprep.mubr.msk.f32.mxu0 %vm839_vm9, %v2457_v54  ;;  %vm1778_vm13 = vmneg %vm2436_vm7  ;;  %s2153_s13 = smov 2   ;;  %p334_p0 = scmp.lt.s32.totalorder %s2209_s25, 1 }
  0x61   : > { %1860 = vmatprep.subr.msk.mxu0 %vm2422_vm5, %v2377_v7  ;;  %vm1774_vm11 = vmneg %vm2422_vm5  ;;  %vm2511_vm15 = vcmp.lt.f32.partialorder %v1252_v62, inf }
  0x62   : > { %1861 = vmatpush3.msk.msra.mxu0 %vm2422_vm5, %v2377_v7  ;;  %vm1780_vm14 = vmneg %vm2459_vm10  ;;  %s2886_s25 = smov (!%p334_p0, %s2209_s25), 1 }
  0x63   : > { %552 = vrot.lane.b32.xlu1 %v2367_v4, %s2149_s27  ;;  %550 = vrot.lane.b32.xlu0 %v2369_v5, %s2149_s27  ;;  %s1810_s24 = sshll.u32 %s2886_s25, 4  ;;  %s336_s11 = scalar_lea.vmem %s2842_s4, %s2886_s25 }
  0x64   : > { %1862 = vmatprep.subr.msk.mxu0 %vm2426_vm6, %v2351_v0  ;;  %s341_s19 = scalar_lea.vmem %s2843_s5, %s1810_s24  ;;  %s346_s18 = scalar_lea.vmem %s2844_s6, %s1810_s24 }
  0x65   : > { %1863 = vmatpush3.msk.msra.mxu0 %vm2426_vm6, %v2351_v0 }
  0x66   : > { %1864 = vmatprep.subr.msk.mxu0 %vm2436_vm7, %v2361_v3 }
  0x67   : > { %554 = vrot.lane.b32.xlu1 %v2375_v6, %s2149_s27  ;;  %361 = vrot.lane.b32.xlu0 %v2377_v7, %s2149_s27 }
  0x68   : > { %1865 = vmatpush3.msk.msra.mxu0 %vm2436_vm7, %v2361_v3 }
  0x69   : > { %1866 = vmatprep.subr.msk.mxu0 %vm2459_vm10, %v2353_v1 }
  0x6a   : > { %1867 = vmatpush3.msk.msra.mxu0 %vm2459_vm10, %v2353_v1 }
  0x6b   : > { %1882 = vmatprep.subr.msk.mxu0 %vm1774_vm11, %v2151_v58  ;;  %1869 = vmatmul.mubr.msk.f32.vlgmr.msra.gmra.mxu0 %vm839_vm9, %v2479_v59 }
  0x6c   : > { %1883 = vmatpush3.msk.msra.mxu0 %vm1774_vm11, %v2151_v58  ;;  %1890 = vmatprep.mubr.msk.f32.mxu0 %vm839_vm9, %v2457_v54 }
  0x6d   : > { %1884 = vmatprep.subr.msk.mxu0 %vm1776_vm12, %v2151_v58 }
  0x6e   : > { %1885 = vmatpush3.msk.msra.mxu0 %vm1776_vm12, %v2151_v58 }
  0x6f   : > { %1886 = vmatprep.subr.msk.mxu0 %vm1778_vm13, %v2151_v58 }
  0x70   : > { %1887 = vmatpush3.msk.msra.mxu0 %vm1778_vm13, %v2151_v58 }
  0x71   : > { %1888 = vmatprep.subr.msk.mxu0 %vm1780_vm14, %v2151_v58 }
  0x72   : > { %1889 = vmatpush3.msk.msra.mxu0 %vm1780_vm14, %v2151_v58 }
  0x73   : > { %1891 = vmatmul.mubr.msk.f32.vlgmr.msra.gmra.mxu0 %vm839_vm9, %v2479_v59  ;;  %1904 = vmatprep.subr.msk.mxu0 %vm2511_vm15, %v2375_v6 }
  0x74   : > { %1905 = vmatpush3.msk.msra.mxu0 %vm2511_vm15, %v2375_v6  ;;  %1912 = vmatprep.mubr.msk.f32.mxu0 %vm839_vm9, %v2457_v54 }
  0xcd   : > { %v360_v8 = vpop.permute.xlu1 %359  ;;  %v356_v9 = vpop.permute.xlu0 %355 }
  0xce   : > { %370 = vst.msk [vmem:[#allocation2 + $0x11] sm:$0xff] %vm367_vm0, %v360_v8  ;;  %368 = vst.msk [vmem:[#allocation2 + $0x1] sm:$0xff] %vm367_vm0, %v356_v9 }
  0xcf   : > { %373 = vst.msk [vmem:[#allocation2] sm:$0x1] %vm372_vm1, %v356_v9 }
  0xd1   : > { %v549_v10 = vpop.permute.xlu1 %548  ;;  %v358_v11 = vpop.permute.xlu0 %357 }
  0xd2   : > { %561 = vst.msk [vmem:[#allocation2 + $0x29] sm:$0xff] %vm367_vm0, %v549_v10  ;;  %369 = vst.msk [vmem:[#allocation2 + $0x9] sm:$0xff] %vm367_vm0, %v358_v11 }
  0xd3   : > { %565 = vst.msk [vmem:[#allocation2 + $0x28] sm:$0x1] %vm372_vm1, %v549_v10  ;;  %v1251_v10 = vand.u32 2147483647, %v2367_v4 }
  0xd5   : > { %v553_v12 = vpop.permute.xlu1 %552  ;;  %v551_v13 = vpop.permute.xlu0 %550  ;;  %vm2535_vm1 = vcmp.lt.f32.partialorder %v1251_v10, inf }
  0xd6   : > { %v376_v14 = vld [vmem:[#allocation2] sm:$0xff]  ;;  %563 = vst.msk [vmem:[#allocation2 + $0x39] sm:$0xff] %vm367_vm0, %v553_v12  ;;  %562 = vst.msk [vmem:[#allocation2 + $0x31] sm:$0xff] %vm367_vm0, %v551_v13  ;;  %1906 = vmatprep.subr.msk.mxu0 %vm2535_vm1, %v2367_v4 }
  0xd7   : > { %386 = vrot.lane.b32.xlu0 %v376_v14, %s2150_s26  ;;  %v1250_v14 = vand.u32 2147483647, %v2369_v5  ;;  %1907 = vmatpush3.msk.msra.mxu0 %vm2535_vm1, %v2367_v4  ;;  %vm1796_vm5 = vmneg %vm2535_vm1  ;;  %vm1246_vm1 = vcmask 130048  }
  0xd9   : > { %v555_v15 = vpop.permute.xlu1 %554  ;;  %v362_v16 = vpop.permute.xlu0 %361  ;;  %v378_v17 = vld [vmem:[#allocation2 + $0x10] sm:$0xff]  ;;  %v377_v18 = vld [vmem:[#allocation2 + $0x8] sm:$0xff] }
  0xda   : > { %564 = vst.msk [vmem:[#allocation2 + $0x41] sm:$0xff] %vm367_vm0, %v555_v15  ;;  %371 = vst.msk [vmem:[#allocation2 + $0x19] sm:$0xff] %vm367_vm0, %v362_v16  ;;  %388 = vrot.lane.b32.xlu1 %v377_v18, %s2150_s26  ;;  %v567_v19 = vld [vmem:[#allocation2 + $0x28] sm:$0xff]  ;;  %vm438_vm0 = vcmask 271624  }
  0xdb   : > { %566 = vst.msk [vmem:[#allocation2 + $0x42] sm:$0x80] %vm374_vm2, %v555_v15  ;;  %375 = vst.msk [vmem:[#allocation2 + $0x1a] sm:$0x80] %vm374_vm2, %v362_v16  ;;  %390 = vrot.lane.b32.xlu0 %v378_v17, %s2150_s26  ;;  %vm2551_vm2 = vcmp.lt.f32.partialorder %v1250_v14, inf }
  0xdc   : > { %1908 = vmatprep.subr.msk.mxu0 %vm2551_vm2, %v2369_v5  ;;  %vm1798_vm6 = vmneg %vm2551_vm2 }
  0xdd   : > { %v568_v20 = vld [vmem:[#allocation2 + $0x30] sm:$0xff]  ;;  %v569_v21 = vld [vmem:[#allocation2 + $0x38] sm:$0xff]  ;;  %1909 = vmatpush3.msk.msra.mxu0 %vm2551_vm2, %v2369_v5 }
  0xde   : > { %577 = vrot.lane.b32.xlu1 %v567_v19, %s2150_s26 }
  0xdf   : > { %579 = vrot.lane.b32.xlu0 %v568_v20, %s2150_s26  ;;  %v1249_v20 = vand.u32 2147483647, %v2359_v2 }
  0xe1   : > { %v379_v22 = vld [vmem:[#allocation2 + $0x18] sm:$0xff]  ;;  %v570_v24 = vld [vmem:[#allocation2 + $0x40] sm:$0xff] }
  0xe2   : > { %581 = vrot.lane.b32.xlu1 %v569_v21, %s2150_s26  ;;  %v380_v23 = vld [vmem:[#allocation2 + $0x20] sm:$0x3]  ;;  %v571_v25 = vld [vmem:[#allocation2 + $0x48] sm:$0x3] }
  0xe3   : > { %392 = vrot.lane.b32.xlu0 %v379_v22, %s2150_s26 }
  0xe6   : > { %583 = vrot.lane.b32.xlu1 %v570_v24, %s2150_s26 }
  0xe7   : > { %394 = vrot.lane.b32.xlu0 %v380_v23, %s2150_s26 }
  0xea   : > { %585 = vrot.lane.b32.xlu1 %v571_v25, %s2150_s26 }
 0x149   : > { %v387_v26 = vpop.permute.xlu0 %386 }
 0x14a   : > { %402 = vst.msk [vmem:[#allocation2] sm:$0xff] %vm401_vm3, %v387_v26 }
 0x14c   : > { %v389_v27 = vpop.permute.xlu1 %388 }
 0x14d   : > { %v391_v28 = vpop.permute.xlu0 %390  ;;  %403 = vst.msk [vmem:[#allocation2 + $0x8] sm:$0xff] %vm401_vm3, %v389_v27 }
 0x14e   : > { %404 = vst.msk [vmem:[#allocation2 + $0x10] sm:$0xff] %vm401_vm3, %v391_v28 }
 0x150   : > { %v578_v29 = vpop.permute.xlu1 %577 }
 0x151   : > { %v580_v30 = vpop.permute.xlu0 %579  ;;  %v408_v31 = vld [vmem:[#allocation2] sm:$0xff]  ;;  %592 = vst.msk [vmem:[#allocation2 + $0x28] sm:$0xff] %vm401_vm3, %v578_v29 }
 0x152   : > { %593 = vst.msk [vmem:[#allocation2 + $0x30] sm:$0xff] %vm401_vm3, %v580_v30  ;;  %418 = vrot.lane.b32.xlu0 %v408_v31, %s2149_s27 }
 0x154   : > { %v582_v32 = vpop.permute.xlu1 %581  ;;  %v409_v34 = vld [vmem:[#allocation2 + $0x8] sm:$0xff] }
 0x155   : > { %v393_v33 = vpop.permute.xlu0 %392  ;;  %v410_v35 = vld [vmem:[#allocation2 + $0x10] sm:$0xff]  ;;  %594 = vst.msk [vmem:[#allocation2 + $0x38] sm:$0xff] %vm401_vm3, %v582_v32  ;;  %420 = vrot.lane.b32.xlu1 %v409_v34, %s2149_s27 }
 0x156   : > { %405 = vst.msk [vmem:[#allocation2 + $0x18] sm:$0xff] %vm401_vm3, %v393_v33  ;;  %422 = vrot.lane.b32.xlu0 %v410_v35, %s2149_s27 }
 0x158   : > { %v584_v36 = vpop.permute.xlu1 %583  ;;  %v597_v38 = vld [vmem:[#allocation2 + $0x28] sm:$0xff] }
 0x159   : > { %v395_v37 = vpop.permute.xlu0 %394  ;;  %v598_v39 = vld [vmem:[#allocation2 + $0x30] sm:$0xff]  ;;  %595 = vst.msk [vmem:[#allocation2 + $0x40] sm:$0xff] %vm401_vm3, %v584_v36  ;;  %607 = vrot.lane.b32.xlu1 %v597_v38, %s2149_s27  ;;  %vm2570_vm3 = vcmp.lt.f32.partialorder %v1249_v20, inf }
 0x15a   : > { %407 = vst.msk [vmem:[#allocation2 + $0x20] sm:$0x3] %vm406_vm4, %v395_v37  ;;  %609 = vrot.lane.b32.xlu0 %v598_v39, %s2149_s27  ;;  %1910 = vmatprep.subr.msk.mxu0 %vm2570_vm3, %v2359_v2  ;;  %vm1800_vm7 = vmneg %vm2570_vm3 }
 0x15b   : > { %1911 = vmatpush3.msk.msra.mxu0 %vm2570_vm3, %v2359_v2 }
 0x15c   : > { %v586_v40 = vpop.permute.xlu1 %585  ;;  %v599_v41 = vld [vmem:[#allocation2 + $0x38] sm:$0xff]  ;;  %1913 = vmatmul.mubr.msk.f32.vlgmr.msra.gmra.mxu0 %vm839_vm9, %v2479_v59 }
 0x15d   : > { %v411_v42 = vld [vmem:[#allocation2 + $0x18] sm:$0xff]  ;;  %596 = vst.msk [vmem:[#allocation2 + $0x48] sm:$0x3] %vm406_vm4, %v586_v40  ;;  %611 = vrot.lane.b32.xlu1 %v599_v41, %s2149_s27  ;;  %vm1794_vm4 = vmneg %vm2511_vm15  ;;  %1934 = vmatprep.mubr.msk.f32.mxu0 %vm839_vm9, %v2457_v54 }
 0x15e   : > { %424 = vrot.lane.b32.xlu0 %v411_v42, %s2149_s27  ;;  %1926 = vmatprep.subr.msk.mxu0 %vm1794_vm4, %v2151_v58 }
 0x15f   : > { %1927 = vmatpush3.msk.msra.mxu0 %vm1794_vm4, %v2151_v58 }
 0x160   : > { %v600_v43 = vld [vmem:[#allocation2 + $0x40] sm:$0xff]  ;;  %1928 = vmatprep.subr.msk.mxu0 %vm1796_vm5, %v2151_v58 }
 0x161   : > { %v412_v44 = vld [vmem:[#allocation2 + $0x20] sm:$0x3]  ;;  %613 = vrot.lane.b32.xlu1 %v600_v43, %s2149_s27  ;;  %1929 = vmatpush3.msk.msra.mxu0 %vm1796_vm5, %v2151_v58 }
 0x162   : > { %426 = vrot.lane.b32.xlu0 %v412_v44, %s2149_s27  ;;  %1930 = vmatprep.subr.msk.mxu0 %vm1798_vm6, %v2151_v58 }
 0x163   : > { %1931 = vmatpush3.msk.msra.mxu0 %vm1798_vm6, %v2151_v58  ;;  %vm900_vm6 = vcmask 8200  }
 0x164   : > { %v601_v45 = vld [vmem:[#allocation2 + $0x48] sm:$0x3]  ;;  %1932 = vmatprep.subr.msk.mxu0 %vm1800_vm7, %v2151_v58 }
 0x165   : > { %615 = vrot.lane.b32.xlu1 %v601_v45, %s2149_s27  ;;  %1933 = vmatpush3.msk.msra.mxu0 %vm1800_vm7, %v2151_v58 }
 0x166   : > { %1935 = vmatmul.mubr.msk.f32.vlgmr.msra.gmra.mxu0 %vm839_vm9, %v2479_v59 }
 0x1c4   : > { %v419_v52 = vpop.permute.xlu0 %418 }
 0x1c5   : > { %434 = vst.msk [vmem:[#allocation2] sm:$0xff] %vm433_vm8, %v419_v52 }
 0x1c7   : > { %v421_v56 = vpop.permute.xlu1 %420 }
 0x1c8   : > { %v423_v57 = vpop.permute.xlu0 %422  ;;  %435 = vst.msk [vmem:[#allocation2 + $0x8] sm:$0xff] %vm433_vm8, %v421_v56 }
 0x1c9   : > { %436 = vst.msk [vmem:[#allocation2 + $0x10] sm:$0xff] %vm433_vm8, %v423_v57 }
 0x1cb   : > { %v608_v60 = vpop.permute.xlu1 %607 }
 0x1cc   : > { %v610_v61 = vpop.permute.xlu0 %609  ;;  %622 = vst.msk [vmem:[#allocation2 + $0x28] sm:$0xff] %vm433_vm8, %v608_v60  ;;  %v2498_v63 = vld [vmem:[#allocation2] sm:$0xff] }
 0x1cd   : > { %623 = vst.msk [vmem:[#allocation2 + $0x30] sm:$0xff] %vm433_vm8, %v610_v61 }
 0x1cf   : > { %v612_v0 = vpop.permute.xlu1 %611  ;;  %v2501_v3 = vld [vmem:[#allocation2 + $0x2] sm:$0xff] }
 0x1d0   : > { %v425_v1 = vpop.permute.xlu0 %424  ;;  %v2503_v7 = vld [vmem:[#allocation2 + $0x8] sm:$0xff]  ;;  %624 = vst.msk [vmem:[#allocation2 + $0x38] sm:$0xff] %vm433_vm8, %v612_v0  ;;  %v2520_v11 = vsub.f32 %v2501_v3, %v2498_v63  ;;  %v2607_v5 = vld [vmem:[#allocation2 + $0x10] sm:$0xff] }
 0x1d1   : > { %v2505_v8 = vld [vmem:[#allocation2 + $0xa] sm:$0xff]  ;;  %437 = vst.msk [vmem:[#allocation2 + $0x18] sm:$0xff] %vm433_vm8, %v425_v1  ;;  %v444_v40 = vld [vmem:[#allocation2 + $0x1] sm:$0xff] }
 0x1d2   : > { %v2524_v12 = vsub.f32 %v2505_v8, %v2503_v7  ;;  %520 = vrot.lane.b32.xlu1 %v2520_v11, %s2152_s8  ;;  %v492_v4 = vmul.f32 2.0, %v2520_v11  ;;  %v452_v43 = vmul.f32 2.0, %v444_v40  ;;  %v445_v44 = vld [vmem:[#allocation2 + $0x9] sm:$0xff] }
 0x1d3   : > { %v614_v15 = vpop.permute.xlu1 %613  ;;  %v2544_v17 = vld [vmem:[#allocation2 + $0x28] sm:$0xff]  ;;  %v453_v46 = vmul.f32 2.0, %v445_v44 }
 0x1d4   : > { %522 = vrot.lane.b32.xlu0 %v2524_v12, %s2152_s8  ;;  %v427_v16 = vpop.permute.xlu0 %426  ;;  %v2546_v18 = vld [vmem:[#allocation2 + $0x2a] sm:$0xff]  ;;  %625 = vst.msk [vmem:[#allocation2 + $0x40] sm:$0xff] %vm433_vm8, %v614_v15  ;;  %v493_v37 = vmul.f32 2.0, %v2524_v12  ;;  %v456_v48 = vadd.f32 %v452_v43, %v2498_v63 }
 0x1d5   : > { %439 = vst.msk [vmem:[#allocation2 + $0x20] sm:$0x3] %vm438_vm0, %v427_v16  ;;  %v2562_v21 = vsub.f32 %v2546_v18, %v2544_v17  ;;  %v2579_v23 = vld [vmem:[#allocation2 + $0x30] sm:$0xff]  ;;  %v457_v52 = vadd.f32 %v453_v46, %v2503_v7 }
 0x1d6   : > { %v631_v45 = vld [vmem:[#allocation2 + $0x29] sm:$0xff]  ;;  %v2672_v54 = vadd.f32 %v456_v48, %v2501_v3 }
 0x1d7   : > { %v616_v22 = vpop.permute.xlu1 %615  ;;  %v2581_v24 = vld [vmem:[#allocation2 + $0x32] sm:$0xff]  ;;  %v679_v2 = vmul.f32 2.0, %v2562_v21  ;;  %v639_v49 = vmul.f32 2.0, %v631_v45  ;;  %v2680_v59 = vadd.f32 %v457_v52, %v2505_v8  ;;  %v2154_v52 = vmov 0.0  }
 0x1d8   : > { %707 = vrot.lane.b32.xlu0 %v2562_v21, %s2152_s8  ;;  %626 = vst.msk [vmem:[#allocation2 + $0x48] sm:$0x3] %vm438_vm0, %v616_v22  ;;  %v2590_v25 = vsub.f32 %v2581_v24, %v2579_v23  ;;  %v2595_v26 = vld [vmem:[#allocation2 + $0x12] sm:$0xff] }
 0x1d9   : > { %v2615_v27 = vsub.f32 %v2595_v26, %v2607_v5  ;;  %v629_v30 = vld [vmem:[#allocation2 + $0x38] sm:$0xff]  ;;  %v643_v55 = vadd.f32 %v639_v49, %v2544_v17 }
 0x1da   : > { %709 = vrot.lane.b32.xlu1 %v2590_v25, %s2152_s8  ;;  %v443_v31 = vld [vmem:[#allocation2 + $0x18] sm:$0xff]  ;;  %v680_v41 = vmul.f32 2.0, %v2590_v25 }
 0x1db   : > { %v2620_v28 = vld [vmem:[#allocation2 + $0x3a] sm:$0xff]  ;;  %v494_v33 = vmul.f32 2.0, %v2615_v27  ;;  %v632_v50 = vld [vmem:[#allocation2 + $0x31] sm:$0xff]  ;;  %v2684_v61 = vadd.f32 %v643_v55, %v2546_v18 }
 0x1dc   : > { %500 = vrot.lane.b32.xlu0 %v492_v4, %s2150_s26  ;;  %v2622_v29 = vld [vmem:[#allocation2 + $0x1a] sm:$0xff]  ;;  %v2638_v32 = vsub.f32 %v2620_v28, %v629_v30  ;;  %v446_v51 = vld [vmem:[#allocation2 + $0x11] sm:$0xff]  ;;  %v640_v53 = vmul.f32 2.0, %v632_v50 }
 0x1dd   : > { %v2642_v34 = vsub.f32 %v2622_v29, %v443_v31  ;;  %v630_v36 = vld [vmem:[#allocation2 + $0x40] sm:$0xff]  ;;  %v454_v56 = vmul.f32 2.0, %v446_v51 }
 0x1de   : > { %524 = vrot.lane.b32.xlu1 %v2615_v27, %s2152_s8  ;;  %v681_v47 = vmul.f32 2.0, %v2638_v32  ;;  %v633_v57 = vld [vmem:[#allocation2 + $0x39] sm:$0xff]  ;;  %v644_v60 = vadd.f32 %v640_v53, %v2579_v23 }
 0x1df   : > { %v638_v35 = vld [vmem:[#allocation2 + $0x42] sm:$0xff]  ;;  %v495_v38 = vmul.f32 2.0, %v2642_v34  ;;  %v447_v58 = vld [vmem:[#allocation2 + $0x19] sm:$0xff]  ;;  %v458_v62 = vadd.f32 %v454_v56, %v2607_v5  ;;  %v641_v63 = vmul.f32 2.0, %v633_v57 }
 0x1e0   : > { %687 = vrot.lane.b32.xlu0 %v679_v2, %s2150_s26  ;;  %v2654_v39 = vsub.f32 %v638_v35, %v630_v36  ;;  %v455_v0 = vmul.f32 2.0, %v447_v58  ;;  %v634_v1 = vld [vmem:[#allocation2 + $0x41] sm:$0xff]  ;;  %v2692_v3 = vadd.f32 %v644_v60, %v2581_v24 }
 0x1e1   : > { %v2695_v7 = vadd.f32 %v458_v62, %v2595_v26  ;;  %v645_v8 = vadd.f32 %v641_v63, %v629_v30  ;;  %v642_v10 = vmul.f32 2.0, %v634_v1 }
 0x1e2   : > { %711 = vrot.lane.b32.xlu1 %v2638_v32, %s2152_s8  ;;  %v682_v42 = vmul.f32 2.0, %v2654_v39  ;;  %v459_v9 = vadd.f32 %v455_v0, %v443_v31 }
 0x1e3   : > { %v2702_v13 = vadd.f32 %v645_v8, %v2620_v28  ;;  %v646_v15 = vadd.f32 %v642_v10, %v630_v36 }
 0x1e4   : > { %504 = vrot.lane.b32.xlu0 %v494_v33, %s2150_s26  ;;  %v2705_v14 = vadd.f32 %v459_v9, %v2622_v29 }
 0x1e5   : > { %v2711_v16 = vadd.f32 %v646_v15, %v638_v35 }
 0x1e6   : > { %502 = vrot.lane.b32.xlu1 %v493_v37, %s2150_s26 }
 0x1e8   : > { %506 = vrot.lane.b32.xlu0 %v495_v38, %s2150_s26 }
 0x1ea   : > { %689 = vrot.lane.b32.xlu1 %v680_v41, %s2150_s26 }
 0x1ec   : > { %693 = vrot.lane.b32.xlu0 %v682_v42, %s2150_s26 }
 0x1ee   : > { %691 = vrot.lane.b32.xlu1 %v681_v47, %s2150_s26 }
 0x1f0   : > { %526 = vrot.lane.b32.xlu0 %v2642_v34, %s2152_s8 }
 0x1f2   : > { %713 = vrot.lane.b32.xlu1 %v2654_v39, %s2152_s8 }
 0x1f4   : > { %472 = vrot.lane.b32.xlu0 %v2672_v54, %s2153_s13 }
 0x1f6   : > { %474 = vrot.lane.b32.xlu1 %v2680_v59, %s2153_s13 }
 0x1f8   : > { %659 = vrot.lane.b32.xlu0 %v2684_v61, %s2153_s13 }
 0x1fa   : > { %661 = vrot.lane.b32.xlu1 %v2692_v3, %s2153_s13 }
 0x1fc   : > { %476 = vrot.lane.b32.xlu0 %v2695_v7, %s2153_s13 }
 0x1fe   : > { %663 = vrot.lane.b32.xlu1 %v2702_v13, %s2153_s13 }
 0x200   : > { %478 = vrot.lane.b32.xlu0 %v2705_v14, %s2153_s13 }
 0x202   : > { %665 = vrot.lane.b32.xlu1 %v2711_v16, %s2153_s13 }
 0x244   : > { %v521_v18 = vpop.permute.xlu1 %520 }
 0x246   : > { %v523_v17 = vpop.permute.xlu0 %522 }
 0x24a   : > { %v708_v19 = vpop.permute.xlu0 %707 }
 0x24c   : > { %v710_v20 = vpop.permute.xlu1 %709 }
 0x24e   : > { %v501_v6 = vpop.permute.xlu0 %500 }
 0x24f   : > { %v512_v22 = vadd.f32 %v501_v6, %v2520_v11  ;;  %v906_v6 = vld [vmem:[#allocation7 + $0x10] sm:$0xff] }
 0x250   : > { %v525_v23 = vpop.permute.xlu1 %524 }
 0x251   : > { %v532_v4 = vadd.f32 %v521_v18, %v512_v22 }
 0x252   : > { %v688_v24 = vpop.permute.xlu0 %687 }
 0x253   : > { %v699_v26 = vadd.f32 %v688_v24, %v2562_v21  ;;  %v536_v28 = vmul.f32 0.125, %v532_v4  ;;  %v905_v4 = vld [vmem:[#allocation7 + $0x8] sm:$0xff] }
 0x254   : > { %v712_v5 = vpop.permute.xlu1 %711 }
 0x255   : > { %v719_v29 = vadd.f32 %v708_v19, %v699_v26  ;;  %v735_v36 = vand.u32 2147483647, %v536_v28  ;;  %v904_v26 = vld [vmem:[#allocation7] sm:$0xff] }
 0x256   : > { %v505_v2 = vpop.permute.xlu0 %504 }
 0x257   : > { %v514_v30 = vadd.f32 %v505_v2, %v2615_v27  ;;  %v723_v38 = vmul.f32 0.125, %v719_v29  ;;  %vm2720_vm8 = vcmp.lt.f32.partialorder %v735_v36, inf }
 0x258   : > { %v503_v31 = vpop.permute.xlu1 %502  ;;  %v1762_v53 = vsel %vm2720_vm8, 1.0, %v2154_v52 }
 0x259   : > { %v513_v35 = vadd.f32 %v503_v31, %v2524_v12  ;;  %v534_v40 = vadd.f32 %v525_v23, %v514_v30  ;;  %v755_v48 = vsub.f32 %v723_v38, %v536_v28  ;;  %v1870_v28 = vpop.f32.mrf.mxu0 }
 0x25a   : > { %v507_v33 = vpop.permute.xlu0 %506 }
 0x25b   : > { %v533_v37 = vadd.f32 %v523_v17, %v513_v35  ;;  %v515_v27 = vadd.f32 %v507_v33, %v2642_v34  ;;  %v538_v46 = vmul.f32 0.125, %v534_v40  ;;  %v759_v62 = vand.u32 2147483647, %v755_v48  ;;  %v907_v17 = vld [vmem:[#allocation7 + $0x18] sm:$0xff]  ;;  %v996_v29 = vpop.f32.mrf.mxu0 }
 0x25c   : > { %v690_v11 = vpop.permute.xlu1 %689  ;;  %1871 = vmatprep.subr.mxu1 %v907_v17  ;;  %1879 = vmatprep.mubr.msk.f32.mxu1 %vm839_vm9, %v996_v29 }
 0x25d   : > { %v537_v42 = vmul.f32 0.125, %v533_v37  ;;  %v700_v43 = vadd.f32 %v690_v11, %v2590_v25  ;;  %v737_v1 = vand.u32 2147483647, %v538_v46  ;;  %1872 = vmatpush3.msra.mxu1 %v907_v17  ;;  %v1892_v30 = vpop.f32.mrf.mxu0 }
 0x25e   : > { %v694_v41 = vpop.permute.xlu0 %693  ;;  %1873 = vmatprep.subr.mxu1 %v906_v6 }
 0x25f   : > { %v736_v44 = vand.u32 2147483647, %v537_v42  ;;  %v720_v45 = vadd.f32 %v710_v20, %v700_v43  ;;  %v702_v55 = vadd.f32 %v694_v41, %v2654_v39  ;;  %v763_v39 = vsel %vm2720_vm8, %v759_v62, 0.0  ;;  %1874 = vmatpush3.msra.mxu1 %v906_v6  ;;  %v1152_v31 = vpop.f32.mrf.mxu0 }
 0x260   : > { %v692_v47 = vpop.permute.xlu1 %691  ;;  %vm741_vm11 = vcmp.lt.f32.partialorder %v737_v1, inf  ;;  %1875 = vmatprep.subr.mxu1 %v905_v4 }
 0x261   : > { %vm2725_vm10 = vcmp.lt.f32.partialorder %v736_v44, inf  ;;  %v724_v50 = vmul.f32 0.125, %v720_v45  ;;  %v701_v51 = vadd.f32 %v692_v47, %v2638_v32  ;;  %v1764_v24 = vsel %vm741_vm11, 1.0, %v2154_v52  ;;  %1876 = vmatpush3.msra.mxu1 %v905_v4  ;;  %v1914_v33 = vpop.f32.mrf.mxu0 }
 0x262   : > { %v527_v12 = vpop.permute.xlu0 %526  ;;  %v1763_v34 = vsel %vm2725_vm10, 1.0, %v2154_v52  ;;  %1877 = vmatprep.subr.mxu1 %v904_v26 }
 0x263   : > { %v535_v25 = vadd.f32 %v527_v12, %v515_v27  ;;  %v721_v56 = vadd.f32 %v712_v5, %v701_v51  ;;  %v2011_v57 = vpack.i.bf16 %v1763_v34, %v1762_v53  ;;  %v756_v58 = vsub.f32 %v724_v50, %v537_v42  ;;  %1878 = vmatpush3.msra.mxu1 %v904_v26  ;;  %v1331_v35 = vpop.f32.mrf.mxu0 }
 0x264   : > { %v714_v60 = vpop.permute.xlu1 %713  ;;  %1893 = vmatprep.subr.mxu1 %v907_v17  ;;  %1880 = vmatmul.mubr.msk.f32.vlgmr.msra.gmra.mxu1 %vm839_vm9, %v1870_v28 }
 0x265   : > { %v725_v63 = vmul.f32 0.125, %v721_v56  ;;  %v539_v0 = vmul.f32 0.125, %v535_v25  ;;  %v722_v32 = vadd.f32 %v714_v60, %v702_v55  ;;  %2012 = vrot.lane.b32.xlu0 %v2011_v57, %s2153_s13  ;;  %v760_v8 = vand.u32 2147483647, %v756_v58  ;;  %1894 = vmatpush3.msra.mxu1 %v907_v17  ;;  %v1936_v36 = vpop.f32.mrf.mxu0 }
 0x266   : > { %1895 = vmatprep.subr.mxu1 %v906_v6  ;;  %1901 = vmatprep.mubr.msk.f32.mxu1 %vm839_vm9, %v1152_v31  ;;  %v473_v40 = vpop.permute.xlu0 %472 }
 0x267   : > { %v726_v9 = vmul.f32 0.125, %v722_v32  ;;  %v757_v10 = vsub.f32 %v725_v63, %v538_v46  ;;  %v764_v15 = vsel %vm2725_vm10, %v760_v8, 0.0  ;;  %v738_v18 = vand.u32 2147483647, %v539_v0  ;;  %1896 = vmatpush3.msra.mxu1 %v906_v6  ;;  %v1487_v37 = vpop.f32.mrf.mxu0 }
 0x268   : > { %773 = vrot.lane.b32.xlu1 %v764_v15, %s2153_s13  ;;  %1897 = vmatprep.subr.mxu1 %v905_v4  ;;  %v475_v38 = vpop.permute.xlu1 %474  ;;  %v484_v42 = vsub.f32 %v2672_v54, %v473_v40 }
 0x269   : > { %v758_v19 = vsub.f32 %v726_v9, %v539_v0  ;;  %771 = vrot.lane.b32.xlu0 %v763_v39, %s2153_s13  ;;  %v761_v20 = vand.u32 2147483647, %v757_v10  ;;  %vm742_vm12 = vcmp.lt.f32.partialorder %v738_v18, inf  ;;  %1898 = vmatpush3.msra.mxu1 %v905_v4  ;;  %v485_v43 = vsub.f32 %v2680_v59, %v475_v38 }
 0x26a   : > { %v1765_v2 = vsel %vm742_vm12, 1.0, %v2154_v52  ;;  %1899 = vmatprep.subr.mxu1 %v904_v26  ;;  %v660_v41 = vpop.permute.xlu0 %659  ;;  %v488_v27 = vmul.f32 0.125, %v484_v42 }
 0x26b   : > { %v765_v22 = vsel %vm741_vm11, %v761_v20, 0.0  ;;  %v762_v23 = vand.u32 2147483647, %v758_v19  ;;  %1900 = vmatpush3.msra.mxu1 %v904_v26  ;;  %v671_v21 = vsub.f32 %v2684_v61, %v660_v41  ;;  %v489_v47 = vmul.f32 0.125, %v485_v43 }
 0x26c   : > { %775 = vrot.lane.b32.xlu1 %v765_v22, %s2153_s13  ;;  %1902 = vmatmul.mubr.msk.f32.vlgmr.msra.gmra.mxu1 %vm839_vm9, %v1892_v30  ;;  %v662_v11 = vpop.permute.xlu1 %661  ;;  %v727_v50 = vand.u32 2147483647, %v488_v27 }
 0x26d   : > { %811 = vrot.lane.b32.xlu0 %v1764_v24, %s2153_s13  ;;  %v766_v5 = vsel %vm742_vm12, %v762_v23, 0.0  ;;  %1915 = vmatprep.subr.mxu1 %v907_v17  ;;  %v672_v45 = vsub.f32 %v2692_v3, %v662_v11  ;;  %v675_v12 = vmul.f32 0.125, %v671_v21  ;;  %v728_v53 = vand.u32 2147483647, %v489_v47 }
 0x26e   : > { %1916 = vmatpush3.msra.mxu1 %v907_v17  ;;  %1923 = vmatprep.mubr.msk.f32.mxu1 %vm839_vm9, %v1331_v35  ;;  %v477_v46 = vpop.permute.xlu0 %476  ;;  %vm2765_vm13 = vcmp.lt.f32.partialorder %v727_v50, inf }
 0x26f   : > { %1917 = vmatprep.subr.mxu1 %v906_v6  ;;  %v676_v48 = vmul.f32 0.125, %v672_v45  ;;  %v486_v51 = vsub.f32 %v2695_v7, %v477_v46  ;;  %v743_v34 = vsub.f32 %v675_v12, %v488_v27  ;;  %vm2770_vm14 = vcmp.lt.f32.partialorder %v728_v53, inf }
 0x270   : > { %777 = vrot.lane.b32.xlu1 %v766_v5, %s2153_s13  ;;  %1918 = vmatpush3.msra.mxu1 %v906_v6  ;;  %v664_v44 = vpop.permute.xlu1 %663  ;;  %v1758_v60 = vsel %vm2765_vm13, 1.0, %v2154_v52  ;;  %v1759_v0 = vsel %vm2770_vm14, 1.0, %v2154_v52 }
 0x271   : > { %813 = vrot.lane.b32.xlu0 %v1765_v2, %s2153_s13  ;;  %1919 = vmatprep.subr.mxu1 %v905_v4  ;;  %v673_v49 = vsub.f32 %v2702_v13, %v664_v44  ;;  %v744_v59 = vsub.f32 %v676_v48, %v489_v47  ;;  %v490_v3 = vmul.f32 0.125, %v486_v51  ;;  %v747_v58 = vand.u32 2147483647, %v743_v34 }
 0x272   : > { %1920 = vmatpush3.msra.mxu1 %v905_v4  ;;  %v479_v54 = vpop.permute.xlu0 %478 }
 0x273   : > { %1921 = vmatprep.subr.mxu1 %v904_v26  ;;  %v677_v55 = vmul.f32 0.125, %v673_v49  ;;  %v487_v57 = vsub.f32 %v2705_v14, %v479_v54  ;;  %v729_v8 = vand.u32 2147483647, %v490_v3 }
 0x274   : > { %1922 = vmatpush3.msra.mxu1 %v904_v26  ;;  %v666_v25 = vpop.permute.xlu1 %665 }
 0x275   : > { %1937 = vmatprep.subr.mxu1 %v907_v17  ;;  %1924 = vmatmul.mubr.msk.f32.vlgmr.msra.gmra.mxu1 %vm839_vm9, %v1914_v33  ;;  %v674_v61 = vsub.f32 %v2711_v16, %v666_v25  ;;  %v745_v62 = vsub.f32 %v677_v55, %v490_v3  ;;  %v748_v16 = vand.u32 2147483647, %v744_v59  ;;  %v491_v32 = vmul.f32 0.125, %v487_v57 }
 0x276   : > { %1938 = vmatpush3.msra.mxu1 %v907_v17  ;;  %1945 = vmatprep.mubr.msk.f32.mxu1 %vm839_vm9, %v1487_v37  ;;  %v751_v17 = vsel %vm2765_vm13, %v747_v58, 0.0  ;;  %vm733_vm15 = vcmp.lt.f32.partialorder %v729_v8, inf }
 0x277   : > { %1939 = vmatprep.subr.mxu1 %v906_v6  ;;  %v678_v63 = vmul.f32 0.125, %v674_v61  ;;  %v752_v39 = vsel %vm2770_vm14, %v748_v16, 0.0  ;;  %v749_v18 = vand.u32 2147483647, %v745_v62 }
 0x278   : > { %1940 = vmatpush3.msra.mxu1 %v906_v6  ;;  %v730_v6 = vand.u32 2147483647, %v491_v32 }
 0x279   : > { %1941 = vmatprep.subr.mxu1 %v905_v4  ;;  %v746_v15 = vsub.f32 %v678_v63, %v491_v32  ;;  %v753_v24 = vsel %vm733_vm15, %v749_v18, 0.0 }
 0x27a   : > { %1942 = vmatpush3.msra.mxu1 %v905_v4  ;;  %v1760_v4 = vsel %vm733_vm15, 1.0, %v2154_v52  ;;  %vm734_vm0 = vcmp.lt.f32.partialorder %v730_v6, inf }
 0x27b   : > { %1943 = vmatprep.subr.mxu1 %v904_v26  ;;  %v1761_v31 = vsel %vm734_vm0, 1.0, %v2154_v52 }
 0x27c   : > { %1944 = vmatpush3.msra.mxu1 %v904_v26  ;;  %v750_v26 = vand.u32 2147483647, %v746_v15 }
 0x27d   : > { %1946 = vmatmul.mubr.msk.f32.vlgmr.msra.gmra.mxu1 %vm839_vm9, %v1936_v36 }
 0x27e   : > { %v754_v30 = vsel %vm734_vm0, %v750_v26, 0.0 }
 0x2d7   : > { %v2013_v7 = vpop.permute.xlu0 %2012 }
 0x2d8   : > { %v2016_v1 = vadd.high.f32.bf16 %v1759_v0, %v2013_v7  ;;  %v2017_v14 = vadd.low.f32.bf16 %v1758_v60, %v2013_v7 }
 0x2da   : > { %v774_v9 = vpop.permute.xlu1 %773  ;;  %867 = vrot.lane.b32.xlu0 %v2016_v1, %s2152_s8  ;;  %865 = vrot.lane.b32.xlu1 %v2017_v14, %s2152_s8 }
 0x2db   : > { %v772_v10 = vpop.permute.xlu0 %771  ;;  %v784_v19 = vadd.f32 %v774_v9, %v752_v39 }
 0x2dc   : > { %v783_v20 = vadd.f32 %v772_v10, %v751_v17 }
 0x2de   : > { %v776_v22 = vpop.permute.xlu1 %775  ;;  %829 = vrot.lane.b32.xlu0 %v784_v19, %s2152_s8  ;;  %827 = vrot.lane.b32.xlu1 %v783_v20, %s2152_s8 }
 0x2df   : > { %v812_v23 = vpop.permute.xlu0 %811  ;;  %v785_v5 = vadd.f32 %v776_v22, %v753_v24 }
 0x2e0   : > { %v821_v2 = vadd.f32 %v1760_v4, %v812_v23 }
 0x2e2   : > { %v778_v28 = vpop.permute.xlu1 %777  ;;  %869 = vrot.lane.b32.xlu0 %v821_v2, %s2152_s8  ;;  %831 = vrot.lane.b32.xlu1 %v785_v5, %s2152_s8 }
 0x2e3   : > { %v814_v29 = vpop.permute.xlu0 %813  ;;  %v786_v33 = vadd.f32 %v778_v28, %v754_v30 }
 0x2e4   : > { %v822_v35 = vadd.f32 %v1761_v31, %v814_v29 }
 0x2e6   : > { %871 = vrot.lane.b32.xlu0 %v822_v35, %s2152_s8  ;;  %833 = vrot.lane.b32.xlu1 %v786_v33, %s2152_s8 }
 0x324   : > { %v1881_v36 = vpop.f32.mrf.mxu1 }
 0x326   : > { %v1077_v52 = vpop.f32.mrf.mxu1 }
 0x32c   : > { %v1903_v44 = vpop.f32.mrf.mxu1 }
 0x32d   : > { %vm1243_vm2 = vcmp.gt.f32.partialorder %v1903_v44, 0.0 }
 0x32e   : > { %v1245_v12 = vsel %vm1243_vm2, nan, %v1881_v36  ;;  %v1233_v48 = vpop.f32.mrf.mxu1 }
 0x32f   : > { %1248 = vst.msk [vmem:[%s341_s19 + $0x8] sm:$0xff] %vm1246_vm1, %v1245_v12  ;;  %vm1242_vm3 = vcmp.gt.f32.partialorder %v1233_v48, 0.0 }
 0x330   : > { %v1244_v49 = vsel %vm1242_vm3, nan, %v1077_v52 }
 0x331   : > { %1247 = vst.msk [vmem:[%s341_s19] sm:$0xff] %vm1246_vm1, %v1244_v49 }
 0x335   : > { %v1925_v54 = vpop.f32.mrf.mxu1 }
 0x337   : > { %v1412_v34 = vpop.f32.mrf.mxu1 }
 0x33d   : > { %v1947_v59 = vpop.f32.mrf.mxu1 }
 0x33e   : > { %vm1578_vm4 = vcmp.gt.f32.partialorder %v1947_v59, 0.0 }
 0x33f   : > { %v1580_v55 = vsel %vm1578_vm4, nan, %v1925_v54  ;;  %v1568_v61 = vpop.f32.mrf.mxu1 }
 0x340   : > { %1582 = vst.msk [vmem:[%s346_s18 + $0x8] sm:$0xff] %vm1246_vm1, %v1580_v55  ;;  %vm1577_vm5 = vcmp.gt.f32.partialorder %v1568_v61, 0.0 }
 0x341   : > { %v1579_v56 = vsel %vm1577_vm5, nan, %v1412_v34 }
 0x342   : > { %1581 = vst.msk [vmem:[%s346_s18] sm:$0xff] %vm1246_vm1, %v1579_v56 }
 0x34c   : > { %v868_v37 = vpop.permute.xlu0 %867  ;;  %v866_v38 = vpop.permute.xlu1 %865 }
 0x34d   : > { %v880_v40 = vsel %vm839_vm9, %v868_v37, 0.0  ;;  %v877_v11 = vsel %vm839_vm9, %v866_v38, 0.0 }
 0x34e   : > { %881 = vadd.xlane.f32.xlu1 %v880_v40  ;;  %878 = vadd.xlane.f32.xlu0 %v877_v11 }
 0x350   : > { %v830_v41 = vpop.permute.xlu0 %829  ;;  %v828_v42 = vpop.permute.xlu1 %827 }
 0x351   : > { %v843_v43 = vsel %vm839_vm9, %v830_v41, 0.0  ;;  %v840_v21 = vsel %vm839_vm9, %v828_v42, 0.0 }
 0x352   : > { %844 = vadd.xlane.f32.xlu0 %v843_v43  ;;  %841 = vadd.xlane.f32.xlu1 %v840_v21 }
 0x354   : > { %v870_v27 = vpop.permute.xlu0 %869  ;;  %v832_v45 = vpop.permute.xlu1 %831 }
 0x355   : > { %v883_v46 = vsel %vm839_vm9, %v870_v27, 0.0  ;;  %v846_v47 = vsel %vm839_vm9, %v832_v45, 0.0 }
 0x356   : > { %884 = vadd.xlane.f32.xlu1 %v883_v46  ;;  %847 = vadd.xlane.f32.xlu0 %v846_v47 }
 0x358   : > { %v872_v50 = vpop.permute.xlu0 %871  ;;  %v834_v51 = vpop.permute.xlu1 %833 }
 0x359   : > { %v886_v25 = vsel %vm839_vm9, %v872_v50, 0.0  ;;  %v849_v53 = vsel %vm839_vm9, %v834_v51, 0.0  ;;  %vm898_vm9 = vcmask 0  }
 0x35a   : > { %887 = vadd.xlane.f32.xlu1 %v886_v25  ;;  %850 = vadd.xlane.f32.xlu0 %v849_v53 }
 0x3d7   : > { %v879_v3 = vpop.xlane.xlu0 %878  ;;  %v882_v57 = vpop.xlane.xlu1 %881 }
 0x3d8   : > { %v889_v62 = vadd.f32 %v882_v57, %v879_v3 }
 0x3db   : > { %v845_v13 = vpop.xlane.xlu0 %844  ;;  %v842_v7 = vpop.xlane.xlu1 %841 }
 0x3dc   : > { %v852_v63 = vadd.f32 %v845_v13, %v842_v7 }
 0x3df   : > { %v848_v58 = vpop.xlane.xlu0 %847  ;;  %v885_v60 = vpop.xlane.xlu1 %884 }
 0x3e0   : > { %v853_v16 = vadd.f32 %v852_v63, %v848_v58  ;;  %v890_v0 = vadd.f32 %v889_v62, %v885_v60 }
 0x3e3   : > { %v851_v32 = vpop.xlane.xlu0 %850  ;;  %v888_v1 = vpop.xlane.xlu1 %887 }
 0x3e4   : > { %v854_v14 = vadd.f32 %v853_v16, %v851_v32  ;;  %v891_v8 = vadd.f32 %v890_v0, %v888_v1 }
 0x3e6   : > { %v855_v9 = vrot.slane %v854_v14, 4  ;;  %v892_v10 = vrot.slane %v891_v8, 4 }
 0x3e8   : > { %v856_v15 = vadd.f32 %v855_v9, %v854_v14  ;;  %v893_v39 = vadd.f32 %v892_v10, %v891_v8 }
 0x3ea   : > { %v857_v17 = vrot.slane %v856_v15, 2  ;;  %v894_v18 = vrot.slane %v893_v39, 2 }
 0x3ec   : > { %v858_v19 = vadd.f32 %v857_v17, %v856_v15  ;;  %v895_v20 = vadd.f32 %v894_v18, %v893_v39 }
 0x3ee   : > { %v859_v6 = vrot.slane %v858_v19, 1  ;;  %v896_v22 = vrot.slane %v895_v20, 1 }
 0x3f0   : > { %v860_v23 = vadd.f32 %v859_v6, %v858_v19  ;;  %v897_v24 = vadd.f32 %v896_v22, %v895_v20 }
 0x3f2   : > { %899 = vst.msk [vmem:[%s336_s11] sm:$0x1] %vm898_vm9, %v860_v23 }
 0x3f3   : > { %901 = vst.msk [vmem:[%s336_s11] sm:$0x1] %vm900_vm6, %v897_v24 }
 0x3f4 PF: > { %p20_p6 = scmp.ge.s32.totalorder %s2234_s7, 4   ;;  %s2881_s21 = smov %s2134_s22 }
 0x3f5   : > { %s2882_s22 = smov %s2138_s23  ;;  %s2883_s23 = smov %s2254_s15 }
 0x3f6   : > { %s2884_s24 = smov %s2234_s7  ;;  %22 = sbr.rel (!%p20_p6) target bundleno = 5 (0x5), region = 118 }
 0x3fb   :  { %1632 = vsyncpa [#allocation4], 1 }
 0x3fc   :  { %1634 = vsyncpa [#allocation4 + $0x1], 1 }
 0x3fd   :  { %1635 = vsyncpa [#allocation6], 1 }
 0x3fe   :  { %1637 = vsyncpa [#allocation6 + $0x1], 1 }

</bundles_post_ra>
